<compile_context>
chip_gen: v5e
topology: v5e:2x2
jax: 0.10.0
libtpu: 0.0.40
codegen_flags: <defaults>
</compile_context>

<pallas_src>
import jax
import jax.numpy as jnp
from jax.experimental import pallas as pl
from jax.experimental.pallas import tpu as pltpu

_HIGH = jax.lax.Precision.HIGHEST


def _gates_to_hc(gates, c, H):
    """LSTM gate math, PyTorch gate order i|f|g|o along the lane axis.

    Two full-width EUP passes (sigmoid / tanh over all 4H lanes) instead of
    four sub-vreg nonlinearities; slices then pick the aligned gate windows.
    """
    sig = jax.nn.sigmoid(gates)          # i, f, o
    th = jnp.tanh(gates)                 # g
    i = sig[:, 0 * H:1 * H]
    f = sig[:, 1 * H:2 * H]
    g = th[:, 2 * H:3 * H]
    o = sig[:, 3 * H:4 * H]
    c_new = f * c + i * g
    h_new = o * jnp.tanh(c_new)
    return h_new, c_new


def seq2seq_kernel(tf_ref,                 # SMEM [T] int32 teacher-forcing mask
                   x_ref,                  # VMEM [T, Bt, D]
                   wxcat_ref,              # VMEM [D, 8H]  = [wx_e | wx_d]
                   whe_ref, be_ref,        # VMEM [H, 4H], [1, 4H]   (encoder)
                   whdcat_ref,             # VMEM [H, 8H]  = [wh_d | wh_d + w_out@wx_d]
                   bd_ref,                 # VMEM [1, 4H]  = b_d
                   bfree_ref,              # VMEM [1, 4H]  = b_d + b_out @ wx_d
                   wout_ref, bout_ref,     # VMEM [H, D], [1, D]     (head)
                   out_ref,                # VMEM [T, Bt, D]
                   enc_sc,                 # VMEM [T*Bt, 4H] scratch
                   dec_sc,                 # VMEM [T*Bt, 4H] scratch
                   h_sc):                  # VMEM [T*Bt, H]  scratch
    T, B, D = x_ref.shape
    H = whe_ref.shape[0]
    G = 4 * H

    # ---- hoisted input projections: ONE [T*B, D] @ [D, 8H] matmul ----------
    # Results are parked in VMEM scratch so they are not 16+ vregs held live
    # across the fully-unrolled recurrences; each step reloads its slice.
    x_flat = x_ref[...].reshape(T * B, D)
    proj = jnp.dot(x_flat, wxcat_ref[...],
                   preferred_element_type=jnp.float32, precision=_HIGH)
    enc_sc[...] = proj[:, :G] + be_ref[...]     # x@wx_e + b_e  for every step
    dec_sc[...] = proj[:, G:] + bd_ref[...]     # x@wx_d + b_d  for every step

    whe = whe_ref[...]
    whd_cat = whdcat_ref[...]
    bd = bd_ref[...]
    b_free = bfree_ref[...]

    h = jnp.zeros((B, H), jnp.float32)
    c = jnp.zeros((B, H), jnp.float32)

    # ---- encoder recurrence: one h-matmul / step, loop-invariant RHS -------
    for t in range(T):
        gates = enc_sc[t * B:(t + 1) * B, :] + jnp.dot(
            h, whe, preferred_element_type=jnp.float32, precision=_HIGH)
        h, c = _gates_to_hc(gates, c, H)

    # ---- decoder recurrence: ONE h-matmul / step against constant [H, 8H] --
    # step 0: decoder_input == 0  ->  gates = h @ wh_d + b_d
    g = jnp.dot(h, whd_cat, preferred_element_type=jnp.float32, precision=_HIGH)
    h, c = _gates_to_hc(g[:, :G] + bd, c, H)
    h_sc[0:B, :] = h

    for t in range(1, T):
        g = jnp.dot(h, whd_cat,
                    preferred_element_type=jnp.float32, precision=_HIGH)
        # tf_mask[t-1]==1 -> teacher forcing fed x[t-1]; else fed its output.
        # Vector select between the two gate pre-activations (no per-step
        # weight blend, no (1-m) broadcast of a weight-sized tensor).
        use_tf = jnp.full((B, G), tf_ref[t - 1], dtype=jnp.int32) != 0
        gates = jnp.where(use_tf,
                          g[:, :G] + dec_sc[(t - 1) * B:t * B, :],   # TF branch
                          g[:, G:] + b_free)                         # free-run
        h, c = _gates_to_hc(gates, c, H)
        h_sc[t * B:(t + 1) * B, :] = h

    # ---- deferred output head: one batched matmul, one store ---------------
    out = jnp.dot(h_sc[...], wout_ref[...],
                  preferred_element_type=jnp.float32,
                  precision=_HIGH) + bout_ref[...]
    out_ref[...] = out.reshape(T, B, D)


def seq2seq_autoencoder(x_btd, params, tf_mask, b_tile=8):
    """x_btd: [B, T, D] float32 (batch_first, as in the PyTorch module)."""
    B, T, D = x_btd.shape
    H = params["wh_e"].shape[0]
    assert B % b_tile == 0, "batch must be a multiple of the batch tile"

    x_tbd = jnp.transpose(x_btd, (1, 0, 2))                      # time-major

    wx_e, wh_e, b_e = params["wx_e"], params["wh_e"], params["b_e"]
    wx_d, wh_d, b_d = params["wx_d"], params["wh_d"], params["b_d"]
    w_out, b_out = params["w_out"], params["b_out"]

    # Wrapper-side algebraic folds (keep the decoder MXU RHS loop-invariant).
    wx_cat = jnp.concatenate([wx_e, wx_d], axis=1)               # [D, 8H]
    w_fold = jnp.dot(w_out, wx_d, precision=_HIGH)               # [H, 4H]
    whd_cat = jnp.concatenate([wh_d, wh_d + w_fold], axis=1)     # [H, 8H]
    b_free = b_d + jnp.dot(b_out, wx_d, precision=_HIGH)         # [1, 4H]

    grid = (B // b_tile,)
    grid_spec = pltpu.PrefetchScalarGridSpec(
        num_scalar_prefetch=1,                                   # tf_mask -> SMEM
        grid=grid,
        in_specs=[
            pl.BlockSpec((T, b_tile, D), lambda b, tf: (0, b, 0)),   # x
            pl.BlockSpec((D, 8 * H), lambda b, tf: (0, 0)),          # wx_cat
            pl.BlockSpec((H, 4 * H), lambda b, tf: (0, 0)),          # wh_e
            pl.BlockSpec((1, 4 * H), lambda b, tf: (0, 0)),          # b_e
            pl.BlockSpec((H, 8 * H), lambda b, tf: (0, 0)),          # whd_cat
            pl.BlockSpec((1, 4 * H), lambda b, tf: (0, 0)),          # b_d
            pl.BlockSpec((1, 4 * H), lambda b, tf: (0, 0)),          # b_free
            pl.BlockSpec((H, D), lambda b, tf: (0, 0)),              # w_out
            pl.BlockSpec((1, D), lambda b, tf: (0, 0)),              # b_out
        ],
        out_specs=pl.BlockSpec((T, b_tile, D), lambda b, tf: (0, b, 0)),
        scratch_shapes=[
            pltpu.VMEM((T * b_tile, 4 * H), jnp.float32),   # enc projections
            pltpu.VMEM((T * b_tile, 4 * H), jnp.float32),   # dec projections
            pltpu.VMEM((T * b_tile, H), jnp.float32),       # decoder h history
        ],
    )

    out_tbd = pl.pallas_call(
        seq2seq_kernel,
        out_shape=jax.ShapeDtypeStruct((T, B, D), jnp.float32),
        grid_spec=grid_spec,
        compiler_params=pltpu.CompilerParams(
            dimension_semantics=("parallel",)),   # batch tiles are independent
    )(tf_mask, x_tbd, wx_cat,
      wh_e, b_e, whd_cat, b_d, b_free, w_out, b_out)

    return jnp.transpose(out_tbd, (1, 0, 2))


def init_params(key, input_dim, hidden_dim):
    """Deterministic init mirroring PyTorch shapes (uniform +-1/sqrt(H))."""
    k = 1.0 / jnp.sqrt(jnp.float32(hidden_dim))
    keys = jax.random.split(key, 10)

    def u(kk, shape):
        return jax.random.uniform(kk, shape, jnp.float32, -k, k)

    w_ih_e = u(keys[0], (4 * hidden_dim, input_dim))
    w_hh_e = u(keys[1], (4 * hidden_dim, hidden_dim))
    b_ih_e = u(keys[2], (4 * hidden_dim,))
    b_hh_e = u(keys[3], (4 * hidden_dim,))
    w_ih_d = u(keys[4], (4 * hidden_dim, input_dim))
    w_hh_d = u(keys[5], (4 * hidden_dim, hidden_dim))
    b_ih_d = u(keys[6], (4 * hidden_dim,))
    b_hh_d = u(keys[7], (4 * hidden_dim,))
    w_lin = u(keys[8], (input_dim, hidden_dim))
    b_lin = u(keys[9], (input_dim,))

    return {
        "wx_e": w_ih_e.T, "wh_e": w_hh_e.T,
        "b_e": (b_ih_e + b_hh_e).reshape(1, -1),
        "wx_d": w_ih_d.T, "wh_d": w_hh_d.T,
        "b_d": (b_ih_d + b_hh_d).reshape(1, -1),
        "w_out": w_lin.T, "b_out": b_lin.reshape(1, -1),
    }


def reference(x_btd, params, tf_mask):
    """Pure-JAX reference of the PyTorch forward (same tf mask, no folds)."""
    B, T, D = x_btd.shape
    H = params["wh_e"].shape[0]

    def step(xt, h, c, wx, wh, b):
        gates = (jnp.dot(xt, wx, precision=_HIGH)
                 + jnp.dot(h, wh, precision=_HIGH) + b)
        i = jax.nn.sigmoid(gates[:, :H])
        f = jax.nn.sigmoid(gates[:, H:2 * H])
        g = jnp.tanh(gates[:, 2 * H:3 * H])
        o = jax.nn.sigmoid(gates[:, 3 * H:])
        c = f * c + i * g
        h = o * jnp.tanh(c)
        return h, c

    h = jnp.zeros((B, H), jnp.float32)
    c = jnp.zeros((B, H), jnp.float32)
    for t in range(T):
        h, c = step(x_btd[:, t, :], h, c,
                    params["wx_e"], params["wh_e"], params["b_e"])

    dec_in = jnp.zeros((B, D), jnp.float32)
    outs = []
    for t in range(T):
        h, c = step(dec_in, h, c,
                    params["wx_d"], params["wh_d"], params["b_d"])
        out = jnp.dot(h, params["w_out"], precision=_HIGH) + params["b_out"]
        outs.append(out)
        dec_in = jnp.where(tf_mask[t] != 0, x_btd[:, t, :], out)
    return jnp.stack(outs, axis=1)


if __name__ == "__main__":
    # Small shapes consistent with the module; batch raised to 16 and tiled
    # by 8 so the grid exercises the parallel batch axis (2 batch tiles).
    batch, seq_length, input_dim, hidden_dim = 16, 8, 8, 32
    teacher_forcing_ratio = 0.5

    root = jax.random.PRNGKey(0)
    k_x, k_p, k_tf = jax.random.split(root, 3)

    x = jax.random.normal(k_x, (batch, seq_length, input_dim), jnp.float32)
    params = init_params(k_p, input_dim, hidden_dim)

    # TODO(synk): PyTorch draws np.random.rand() per decoder step at call
    # time; we use a deterministic precomputed per-step int32 mask instead.
    tf_mask = (jax.random.uniform(k_tf, (seq_length,))
               < teacher_forcing_ratio).astype(jnp.int32)

    out = seq2seq_autoencoder(x, params, tf_mask)
    out = jax.block_until_ready(out)

    ref = reference(x, params, tf_mask)
    assert out.shape == (batch, seq_length, input_dim)
    err = jnp.max(jnp.abs(out - ref))
    # The decoder-feedback fold reassociates float sums; with HIGHEST matmul
    # precision on both sides the difference stays ~1e-6.
    assert jnp.allclose(out, ref, atol=1e-4, rtol=1e-4), f"max abs err {err}"

    print("KERNEL_OK")
</pallas_src>

<mosaic_0001>
module attributes {stable_mosaic.version = 11 : i64} {
  func.func @seq2seq_kernel(%arg0: i32, %arg1: memref<8xi32, #tpu.memory_space<smem>>, %arg2: memref<8x8x8xf32, #tpu.memory_space<vmem>>, %arg3: memref<8x256xf32, #tpu.memory_space<vmem>>, %arg4: memref<32x128xf32, #tpu.memory_space<vmem>>, %arg5: memref<1x128xf32, #tpu.memory_space<vmem>>, %arg6: memref<32x256xf32, #tpu.memory_space<vmem>>, %arg7: memref<1x128xf32, #tpu.memory_space<vmem>>, %arg8: memref<1x128xf32, #tpu.memory_space<vmem>>, %arg9: memref<32x8xf32, #tpu.memory_space<vmem>>, %arg10: memref<1x8xf32, #tpu.memory_space<vmem>>, %arg11: memref<8x8x8xf32, #tpu.memory_space<vmem>>, %arg12: memref<64x128xf32, #tpu.memory_space<vmem>>, %arg13: memref<64x128xf32, #tpu.memory_space<vmem>>, %arg14: memref<64x32xf32, #tpu.memory_space<vmem>>) attributes {dimension_semantics = [#tpu.dimension_semantics<parallel>], iteration_bounds = array<i64: 2>, scalar_prefetch = 1 : i64, scratch_operands = 3 : i64, tpu.core_type = #tpu.core_type<tc>, window_params = [{transform_indices = @transform_0, window_bounds = array<i64: 8, 8, 8>}, {pipeline_mode = #tpu.pipeline_mode<synchronous>, transform_indices = @transform_1, window_bounds = array<i64: 8, 256>}, {pipeline_mode = #tpu.pipeline_mode<synchronous>, transform_indices = @transform_2, window_bounds = array<i64: 32, 128>}, {pipeline_mode = #tpu.pipeline_mode<synchronous>, transform_indices = @transform_3, window_bounds = array<i64: 1, 128>}, {pipeline_mode = #tpu.pipeline_mode<synchronous>, transform_indices = @transform_4, window_bounds = array<i64: 32, 256>}, {pipeline_mode = #tpu.pipeline_mode<synchronous>, transform_indices = @transform_5, window_bounds = array<i64: 1, 128>}, {pipeline_mode = #tpu.pipeline_mode<synchronous>, transform_indices = @transform_6, window_bounds = array<i64: 1, 128>}, {pipeline_mode = #tpu.pipeline_mode<synchronous>, transform_indices = @transform_7, window_bounds = array<i64: 32, 8>}, {pipeline_mode = #tpu.pipeline_mode<synchronous>, transform_indices = @transform_8, window_bounds = array<i64: 1, 8>}, {transform_indices = @transform_9, window_bounds = array<i64: 8, 8, 8>}]} {
    %c0 = arith.constant 0 : index
    %c0_0 = arith.constant 0 : index
    %c0_1 = arith.constant 0 : index
    %0 = vector.load %arg2[%c0, %c0_0, %c0_1] : memref<8x8x8xf32, #tpu.memory_space<vmem>>, vector<8x8x8xf32>
    %1 = vector.shape_cast %0 : vector<8x8x8xf32> to vector<64x8xf32>
    %c0_2 = arith.constant 0 : index
    %c0_3 = arith.constant 0 : index
    %2 = vector.load %arg3[%c0_2, %c0_3] : memref<8x256xf32, #tpu.memory_space<vmem>>, vector<8x256xf32>
    %cst = arith.constant dense<0.000000e+00> : vector<64x256xf32>
    %3 = tpu.matmul %1, %2, %cst {dimension_numbers = #tpu.dot_dimension_numbers<[1], [0], [0], [1], [0, 0, 1, 1], [], []>, precision = #tpu.contract_precision<fp32>} : vector<64x8xf32>, vector<8x256xf32>, vector<64x256xf32> -> vector<64x256xf32>
    %4 = vector.extract_strided_slice %3 {offsets = [0, 0], sizes = [64, 128], strides = [1, 1]} : vector<64x256xf32> to vector<64x128xf32>
    %c0_4 = arith.constant 0 : index
    %c0_5 = arith.constant 0 : index
    %5 = vector.load %arg5[%c0_4, %c0_5] : memref<1x128xf32, #tpu.memory_space<vmem>>, vector<1x128xf32>
    %6 = vector.broadcast %5 : vector<1x128xf32> to vector<64x128xf32>
    %7 = arith.addf %4, %6 : vector<64x128xf32>
    %c0_6 = arith.constant 0 : index
    %c0_7 = arith.constant 0 : index
    %8 = vector.load %arg12[%c0_6, %c0_7] : memref<64x128xf32, #tpu.memory_space<vmem>>, vector<64x128xf32>
    tpu.vector_store %arg12[%c0_6, %c0_7], %7 {strides = array<i32>} : memref<64x128xf32, #tpu.memory_space<vmem>>, vector<64x128xf32>,
    %9 = vector.extract_strided_slice %3 {offsets = [0, 128], sizes = [64, 128], strides = [1, 1]} : vector<64x256xf32> to vector<64x128xf32>
    %c0_8 = arith.constant 0 : index
    %c0_9 = arith.constant 0 : index
    %10 = vector.load %arg7[%c0_8, %c0_9] : memref<1x128xf32, #tpu.memory_space<vmem>>, vector<1x128xf32>
    %11 = vector.broadcast %10 : vector<1x128xf32> to vector<64x128xf32>
    %12 = arith.addf %9, %11 : vector<64x128xf32>
    %c0_10 = arith.constant 0 : index
    %c0_11 = arith.constant 0 : index
    %13 = vector.load %arg13[%c0_10, %c0_11] : memref<64x128xf32, #tpu.memory_space<vmem>>, vector<64x128xf32>
    tpu.vector_store %arg13[%c0_10, %c0_11], %12 {strides = array<i32>} : memref<64x128xf32, #tpu.memory_space<vmem>>, vector<64x128xf32>,
    %c0_12 = arith.constant 0 : index
    %c0_13 = arith.constant 0 : index
    %14 = vector.load %arg4[%c0_12, %c0_13] : memref<32x128xf32, #tpu.memory_space<vmem>>, vector<32x128xf32>
    %c0_14 = arith.constant 0 : index
    %c0_15 = arith.constant 0 : index
    %15 = vector.load %arg6[%c0_14, %c0_15] : memref<32x256xf32, #tpu.memory_space<vmem>>, vector<32x256xf32>
    %c0_16 = arith.constant 0 : index
    %c0_17 = arith.constant 0 : index
    %16 = vector.load %arg7[%c0_16, %c0_17] : memref<1x128xf32, #tpu.memory_space<vmem>>, vector<1x128xf32>
    %c0_18 = arith.constant 0 : index
    %c0_19 = arith.constant 0 : index
    %17 = vector.load %arg8[%c0_18, %c0_19] : memref<1x128xf32, #tpu.memory_space<vmem>>, vector<1x128xf32>
    %cst_20 = arith.constant 0.000000e+00 : f32
    %18 = vector.broadcast %cst_20 : f32 to vector<8x32xf32>
    %cst_21 = arith.constant 0.000000e+00 : f32
    %19 = vector.broadcast %cst_21 : f32 to vector<8x32xf32>
    %c0_22 = arith.constant 0 : index
    %c0_23 = arith.constant 0 : index
    %20 = vector.load %arg12[%c0_22, %c0_23] : memref<64x128xf32, #tpu.memory_space<vmem>>, vector<8x128xf32>
    %cst_24 = arith.constant dense<0.000000e+00> : vector<8x128xf32>
    %21 = tpu.matmul %18, %14, %cst_24 {dimension_numbers = #tpu.dot_dimension_numbers<[1], [0], [0], [1], [0, 0, 1, 1], [], []>, precision = #tpu.contract_precision<fp32>} : vector<8x32xf32>, vector<32x128xf32>, vector<8x128xf32> -> vector<8x128xf32>
    %22 = arith.addf %20, %21 : vector<8x128xf32>
    %23 = arith.negf %22 : vector<8x128xf32>
    %24 = math.exp %23 : vector<8x128xf32>
    %cst_25 = arith.constant 1.000000e+00 : f32
    %25 = vector.broadcast %cst_25 : f32 to vector<8x128xf32>
    %26 = arith.addf %25, %24 : vector<8x128xf32>
    %27 = arith.divf %25, %26 : vector<8x128xf32>
    %28 = math.tanh %22 : vector<8x128xf32>
    %29 = vector.extract_strided_slice %27 {offsets = [0, 0], sizes = [8, 32], strides = [1, 1]} : vector<8x128xf32> to vector<8x32xf32>
    %30 = vector.extract_strided_slice %27 {offsets = [0, 32], sizes = [8, 32], strides = [1, 1]} : vector<8x128xf32> to vector<8x32xf32>
    %31 = vector.extract_strided_slice %28 {offsets = [0, 64], sizes = [8, 32], strides = [1, 1]} : vector<8x128xf32> to vector<8x32xf32>
    %32 = vector.extract_strided_slice %27 {offsets = [0, 96], sizes = [8, 32], strides = [1, 1]} : vector<8x128xf32> to vector<8x32xf32>
    %33 = arith.mulf %30, %19 : vector<8x32xf32>
    %34 = arith.mulf %29, %31 : vector<8x32xf32>
    %35 = arith.addf %33, %34 : vector<8x32xf32>
    %36 = math.tanh %35 : vector<8x32xf32>
    %37 = arith.mulf %32, %36 : vector<8x32xf32>
    %c8 = arith.constant 8 : index
    %c0_26 = arith.constant 0 : index
    %38 = vector.load %arg12[%c8, %c0_26] : memref<64x128xf32, #tpu.memory_space<vmem>>, vector<8x128xf32>
    %cst_27 = arith.constant dense<0.000000e+00> : vector<8x128xf32>
    %39 = tpu.matmul %37, %14, %cst_27 {dimension_numbers = #tpu.dot_dimension_numbers<[1], [0], [0], [1], [0, 0, 1, 1], [], []>, precision = #tpu.contract_precision<fp32>} : vector<8x32xf32>, vector<32x128xf32>, vector<8x128xf32> -> vector<8x128xf32>
    %40 = arith.addf %38, %39 : vector<8x128xf32>
    %41 = arith.negf %40 : vector<8x128xf32>
    %42 = math.exp %41 : vector<8x128xf32>
    %cst_28 = arith.constant 1.000000e+00 : f32
    %43 = vector.broadcast %cst_28 : f32 to vector<8x128xf32>
    %44 = arith.addf %43, %42 : vector<8x128xf32>
    %45 = arith.divf %43, %44 : vector<8x128xf32>
    %46 = math.tanh %40 : vector<8x128xf32>
    %47 = vector.extract_strided_slice %45 {offsets = [0, 0], sizes = [8, 32], strides = [1, 1]} : vector<8x128xf32> to vector<8x32xf32>
    %48 = vector.extract_strided_slice %45 {offsets = [0, 32], sizes = [8, 32], strides = [1, 1]} : vector<8x128xf32> to vector<8x32xf32>
    %49 = vector.extract_strided_slice %46 {offsets = [0, 64], sizes = [8, 32], strides = [1, 1]} : vector<8x128xf32> to vector<8x32xf32>
    %50 = vector.extract_strided_slice %45 {offsets = [0, 96], sizes = [8, 32], strides = [1, 1]} : vector<8x128xf32> to vector<8x32xf32>
    %51 = arith.mulf %48, %35 : vector<8x32xf32>
    %52 = arith.mulf %47, %49 : vector<8x32xf32>
    %53 = arith.addf %51, %52 : vector<8x32xf32>
    %54 = math.tanh %53 : vector<8x32xf32>
    %55 = arith.mulf %50, %54 : vector<8x32xf32>
    %c16 = arith.constant 16 : index
    %c0_29 = arith.constant 0 : index
    %56 = vector.load %arg12[%c16, %c0_29] : memref<64x128xf32, #tpu.memory_space<vmem>>, vector<8x128xf32>
    %cst_30 = arith.constant dense<0.000000e+00> : vector<8x128xf32>
    %57 = tpu.matmul %55, %14, %cst_30 {dimension_numbers = #tpu.dot_dimension_numbers<[1], [0], [0], [1], [0, 0, 1, 1], [], []>, precision = #tpu.contract_precision<fp32>} : vector<8x32xf32>, vector<32x128xf32>, vector<8x128xf32> -> vector<8x128xf32>
    %58 = arith.addf %56, %57 : vector<8x128xf32>
    %59 = arith.negf %58 : vector<8x128xf32>
    %60 = math.exp %59 : vector<8x128xf32>
    %cst_31 = arith.constant 1.000000e+00 : f32
    %61 = vector.broadcast %cst_31 : f32 to vector<8x128xf32>
    %62 = arith.addf %61, %60 : vector<8x128xf32>
    %63 = arith.divf %61, %62 : vector<8x128xf32>
    %64 = math.tanh %58 : vector<8x128xf32>
    %65 = vector.extract_strided_slice %63 {offsets = [0, 0], sizes = [8, 32], strides = [1, 1]} : vector<8x128xf32> to vector<8x32xf32>
    %66 = vector.extract_strided_slice %63 {offsets = [0, 32], sizes = [8, 32], strides = [1, 1]} : vector<8x128xf32> to vector<8x32xf32>
    %67 = vector.extract_strided_slice %64 {offsets = [0, 64], sizes = [8, 32], strides = [1, 1]} : vector<8x128xf32> to vector<8x32xf32>
    %68 = vector.extract_strided_slice %63 {offsets = [0, 96], sizes = [8, 32], strides = [1, 1]} : vector<8x128xf32> to vector<8x32xf32>
    %69 = arith.mulf %66, %53 : vector<8x32xf32>
    %70 = arith.mulf %65, %67 : vector<8x32xf32>
    %71 = arith.addf %69, %70 : vector<8x32xf32>
    %72 = math.tanh %71 : vector<8x32xf32>
    %73 = arith.mulf %68, %72 : vector<8x32xf32>
    %c24 = arith.constant 24 : index
    %c0_32 = arith.constant 0 : index
    %74 = vector.load %arg12[%c24, %c0_32] : memref<64x128xf32, #tpu.memory_space<vmem>>, vector<8x128xf32>
    %cst_33 = arith.constant dense<0.000000e+00> : vector<8x128xf32>
    %75 = tpu.matmul %73, %14, %cst_33 {dimension_numbers = #tpu.dot_dimension_numbers<[1], [0], [0], [1], [0, 0, 1, 1], [], []>, precision = #tpu.contract_precision<fp32>} : vector<8x32xf32>, vector<32x128xf32>, vector<8x128xf32> -> vector<8x128xf32>
    %76 = arith.addf %74, %75 : vector<8x128xf32>
    %77 = arith.negf %76 : vector<8x128xf32>
    %78 = math.exp %77 : vector<8x128xf32>
    %cst_34 = arith.constant 1.000000e+00 : f32
    %79 = vector.broadcast %cst_34 : f32 to vector<8x128xf32>
    %80 = arith.addf %79, %78 : vector<8x128xf32>
    %81 = arith.divf %79, %80 : vector<8x128xf32>
    %82 = math.tanh %76 : vector<8x128xf32>
    %83 = vector.extract_strided_slice %81 {offsets = [0, 0], sizes = [8, 32], strides = [1, 1]} : vector<8x128xf32> to vector<8x32xf32>
    %84 = vector.extract_strided_slice %81 {offsets = [0, 32], sizes = [8, 32], strides = [1, 1]} : vector<8x128xf32> to vector<8x32xf32>
    %85 = vector.extract_strided_slice %82 {offsets = [0, 64], sizes = [8, 32], strides = [1, 1]} : vector<8x128xf32> to vector<8x32xf32>
    %86 = vector.extract_strided_slice %81 {offsets = [0, 96], sizes = [8, 32], strides = [1, 1]} : vector<8x128xf32> to vector<8x32xf32>
    %87 = arith.mulf %84, %71 : vector<8x32xf32>
    %88 = arith.mulf %83, %85 : vector<8x32xf32>
    %89 = arith.addf %87, %88 : vector<8x32xf32>
    %90 = math.tanh %89 : vector<8x32xf32>
    %91 = arith.mulf %86, %90 : vector<8x32xf32>
    %c32 = arith.constant 32 : index
    %c0_35 = arith.constant 0 : index
    %92 = vector.load %arg12[%c32, %c0_35] : memref<64x128xf32, #tpu.memory_space<vmem>>, vector<8x128xf32>
    %cst_36 = arith.constant dense<0.000000e+00> : vector<8x128xf32>
    %93 = tpu.matmul %91, %14, %cst_36 {dimension_numbers = #tpu.dot_dimension_numbers<[1], [0], [0], [1], [0, 0, 1, 1], [], []>, precision = #tpu.contract_precision<fp32>} : vector<8x32xf32>, vector<32x128xf32>, vector<8x128xf32> -> vector<8x128xf32>
    %94 = arith.addf %92, %93 : vector<8x128xf32>
    %95 = arith.negf %94 : vector<8x128xf32>
    %96 = math.exp %95 : vector<8x128xf32>
    %cst_37 = arith.constant 1.000000e+00 : f32
    %97 = vector.broadcast %cst_37 : f32 to vector<8x128xf32>
    %98 = arith.addf %97, %96 : vector<8x128xf32>
    %99 = arith.divf %97, %98 : vector<8x128xf32>
    %100 = math.tanh %94 : vector<8x128xf32>
    %101 = vector.extract_strided_slice %99 {offsets = [0, 0], sizes = [8, 32], strides = [1, 1]} : vector<8x128xf32> to vector<8x32xf32>
    %102 = vector.extract_strided_slice %99 {offsets = [0, 32], sizes = [8, 32], strides = [1, 1]} : vector<8x128xf32> to vector<8x32xf32>
    %103 = vector.extract_strided_slice %100 {offsets = [0, 64], sizes = [8, 32], strides = [1, 1]} : vector<8x128xf32> to vector<8x32xf32>
    %104 = vector.extract_strided_slice %99 {offsets = [0, 96], sizes = [8, 32], strides = [1, 1]} : vector<8x128xf32> to vector<8x32xf32>
    %105 = arith.mulf %102, %89 : vector<8x32xf32>
    %106 = arith.mulf %101, %103 : vector<8x32xf32>
    %107 = arith.addf %105, %106 : vector<8x32xf32>
    %108 = math.tanh %107 : vector<8x32xf32>
    %109 = arith.mulf %104, %108 : vector<8x32xf32>
    %c40 = arith.constant 40 : index
    %c0_38 = arith.constant 0 : index
    %110 = vector.load %arg12[%c40, %c0_38] : memref<64x128xf32, #tpu.memory_space<vmem>>, vector<8x128xf32>
    %cst_39 = arith.constant dense<0.000000e+00> : vector<8x128xf32>
    %111 = tpu.matmul %109, %14, %cst_39 {dimension_numbers = #tpu.dot_dimension_numbers<[1], [0], [0], [1], [0, 0, 1, 1], [], []>, precision = #tpu.contract_precision<fp32>} : vector<8x32xf32>, vector<32x128xf32>, vector<8x128xf32> -> vector<8x128xf32>
    %112 = arith.addf %110, %111 : vector<8x128xf32>
    %113 = arith.negf %112 : vector<8x128xf32>
    %114 = math.exp %113 : vector<8x128xf32>
    %cst_40 = arith.constant 1.000000e+00 : f32
    %115 = vector.broadcast %cst_40 : f32 to vector<8x128xf32>
    %116 = arith.addf %115, %114 : vector<8x128xf32>
    %117 = arith.divf %115, %116 : vector<8x128xf32>
    %118 = math.tanh %112 : vector<8x128xf32>
    %119 = vector.extract_strided_slice %117 {offsets = [0, 0], sizes = [8, 32], strides = [1, 1]} : vector<8x128xf32> to vector<8x32xf32>
    %120 = vector.extract_strided_slice %117 {offsets = [0, 32], sizes = [8, 32], strides = [1, 1]} : vector<8x128xf32> to vector<8x32xf32>
    %121 = vector.extract_strided_slice %118 {offsets = [0, 64], sizes = [8, 32], strides = [1, 1]} : vector<8x128xf32> to vector<8x32xf32>
    %122 = vector.extract_strided_slice %117 {offsets = [0, 96], sizes = [8, 32], strides = [1, 1]} : vector<8x128xf32> to vector<8x32xf32>
    %123 = arith.mulf %120, %107 : vector<8x32xf32>
    %124 = arith.mulf %119, %121 : vector<8x32xf32>
    %125 = arith.addf %123, %124 : vector<8x32xf32>
    %126 = math.tanh %125 : vector<8x32xf32>
    %127 = arith.mulf %122, %126 : vector<8x32xf32>
    %c48 = arith.constant 48 : index
    %c0_41 = arith.constant 0 : index
    %128 = vector.load %arg12[%c48, %c0_41] : memref<64x128xf32, #tpu.memory_space<vmem>>, vector<8x128xf32>
    %cst_42 = arith.constant dense<0.000000e+00> : vector<8x128xf32>
    %129 = tpu.matmul %127, %14, %cst_42 {dimension_numbers = #tpu.dot_dimension_numbers<[1], [0], [0], [1], [0, 0, 1, 1], [], []>, precision = #tpu.contract_precision<fp32>} : vector<8x32xf32>, vector<32x128xf32>, vector<8x128xf32> -> vector<8x128xf32>
    %130 = arith.addf %128, %129 : vector<8x128xf32>
    %131 = arith.negf %130 : vector<8x128xf32>
    %132 = math.exp %131 : vector<8x128xf32>
    %cst_43 = arith.constant 1.000000e+00 : f32
    %133 = vector.broadcast %cst_43 : f32 to vector<8x128xf32>
    %134 = arith.addf %133, %132 : vector<8x128xf32>
    %135 = arith.divf %133, %134 : vector<8x128xf32>
    %136 = math.tanh %130 : vector<8x128xf32>
    %137 = vector.extract_strided_slice %135 {offsets = [0, 0], sizes = [8, 32], strides = [1, 1]} : vector<8x128xf32> to vector<8x32xf32>
    %138 = vector.extract_strided_slice %135 {offsets = [0, 32], sizes = [8, 32], strides = [1, 1]} : vector<8x128xf32> to vector<8x32xf32>
    %139 = vector.extract_strided_slice %136 {offsets = [0, 64], sizes = [8, 32], strides = [1, 1]} : vector<8x128xf32> to vector<8x32xf32>
    %140 = vector.extract_strided_slice %135 {offsets = [0, 96], sizes = [8, 32], strides = [1, 1]} : vector<8x128xf32> to vector<8x32xf32>
    %141 = arith.mulf %138, %125 : vector<8x32xf32>
    %142 = arith.mulf %137, %139 : vector<8x32xf32>
    %143 = arith.addf %141, %142 : vector<8x32xf32>
    %144 = math.tanh %143 : vector<8x32xf32>
    %145 = arith.mulf %140, %144 : vector<8x32xf32>
    %c56 = arith.constant 56 : index
    %c0_44 = arith.constant 0 : index
    %146 = vector.load %arg12[%c56, %c0_44] : memref<64x128xf32, #tpu.memory_space<vmem>>, vector<8x128xf32>
    %cst_45 = arith.constant dense<0.000000e+00> : vector<8x128xf32>
    %147 = tpu.matmul %145, %14, %cst_45 {dimension_numbers = #tpu.dot_dimension_numbers<[1], [0], [0], [1], [0, 0, 1, 1], [], []>, precision = #tpu.contract_precision<fp32>} : vector<8x32xf32>, vector<32x128xf32>, vector<8x128xf32> -> vector<8x128xf32>
    %148 = arith.addf %146, %147 : vector<8x128xf32>
    %149 = arith.negf %148 : vector<8x128xf32>
    %150 = math.exp %149 : vector<8x128xf32>
    %cst_46 = arith.constant 1.000000e+00 : f32
    %151 = vector.broadcast %cst_46 : f32 to vector<8x128xf32>
    %152 = arith.addf %151, %150 : vector<8x128xf32>
    %153 = arith.divf %151, %152 : vector<8x128xf32>
    %154 = math.tanh %148 : vector<8x128xf32>
    %155 = vector.extract_strided_slice %153 {offsets = [0, 0], sizes = [8, 32], strides = [1, 1]} : vector<8x128xf32> to vector<8x32xf32>
    %156 = vector.extract_strided_slice %153 {offsets = [0, 32], sizes = [8, 32], strides = [1, 1]} : vector<8x128xf32> to vector<8x32xf32>
    %157 = vector.extract_strided_slice %154 {offsets = [0, 64], sizes = [8, 32], strides = [1, 1]} : vector<8x128xf32> to vector<8x32xf32>
    %158 = vector.extract_strided_slice %153 {offsets = [0, 96], sizes = [8, 32], strides = [1, 1]} : vector<8x128xf32> to vector<8x32xf32>
    %159 = arith.mulf %156, %143 : vector<8x32xf32>
    %160 = arith.mulf %155, %157 : vector<8x32xf32>
    %161 = arith.addf %159, %160 : vector<8x32xf32>
    %162 = math.tanh %161 : vector<8x32xf32>
    %163 = arith.mulf %158, %162 : vector<8x32xf32>
    %cst_47 = arith.constant dense<0.000000e+00> : vector<8x256xf32>
    %164 = tpu.matmul %163, %15, %cst_47 {dimension_numbers = #tpu.dot_dimension_numbers<[1], [0], [0], [1], [0, 0, 1, 1], [], []>, precision = #tpu.contract_precision<fp32>} : vector<8x32xf32>, vector<32x256xf32>, vector<8x256xf32> -> vector<8x256xf32>
    %165 = vector.extract_strided_slice %164 {offsets = [0, 0], sizes = [8, 128], strides = [1, 1]} : vector<8x256xf32> to vector<8x128xf32>
    %166 = vector.broadcast %16 : vector<1x128xf32> to vector<8x128xf32>
    %167 = arith.addf %165, %166 : vector<8x128xf32>
    %168 = arith.negf %167 : vector<8x128xf32>
    %169 = math.exp %168 : vector<8x128xf32>
    %cst_48 = arith.constant 1.000000e+00 : f32
    %170 = vector.broadcast %cst_48 : f32 to vector<8x128xf32>
    %171 = arith.addf %170, %169 : vector<8x128xf32>
    %172 = arith.divf %170, %171 : vector<8x128xf32>
    %173 = math.tanh %167 : vector<8x128xf32>
    %174 = vector.extract_strided_slice %172 {offsets = [0, 0], sizes = [8, 32], strides = [1, 1]} : vector<8x128xf32> to vector<8x32xf32>
    %175 = vector.extract_strided_slice %172 {offsets = [0, 32], sizes = [8, 32], strides = [1, 1]} : vector<8x128xf32> to vector<8x32xf32>
    %176 = vector.extract_strided_slice %173 {offsets = [0, 64], sizes = [8, 32], strides = [1, 1]} : vector<8x128xf32> to vector<8x32xf32>
    %177 = vector.extract_strided_slice %172 {offsets = [0, 96], sizes = [8, 32], strides = [1, 1]} : vector<8x128xf32> to vector<8x32xf32>
    %178 = arith.mulf %175, %161 : vector<8x32xf32>
    %179 = arith.mulf %174, %176 : vector<8x32xf32>
    %180 = arith.addf %178, %179 : vector<8x32xf32>
    %181 = math.tanh %180 : vector<8x32xf32>
    %182 = arith.mulf %177, %181 : vector<8x32xf32>
    %c0_49 = arith.constant 0 : index
    %c0_50 = arith.constant 0 : index
    %183 = vector.load %arg14[%c0_49, %c0_50] : memref<64x32xf32, #tpu.memory_space<vmem>>, vector<8x32xf32>
    tpu.vector_store %arg14[%c0_49, %c0_50], %182 {strides = array<i32>} : memref<64x32xf32, #tpu.memory_space<vmem>>, vector<8x32xf32>,
    %cst_51 = arith.constant dense<0.000000e+00> : vector<8x256xf32>
    %184 = tpu.matmul %182, %15, %cst_51 {dimension_numbers = #tpu.dot_dimension_numbers<[1], [0], [0], [1], [0, 0, 1, 1], [], []>, precision = #tpu.contract_precision<fp32>} : vector<8x32xf32>, vector<32x256xf32>, vector<8x256xf32> -> vector<8x256xf32>
    %c0_52 = arith.constant 0 : index
    %185 = memref.load %arg1[%c0_52] : memref<8xi32, #tpu.memory_space<smem>>
    %186 = vector.broadcast %185 : i32 to vector<8x128xi32>
    %c0_i32 = arith.constant 0 : i32
    %187 = vector.broadcast %c0_i32 : i32 to vector<8x128xi32>
    %188 = arith.cmpi ne, %186, %187 : vector<8x128xi32>
    %189 = vector.extract_strided_slice %184 {offsets = [0, 0], sizes = [8, 128], strides = [1, 1]} : vector<8x256xf32> to vector<8x128xf32>
    %c0_53 = arith.constant 0 : index
    %c0_54 = arith.constant 0 : index
    %190 = vector.load %arg13[%c0_53, %c0_54] : memref<64x128xf32, #tpu.memory_space<vmem>>, vector<8x128xf32>
    %191 = arith.addf %189, %190 : vector<8x128xf32>
    %192 = vector.extract_strided_slice %184 {offsets = [0, 128], sizes = [8, 128], strides = [1, 1]} : vector<8x256xf32> to vector<8x128xf32>
    %193 = vector.broadcast %17 : vector<1x128xf32> to vector<8x128xf32>
    %194 = arith.addf %192, %193 : vector<8x128xf32>
    %195 = arith.select %188, %191, %194 : vector<8x128xi1>, vector<8x128xf32>
    %196 = arith.negf %195 : vector<8x128xf32>
    %197 = math.exp %196 : vector<8x128xf32>
    %cst_55 = arith.constant 1.000000e+00 : f32
    %198 = vector.broadcast %cst_55 : f32 to vector<8x128xf32>
    %199 = arith.addf %198, %197 : vector<8x128xf32>
    %200 = arith.divf %198, %199 : vector<8x128xf32>
    %201 = math.tanh %195 : vector<8x128xf32>
    %202 = vector.extract_strided_slice %200 {offsets = [0, 0], sizes = [8, 32], strides = [1, 1]} : vector<8x128xf32> to vector<8x32xf32>
    %203 = vector.extract_strided_slice %200 {offsets = [0, 32], sizes = [8, 32], strides = [1, 1]} : vector<8x128xf32> to vector<8x32xf32>
    %204 = vector.extract_strided_slice %201 {offsets = [0, 64], sizes = [8, 32], strides = [1, 1]} : vector<8x128xf32> to vector<8x32xf32>
    %205 = vector.extract_strided_slice %200 {offsets = [0, 96], sizes = [8, 32], strides = [1, 1]} : vector<8x128xf32> to vector<8x32xf32>
    %206 = arith.mulf %203, %180 : vector<8x32xf32>
    %207 = arith.mulf %202, %204 : vector<8x32xf32>
    %208 = arith.addf %206, %207 : vector<8x32xf32>
    %209 = math.tanh %208 : vector<8x32xf32>
    %210 = arith.mulf %205, %209 : vector<8x32xf32>
    %c8_56 = arith.constant 8 : index
    %c0_57 = arith.constant 0 : index
    %211 = vector.load %arg14[%c8_56, %c0_57] : memref<64x32xf32, #tpu.memory_space<vmem>>, vector<8x32xf32>
    tpu.vector_store %arg14[%c8_56, %c0_57], %210 {strides = array<i32>} : memref<64x32xf32, #tpu.memory_space<vmem>>, vector<8x32xf32>,
    %cst_58 = arith.constant dense<0.000000e+00> : vector<8x256xf32>
    %212 = tpu.matmul %210, %15, %cst_58 {dimension_numbers = #tpu.dot_dimension_numbers<[1], [0], [0], [1], [0, 0, 1, 1], [], []>, precision = #tpu.contract_precision<fp32>} : vector<8x32xf32>, vector<32x256xf32>, vector<8x256xf32> -> vector<8x256xf32>
    %c1 = arith.constant 1 : index
    %213 = memref.load %arg1[%c1] : memref<8xi32, #tpu.memory_space<smem>>
    %214 = vector.broadcast %213 : i32 to vector<8x128xi32>
    %c0_i32_59 = arith.constant 0 : i32
    %215 = vector.broadcast %c0_i32_59 : i32 to vector<8x128xi32>
    %216 = arith.cmpi ne, %214, %215 : vector<8x128xi32>
    %217 = vector.extract_strided_slice %212 {offsets = [0, 0], sizes = [8, 128], strides = [1, 1]} : vector<8x256xf32> to vector<8x128xf32>
    %c8_60 = arith.constant 8 : index
    %c0_61 = arith.constant 0 : index
    %218 = vector.load %arg13[%c8_60, %c0_61] : memref<64x128xf32, #tpu.memory_space<vmem>>, vector<8x128xf32>
    %219 = arith.addf %217, %218 : vector<8x128xf32>
    %220 = vector.extract_strided_slice %212 {offsets = [0, 128], sizes = [8, 128], strides = [1, 1]} : vector<8x256xf32> to vector<8x128xf32>
    %221 = vector.broadcast %17 : vector<1x128xf32> to vector<8x128xf32>
    %222 = arith.addf %220, %221 : vector<8x128xf32>
    %223 = arith.select %216, %219, %222 : vector<8x128xi1>, vector<8x128xf32>
    %224 = arith.negf %223 : vector<8x128xf32>
    %225 = math.exp %224 : vector<8x128xf32>
    %cst_62 = arith.constant 1.000000e+00 : f32
    %226 = vector.broadcast %cst_62 : f32 to vector<8x128xf32>
    %227 = arith.addf %226, %225 : vector<8x128xf32>
    %228 = arith.divf %226, %227 : vector<8x128xf32>
    %229 = math.tanh %223 : vector<8x128xf32>
    %230 = vector.extract_strided_slice %228 {offsets = [0, 0], sizes = [8, 32], strides = [1, 1]} : vector<8x128xf32> to vector<8x32xf32>
    %231 = vector.extract_strided_slice %228 {offsets = [0, 32], sizes = [8, 32], strides = [1, 1]} : vector<8x128xf32> to vector<8x32xf32>
    %232 = vector.extract_strided_slice %229 {offsets = [0, 64], sizes = [8, 32], strides = [1, 1]} : vector<8x128xf32> to vector<8x32xf32>
    %233 = vector.extract_strided_slice %228 {offsets = [0, 96], sizes = [8, 32], strides = [1, 1]} : vector<8x128xf32> to vector<8x32xf32>
    %234 = arith.mulf %231, %208 : vector<8x32xf32>
    %235 = arith.mulf %230, %232 : vector<8x32xf32>
    %236 = arith.addf %234, %235 : vector<8x32xf32>
    %237 = math.tanh %236 : vector<8x32xf32>
    %238 = arith.mulf %233, %237 : vector<8x32xf32>
    %c16_63 = arith.constant 16 : index
    %c0_64 = arith.constant 0 : index
    %239 = vector.load %arg14[%c16_63, %c0_64] : memref<64x32xf32, #tpu.memory_space<vmem>>, vector<8x32xf32>
    tpu.vector_store %arg14[%c16_63, %c0_64], %238 {strides = array<i32>} : memref<64x32xf32, #tpu.memory_space<vmem>>, vector<8x32xf32>,
    %cst_65 = arith.constant dense<0.000000e+00> : vector<8x256xf32>
    %240 = tpu.matmul %238, %15, %cst_65 {dimension_numbers = #tpu.dot_dimension_numbers<[1], [0], [0], [1], [0, 0, 1, 1], [], []>, precision = #tpu.contract_precision<fp32>} : vector<8x32xf32>, vector<32x256xf32>, vector<8x256xf32> -> vector<8x256xf32>
    %c2 = arith.constant 2 : index
    %241 = memref.load %arg1[%c2] : memref<8xi32, #tpu.memory_space<smem>>
    %242 = vector.broadcast %241 : i32 to vector<8x128xi32>
    %c0_i32_66 = arith.constant 0 : i32
    %243 = vector.broadcast %c0_i32_66 : i32 to vector<8x128xi32>
    %244 = arith.cmpi ne, %242, %243 : vector<8x128xi32>
    %245 = vector.extract_strided_slice %240 {offsets = [0, 0], sizes = [8, 128], strides = [1, 1]} : vector<8x256xf32> to vector<8x128xf32>
    %c16_67 = arith.constant 16 : index
    %c0_68 = arith.constant 0 : index
    %246 = vector.load %arg13[%c16_67, %c0_68] : memref<64x128xf32, #tpu.memory_space<vmem>>, vector<8x128xf32>
    %247 = arith.addf %245, %246 : vector<8x128xf32>
    %248 = vector.extract_strided_slice %240 {offsets = [0, 128], sizes = [8, 128], strides = [1, 1]} : vector<8x256xf32> to vector<8x128xf32>
    %249 = vector.broadcast %17 : vector<1x128xf32> to vector<8x128xf32>
    %250 = arith.addf %248, %249 : vector<8x128xf32>
    %251 = arith.select %244, %247, %250 : vector<8x128xi1>, vector<8x128xf32>
    %252 = arith.negf %251 : vector<8x128xf32>
    %253 = math.exp %252 : vector<8x128xf32>
    %cst_69 = arith.constant 1.000000e+00 : f32
    %254 = vector.broadcast %cst_69 : f32 to vector<8x128xf32>
    %255 = arith.addf %254, %253 : vector<8x128xf32>
    %256 = arith.divf %254, %255 : vector<8x128xf32>
    %257 = math.tanh %251 : vector<8x128xf32>
    %258 = vector.extract_strided_slice %256 {offsets = [0, 0], sizes = [8, 32], strides = [1, 1]} : vector<8x128xf32> to vector<8x32xf32>
    %259 = vector.extract_strided_slice %256 {offsets = [0, 32], sizes = [8, 32], strides = [1, 1]} : vector<8x128xf32> to vector<8x32xf32>
    %260 = vector.extract_strided_slice %257 {offsets = [0, 64], sizes = [8, 32], strides = [1, 1]} : vector<8x128xf32> to vector<8x32xf32>
    %261 = vector.extract_strided_slice %256 {offsets = [0, 96], sizes = [8, 32], strides = [1, 1]} : vector<8x128xf32> to vector<8x32xf32>
    %262 = arith.mulf %259, %236 : vector<8x32xf32>
    %263 = arith.mulf %258, %260 : vector<8x32xf32>
    %264 = arith.addf %262, %263 : vector<8x32xf32>
    %265 = math.tanh %264 : vector<8x32xf32>
    %266 = arith.mulf %261, %265 : vector<8x32xf32>
    %c24_70 = arith.constant 24 : index
    %c0_71 = arith.constant 0 : index
    %267 = vector.load %arg14[%c24_70, %c0_71] : memref<64x32xf32, #tpu.memory_space<vmem>>, vector<8x32xf32>
    tpu.vector_store %arg14[%c24_70, %c0_71], %266 {strides = array<i32>} : memref<64x32xf32, #tpu.memory_space<vmem>>, vector<8x32xf32>,
    %cst_72 = arith.constant dense<0.000000e+00> : vector<8x256xf32>
    %268 = tpu.matmul %266, %15, %cst_72 {dimension_numbers = #tpu.dot_dimension_numbers<[1], [0], [0], [1], [0, 0, 1, 1], [], []>, precision = #tpu.contract_precision<fp32>} : vector<8x32xf32>, vector<32x256xf32>, vector<8x256xf32> -> vector<8x256xf32>
    %c3 = arith.constant 3 : index
    %269 = memref.load %arg1[%c3] : memref<8xi32, #tpu.memory_space<smem>>
    %270 = vector.broadcast %269 : i32 to vector<8x128xi32>
    %c0_i32_73 = arith.constant 0 : i32
    %271 = vector.broadcast %c0_i32_73 : i32 to vector<8x128xi32>
    %272 = arith.cmpi ne, %270, %271 : vector<8x128xi32>
    %273 = vector.extract_strided_slice %268 {offsets = [0, 0], sizes = [8, 128], strides = [1, 1]} : vector<8x256xf32> to vector<8x128xf32>
    %c24_74 = arith.constant 24 : index
    %c0_75 = arith.constant 0 : index
    %274 = vector.load %arg13[%c24_74, %c0_75] : memref<64x128xf32, #tpu.memory_space<vmem>>, vector<8x128xf32>
    %275 = arith.addf %273, %274 : vector<8x128xf32>
    %276 = vector.extract_strided_slice %268 {offsets = [0, 128], sizes = [8, 128], strides = [1, 1]} : vector<8x256xf32> to vector<8x128xf32>
    %277 = vector.broadcast %17 : vector<1x128xf32> to vector<8x128xf32>
    %278 = arith.addf %276, %277 : vector<8x128xf32>
    %279 = arith.select %272, %275, %278 : vector<8x128xi1>, vector<8x128xf32>
    %280 = arith.negf %279 : vector<8x128xf32>
    %281 = math.exp %280 : vector<8x128xf32>
    %cst_76 = arith.constant 1.000000e+00 : f32
    %282 = vector.broadcast %cst_76 : f32 to vector<8x128xf32>
    %283 = arith.addf %282, %281 : vector<8x128xf32>
    %284 = arith.divf %282, %283 : vector<8x128xf32>
    %285 = math.tanh %279 : vector<8x128xf32>
    %286 = vector.extract_strided_slice %284 {offsets = [0, 0], sizes = [8, 32], strides = [1, 1]} : vector<8x128xf32> to vector<8x32xf32>
    %287 = vector.extract_strided_slice %284 {offsets = [0, 32], sizes = [8, 32], strides = [1, 1]} : vector<8x128xf32> to vector<8x32xf32>
    %288 = vector.extract_strided_slice %285 {offsets = [0, 64], sizes = [8, 32], strides = [1, 1]} : vector<8x128xf32> to vector<8x32xf32>
    %289 = vector.extract_strided_slice %284 {offsets = [0, 96], sizes = [8, 32], strides = [1, 1]} : vector<8x128xf32> to vector<8x32xf32>
    %290 = arith.mulf %287, %264 : vector<8x32xf32>
    %291 = arith.mulf %286, %288 : vector<8x32xf32>
    %292 = arith.addf %290, %291 : vector<8x32xf32>
    %293 = math.tanh %292 : vector<8x32xf32>
    %294 = arith.mulf %289, %293 : vector<8x32xf32>
    %c32_77 = arith.constant 32 : index
    %c0_78 = arith.constant 0 : index
    %295 = vector.load %arg14[%c32_77, %c0_78] : memref<64x32xf32, #tpu.memory_space<vmem>>, vector<8x32xf32>
    tpu.vector_store %arg14[%c32_77, %c0_78], %294 {strides = array<i32>} : memref<64x32xf32, #tpu.memory_space<vmem>>, vector<8x32xf32>,
    %cst_79 = arith.constant dense<0.000000e+00> : vector<8x256xf32>
    %296 = tpu.matmul %294, %15, %cst_79 {dimension_numbers = #tpu.dot_dimension_numbers<[1], [0], [0], [1], [0, 0, 1, 1], [], []>, precision = #tpu.contract_precision<fp32>} : vector<8x32xf32>, vector<32x256xf32>, vector<8x256xf32> -> vector<8x256xf32>
    %c4 = arith.constant 4 : index
    %297 = memref.load %arg1[%c4] : memref<8xi32, #tpu.memory_space<smem>>
    %298 = vector.broadcast %297 : i32 to vector<8x128xi32>
    %c0_i32_80 = arith.constant 0 : i32
    %299 = vector.broadcast %c0_i32_80 : i32 to vector<8x128xi32>
    %300 = arith.cmpi ne, %298, %299 : vector<8x128xi32>
    %301 = vector.extract_strided_slice %296 {offsets = [0, 0], sizes = [8, 128], strides = [1, 1]} : vector<8x256xf32> to vector<8x128xf32>
    %c32_81 = arith.constant 32 : index
    %c0_82 = arith.constant 0 : index
    %302 = vector.load %arg13[%c32_81, %c0_82] : memref<64x128xf32, #tpu.memory_space<vmem>>, vector<8x128xf32>
    %303 = arith.addf %301, %302 : vector<8x128xf32>
    %304 = vector.extract_strided_slice %296 {offsets = [0, 128], sizes = [8, 128], strides = [1, 1]} : vector<8x256xf32> to vector<8x128xf32>
    %305 = vector.broadcast %17 : vector<1x128xf32> to vector<8x128xf32>
    %306 = arith.addf %304, %305 : vector<8x128xf32>
    %307 = arith.select %300, %303, %306 : vector<8x128xi1>, vector<8x128xf32>
    %308 = arith.negf %307 : vector<8x128xf32>
    %309 = math.exp %308 : vector<8x128xf32>
    %cst_83 = arith.constant 1.000000e+00 : f32
    %310 = vector.broadcast %cst_83 : f32 to vector<8x128xf32>
    %311 = arith.addf %310, %309 : vector<8x128xf32>
    %312 = arith.divf %310, %311 : vector<8x128xf32>
    %313 = math.tanh %307 : vector<8x128xf32>
    %314 = vector.extract_strided_slice %312 {offsets = [0, 0], sizes = [8, 32], strides = [1, 1]} : vector<8x128xf32> to vector<8x32xf32>
    %315 = vector.extract_strided_slice %312 {offsets = [0, 32], sizes = [8, 32], strides = [1, 1]} : vector<8x128xf32> to vector<8x32xf32>
    %316 = vector.extract_strided_slice %313 {offsets = [0, 64], sizes = [8, 32], strides = [1, 1]} : vector<8x128xf32> to vector<8x32xf32>
    %317 = vector.extract_strided_slice %312 {offsets = [0, 96], sizes = [8, 32], strides = [1, 1]} : vector<8x128xf32> to vector<8x32xf32>
    %318 = arith.mulf %315, %292 : vector<8x32xf32>
    %319 = arith.mulf %314, %316 : vector<8x32xf32>
    %320 = arith.addf %318, %319 : vector<8x32xf32>
    %321 = math.tanh %320 : vector<8x32xf32>
    %322 = arith.mulf %317, %321 : vector<8x32xf32>
    %c40_84 = arith.constant 40 : index
    %c0_85 = arith.constant 0 : index
    %323 = vector.load %arg14[%c40_84, %c0_85] : memref<64x32xf32, #tpu.memory_space<vmem>>, vector<8x32xf32>
    tpu.vector_store %arg14[%c40_84, %c0_85], %322 {strides = array<i32>} : memref<64x32xf32, #tpu.memory_space<vmem>>, vector<8x32xf32>,
    %cst_86 = arith.constant dense<0.000000e+00> : vector<8x256xf32>
    %324 = tpu.matmul %322, %15, %cst_86 {dimension_numbers = #tpu.dot_dimension_numbers<[1], [0], [0], [1], [0, 0, 1, 1], [], []>, precision = #tpu.contract_precision<fp32>} : vector<8x32xf32>, vector<32x256xf32>, vector<8x256xf32> -> vector<8x256xf32>
    %c5 = arith.constant 5 : index
    %325 = memref.load %arg1[%c5] : memref<8xi32, #tpu.memory_space<smem>>
    %326 = vector.broadcast %325 : i32 to vector<8x128xi32>
    %c0_i32_87 = arith.constant 0 : i32
    %327 = vector.broadcast %c0_i32_87 : i32 to vector<8x128xi32>
    %328 = arith.cmpi ne, %326, %327 : vector<8x128xi32>
    %329 = vector.extract_strided_slice %324 {offsets = [0, 0], sizes = [8, 128], strides = [1, 1]} : vector<8x256xf32> to vector<8x128xf32>
    %c40_88 = arith.constant 40 : index
    %c0_89 = arith.constant 0 : index
    %330 = vector.load %arg13[%c40_88, %c0_89] : memref<64x128xf32, #tpu.memory_space<vmem>>, vector<8x128xf32>
    %331 = arith.addf %329, %330 : vector<8x128xf32>
    %332 = vector.extract_strided_slice %324 {offsets = [0, 128], sizes = [8, 128], strides = [1, 1]} : vector<8x256xf32> to vector<8x128xf32>
    %333 = vector.broadcast %17 : vector<1x128xf32> to vector<8x128xf32>
    %334 = arith.addf %332, %333 : vector<8x128xf32>
    %335 = arith.select %328, %331, %334 : vector<8x128xi1>, vector<8x128xf32>
    %336 = arith.negf %335 : vector<8x128xf32>
    %337 = math.exp %336 : vector<8x128xf32>
    %cst_90 = arith.constant 1.000000e+00 : f32
    %338 = vector.broadcast %cst_90 : f32 to vector<8x128xf32>
    %339 = arith.addf %338, %337 : vector<8x128xf32>
    %340 = arith.divf %338, %339 : vector<8x128xf32>
    %341 = math.tanh %335 : vector<8x128xf32>
    %342 = vector.extract_strided_slice %340 {offsets = [0, 0], sizes = [8, 32], strides = [1, 1]} : vector<8x128xf32> to vector<8x32xf32>
    %343 = vector.extract_strided_slice %340 {offsets = [0, 32], sizes = [8, 32], strides = [1, 1]} : vector<8x128xf32> to vector<8x32xf32>
    %344 = vector.extract_strided_slice %341 {offsets = [0, 64], sizes = [8, 32], strides = [1, 1]} : vector<8x128xf32> to vector<8x32xf32>
    %345 = vector.extract_strided_slice %340 {offsets = [0, 96], sizes = [8, 32], strides = [1, 1]} : vector<8x128xf32> to vector<8x32xf32>
    %346 = arith.mulf %343, %320 : vector<8x32xf32>
    %347 = arith.mulf %342, %344 : vector<8x32xf32>
    %348 = arith.addf %346, %347 : vector<8x32xf32>
    %349 = math.tanh %348 : vector<8x32xf32>
    %350 = arith.mulf %345, %349 : vector<8x32xf32>
    %c48_91 = arith.constant 48 : index
    %c0_92 = arith.constant 0 : index
    %351 = vector.load %arg14[%c48_91, %c0_92] : memref<64x32xf32, #tpu.memory_space<vmem>>, vector<8x32xf32>
    tpu.vector_store %arg14[%c48_91, %c0_92], %350 {strides = array<i32>} : memref<64x32xf32, #tpu.memory_space<vmem>>, vector<8x32xf32>,
    %cst_93 = arith.constant dense<0.000000e+00> : vector<8x256xf32>
    %352 = tpu.matmul %350, %15, %cst_93 {dimension_numbers = #tpu.dot_dimension_numbers<[1], [0], [0], [1], [0, 0, 1, 1], [], []>, precision = #tpu.contract_precision<fp32>} : vector<8x32xf32>, vector<32x256xf32>, vector<8x256xf32> -> vector<8x256xf32>
    %c6 = arith.constant 6 : index
    %353 = memref.load %arg1[%c6] : memref<8xi32, #tpu.memory_space<smem>>
    %354 = vector.broadcast %353 : i32 to vector<8x128xi32>
    %c0_i32_94 = arith.constant 0 : i32
    %355 = vector.broadcast %c0_i32_94 : i32 to vector<8x128xi32>
    %356 = arith.cmpi ne, %354, %355 : vector<8x128xi32>
    %357 = vector.extract_strided_slice %352 {offsets = [0, 0], sizes = [8, 128], strides = [1, 1]} : vector<8x256xf32> to vector<8x128xf32>
    %c48_95 = arith.constant 48 : index
    %c0_96 = arith.constant 0 : index
    %358 = vector.load %arg13[%c48_95, %c0_96] : memref<64x128xf32, #tpu.memory_space<vmem>>, vector<8x128xf32>
    %359 = arith.addf %357, %358 : vector<8x128xf32>
    %360 = vector.extract_strided_slice %352 {offsets = [0, 128], sizes = [8, 128], strides = [1, 1]} : vector<8x256xf32> to vector<8x128xf32>
    %361 = vector.broadcast %17 : vector<1x128xf32> to vector<8x128xf32>
    %362 = arith.addf %360, %361 : vector<8x128xf32>
    %363 = arith.select %356, %359, %362 : vector<8x128xi1>, vector<8x128xf32>
    %364 = arith.negf %363 : vector<8x128xf32>
    %365 = math.exp %364 : vector<8x128xf32>
    %cst_97 = arith.constant 1.000000e+00 : f32
    %366 = vector.broadcast %cst_97 : f32 to vector<8x128xf32>
    %367 = arith.addf %366, %365 : vector<8x128xf32>
    %368 = arith.divf %366, %367 : vector<8x128xf32>
    %369 = math.tanh %363 : vector<8x128xf32>
    %370 = vector.extract_strided_slice %368 {offsets = [0, 0], sizes = [8, 32], strides = [1, 1]} : vector<8x128xf32> to vector<8x32xf32>
    %371 = vector.extract_strided_slice %368 {offsets = [0, 32], sizes = [8, 32], strides = [1, 1]} : vector<8x128xf32> to vector<8x32xf32>
    %372 = vector.extract_strided_slice %369 {offsets = [0, 64], sizes = [8, 32], strides = [1, 1]} : vector<8x128xf32> to vector<8x32xf32>
    %373 = vector.extract_strided_slice %368 {offsets = [0, 96], sizes = [8, 32], strides = [1, 1]} : vector<8x128xf32> to vector<8x32xf32>
    %374 = arith.mulf %371, %348 : vector<8x32xf32>
    %375 = arith.mulf %370, %372 : vector<8x32xf32>
    %376 = arith.addf %374, %375 : vector<8x32xf32>
    %377 = math.tanh %376 : vector<8x32xf32>
    %378 = arith.mulf %373, %377 : vector<8x32xf32>
    %c56_98 = arith.constant 56 : index
    %c0_99 = arith.constant 0 : index
    %379 = vector.load %arg14[%c56_98, %c0_99] : memref<64x32xf32, #tpu.memory_space<vmem>>, vector<8x32xf32>
    tpu.vector_store %arg14[%c56_98, %c0_99], %378 {strides = array<i32>} : memref<64x32xf32, #tpu.memory_space<vmem>>, vector<8x32xf32>,
    %c0_100 = arith.constant 0 : index
    %c0_101 = arith.constant 0 : index
    %380 = vector.load %arg14[%c0_100, %c0_101] : memref<64x32xf32, #tpu.memory_space<vmem>>, vector<64x32xf32>
    %c0_102 = arith.constant 0 : index
    %c0_103 = arith.constant 0 : index
    %381 = vector.load %arg9[%c0_102, %c0_103] : memref<32x8xf32, #tpu.memory_space<vmem>>, vector<32x8xf32>
    %cst_104 = arith.constant dense<0.000000e+00> : vector<64x8xf32>
    %382 = tpu.matmul %380, %381, %cst_104 {dimension_numbers = #tpu.dot_dimension_numbers<[1], [0], [0], [1], [0, 0, 1, 1], [], []>, precision = #tpu.contract_precision<fp32>} : vector<64x32xf32>, vector<32x8xf32>, vector<64x8xf32> -> vector<64x8xf32>
    %c0_105 = arith.constant 0 : index
    %c0_106 = arith.constant 0 : index
    %383 = vector.load %arg10[%c0_105, %c0_106] : memref<1x8xf32, #tpu.memory_space<vmem>>, vector<1x8xf32>
    %384 = vector.broadcast %383 : vector<1x8xf32> to vector<64x8xf32>
    %385 = arith.addf %382, %384 : vector<64x8xf32>
    %386 = vector.shape_cast %385 : vector<64x8xf32> to vector<8x8x8xf32>
    %c0_107 = arith.constant 0 : index
    %c0_108 = arith.constant 0 : index
    %c0_109 = arith.constant 0 : index
    %387 = vector.load %arg11[%c0_107, %c0_108, %c0_109] : memref<8x8x8xf32, #tpu.memory_space<vmem>>, vector<8x8x8xf32>
    tpu.vector_store %arg11[%c0_107, %c0_108, %c0_109], %386 {strides = array<i32>} : memref<8x8x8xf32, #tpu.memory_space<vmem>>, vector<8x8x8xf32>,
    return
  }
  func.func @transform_0(%arg0: i32, %arg1: memref<8xi32, #tpu.memory_space<smem>>) -> (i32, i32, i32) {
    %c0_i32 = arith.constant 0 : i32
    %c0_i32_0 = arith.constant 0 : i32
    %c0_i32_1 = arith.constant 0 : i32
    return %c0_i32, %arg0, %c0_i32_0 : i32, i32, i32
  }
  func.func @transform_1(%arg0: i32, %arg1: memref<8xi32, #tpu.memory_space<smem>>) -> (i32, i32) {
    %c0_i32 = arith.constant 0 : i32
    %c0_i32_0 = arith.constant 0 : i32
    %c0_i32_1 = arith.constant 0 : i32
    return %c0_i32, %c0_i32_0 : i32, i32
  }
  func.func @transform_2(%arg0: i32, %arg1: memref<8xi32, #tpu.memory_space<smem>>) -> (i32, i32) {
    %c0_i32 = arith.constant 0 : i32
    %c0_i32_0 = arith.constant 0 : i32
    %c0_i32_1 = arith.constant 0 : i32
    return %c0_i32, %c0_i32_0 : i32, i32
  }
  func.func @transform_3(%arg0: i32, %arg1: memref<8xi32, #tpu.memory_space<smem>>) -> (i32, i32) {
    %c0_i32 = arith.constant 0 : i32
    %c0_i32_0 = arith.constant 0 : i32
    %c0_i32_1 = arith.constant 0 : i32
    return %c0_i32, %c0_i32_0 : i32, i32
  }
  func.func @transform_4(%arg0: i32, %arg1: memref<8xi32, #tpu.memory_space<smem>>) -> (i32, i32) {
    %c0_i32 = arith.constant 0 : i32
    %c0_i32_0 = arith.constant 0 : i32
    %c0_i32_1 = arith.constant 0 : i32
    return %c0_i32, %c0_i32_0 : i32, i32
  }
  func.func @transform_5(%arg0: i32, %arg1: memref<8xi32, #tpu.memory_space<smem>>) -> (i32, i32) {
    %c0_i32 = arith.constant 0 : i32
    %c0_i32_0 = arith.constant 0 : i32
    %c0_i32_1 = arith.constant 0 : i32
    return %c0_i32, %c0_i32_0 : i32, i32
  }
  func.func @transform_6(%arg0: i32, %arg1: memref<8xi32, #tpu.memory_space<smem>>) -> (i32, i32) {
    %c0_i32 = arith.constant 0 : i32
    %c0_i32_0 = arith.constant 0 : i32
    %c0_i32_1 = arith.constant 0 : i32
    return %c0_i32, %c0_i32_0 : i32, i32
  }
  func.func @transform_7(%arg0: i32, %arg1: memref<8xi32, #tpu.memory_space<smem>>) -> (i32, i32) {
    %c0_i32 = arith.constant 0 : i32
    %c0_i32_0 = arith.constant 0 : i32
    %c0_i32_1 = arith.constant 0 : i32
    return %c0_i32, %c0_i32_0 : i32, i32
  }
  func.func @transform_8(%arg0: i32, %arg1: memref<8xi32, #tpu.memory_space<smem>>) -> (i32, i32) {
    %c0_i32 = arith.constant 0 : i32
    %c0_i32_0 = arith.constant 0 : i32
    %c0_i32_1 = arith.constant 0 : i32
    return %c0_i32, %c0_i32_0 : i32, i32
  }
  func.func @transform_9(%arg0: i32, %arg1: memref<8xi32, #tpu.memory_space<smem>>) -> (i32, i32, i32) {
    %c0_i32 = arith.constant 0 : i32
    %c0_i32_0 = arith.constant 0 : i32
    %c0_i32_1 = arith.constant 0 : i32
    return %c0_i32, %arg0, %c0_i32_0 : i32, i32, i32
  }
}

</mosaic_0001>

<bundles_post_ra>
// kernel: tpu_custom_call.1
= control target key start
LH: loop header
LB: loop body
LE: loop exit
PB: predicated region body
PF: predicated region fallthrough
CT: control target
= control target key end

     0   :  { %s7046_s16 = smov [#allocation6]   ;;  %s8718_s0 = inlined_call_operand.vmem [shape: s32[8], index: 0, kind: input, shape index: {}]   ;;  %s8719_s1 = inlined_call_operand.vmem [shape: f32[8,16,8], index: 1, kind: input, shape index: {}]   ;;  %s8720_s2 = inlined_call_operand.vmem [shape: f32[8,256], index: 2, kind: input, shape index: {}]   ;;  %s8721_s3 = inlined_call_operand.vmem [shape: f32[32,128], index: 3, kind: input, shape index: {}]   ;;  %s8722_s4 = inlined_call_operand.vmem [shape: f32[1,128], index: 4, kind: input, shape index: {}]   ;;  %s8723_s5 = inlined_call_operand.vmem [shape: f32[32,256], index: 5, kind: input, shape index: {}]   ;;  %s8724_s6 = inlined_call_operand.vmem [shape: f32[1,128], index: 6, kind: input, shape index: {}]   ;;  %s8725_s7 = inlined_call_operand.vmem [shape: f32[1,128], index: 7, kind: input, shape index: {}]   ;;  %s8726_s8 = inlined_call_operand.vmem [shape: f32[32,8], index: 8, kind: input, shape index: {}]   ;;  %s8727_s9 = inlined_call_operand.vmem [shape: f32[1,8], index: 9, kind: input, shape index: {}]   ;;  %s8728_s10 = inlined_call_operand.vmem [shape: f32[8,16,8], index: 10, kind: output, shape index: {}]  }
   0x1   :  { %s16_s15 = sshll.u32 %s8718_s0, 4  ;;  %s17_s15 = int_to_ptr.vmem [resolvable:$true] %s16_s15 }
   0x2   :  { %19 = dma.vmem_to_smem %s17_s15, 16, %s7046_s16, [#allocation5] }
   0x3   :  { %7032 = dma.done.wait [#allocation5], 16 }
   0x4   :  { %7033 = vsyncadd [#allocation5], 4294967280 }
   0x5   :  { %22 = sfence }
   0x6   :  { %s7108_s17 = smov 0   ;;  %s7110_s18 = smov 0  }
   0x7   :  { %s7112_s19 = smov 0  }
   0x8 LB: > { %s6807_s0 = sadd.s32 4294967295, %s7044_s19   ;;  %s7125_s20 = sadd.s32 1, %s7044_s19   ;;  %s7044_s19 = sphi %s7112_s19, %s8808_s19   ;;  %s7040_s18 = sphi %s7110_s18, %s8807_s18   ;;  %s7036_s17 = sphi %s7108_s17, %s8806_s17  }
   0x9   : > { %s32_s21 = ssub.s32 %s7044_s19, %s7125_s20  ;;  %s35_s22 = sadd.s32 1, %s7040_s18 }
   0xa   : > { %p33_p0 = scmp.eq.s32.totalorder %s32_s21, 0  ;;  %p42_p1 = scmp.ne.s32.totalorder %s7040_s18, %s7036_s17 }
   0xb   : > { %p43_p2 = scmp.eq.s32.totalorder %s7044_s19, 0  ;;  %p240_p3 = scmp.eq.s32.totalorder %s6807_s0, 1 }
   0xc   : > { %s7136_s23 = scalar_select %p33_p0, %s7040_s18, %s35_s22  }
   0xd   : > { %p44_p4 = por %p43_p2, %p42_p1  ;;  %p7138_p5 = por %p240_p3, %p42_p1 }
   0xe   : > { %p6810_p6 = scmp.ge.s32.totalorder %s7044_s19, 2 }
  0x10   : > { %286 = sbr.rel (%p6810_p6) target bundleno = 33 (0x21), region = 48 }
  0x15   : > { %289 = sbr.rel (!%p44_p4) target bundleno = 33 (0x21), region = 52  ;;  %s291_s25 = sand.u32 (%p44_p4), 1, %s7040_s18  }
  0x16   : > { %s6812_s26 = sshll.u32 (%p44_p4), %s7044_s19, 3  ;;  %s6811_s27 = sshll.u32 (%p44_p4), %s291_s25, 6 }
  0x17   : > { %s295_s30 = scalar_lea.vmem (%p44_p4), %s8719_s1, %s6812_s26  ;;  %s293_s11 = scalar_lea.vmem (%p44_p4), [#allocation7], %s6811_s27 }
  0x18   : > { %v338_v0 = vld [vmem:[%s295_s30] sm:$0xff] (%p44_p4)  ;;  %v340_v1 = vld [vmem:[%s295_s30 + $0x10] sm:$0xff] (%p44_p4) }
  0x19   : > { %v342_v2 = vld [vmem:[%s295_s30 + $0x20] sm:$0xff] (%p44_p4)  ;;  %339 = vst [vmem:[%s293_s11] sm:$0xff] (%p44_p4), %v338_v0  ;;  %v344_v3 = vld [vmem:[%s295_s30 + $0x30] sm:$0xff] (%p44_p4) }
  0x1a   : > { %341 = vst [vmem:[%s293_s11 + $0x8] sm:$0xff] %v340_v1  ;;  %v346_v4 = vld [vmem:[%s295_s30 + $0x40] sm:$0xff]  ;;  %v348_v5 = vld [vmem:[%s295_s30 + $0x50] sm:$0xff] }
  0x1b   : > { %343 = vst [vmem:[%s293_s11 + $0x10] sm:$0xff] %v342_v2  ;;  %v350_v6 = vld [vmem:[%s295_s30 + $0x60] sm:$0xff]  ;;  %v352_v7 = vld [vmem:[%s295_s30 + $0x70] sm:$0xff] }
  0x1c   : > { %345 = vst [vmem:[%s293_s11 + $0x18] sm:$0xff] %v344_v3 }
  0x1d   : > { %347 = vst [vmem:[%s293_s11 + $0x20] sm:$0xff] %v346_v4 }
  0x1e   : > { %349 = vst [vmem:[%s293_s11 + $0x28] sm:$0xff] %v348_v5 }
  0x1f   : > { %351 = vst [vmem:[%s293_s11 + $0x30] sm:$0xff] %v350_v6 }
  0x20   : > { %353 = vst [vmem:[%s293_s11 + $0x38] sm:$0xff] %v352_v7 }
  0x21 PF: > { %p6813_p7 = scmp.ge.s32.totalorder %s7044_s19, 1  ;;  %p358_p8 = scmp.lt.s32.totalorder %s7044_s19, 3 }
  0x23   : > { %p359_p9 = pnand %p6813_p7, %p358_p8 }
  0x25   : > { %362 = sbr.rel (%p359_p9) target bundleno = 10239 (0x27ff), region = 90 }
  0x2a   : > { %v407_v8 = vld [vmem:[%s8720_s2] sm:$0xff]  ;;  %s365_s14 = sand.u32 1, %s7036_s17   ;;  %vm409_vm0 = vcmask 64512   ;;  %v408_v48 = vld [vmem:[%s8720_s2 + $0x8] sm:$0xff]  ;;  %vm1215_vm5 = vcmask 261120   ;;  %s3653_s30 = sld [smem:[#allocation6]] }
  0x2b   : > { %v449_v9 = vand.u32 4294901760, %v407_v8  ;;  %s7154_s15 = sshll.u32 %s365_s14, 6  ;;  %v812_v50 = vand.u32 4294901760, %v408_v48  ;;  %s7048_s14 = smov 64  }
  0x2c   : > { %s7157_s16 = scalar_lea.vmem [#allocation7], %s7154_s15  ;;  %s6826_s21 = sld [smem:[#allocation6 + $0x1]] }
  0x2d   : > { %450 = vmatpush.msra.mxu0 %v449_v9  ;;  %v532_v10 = vsub.f32 %v407_v8, %v449_v9  ;;  %v399_v11 = vld [vmem:[%s7157_s16] sm:$0xff]  ;;  %v400_v12 = vld [vmem:[%s7157_s16 + $0x8] sm:$0xff]  ;;  %6843 = vmatpush.msra.mxu3 %v449_v9  ;;  %v402_v15 = vld [vmem:[%s7157_s16 + $0x18] sm:$0xff]  ;;  %v895_v57 = vsub.f32 %v408_v48, %v812_v50  ;;  %s6828_s22 = sld [smem:[#allocation6 + $0x2]]  ;;  %s8667_s29 = scalar_lea.vmem [#allocation8], %s7154_s15 }
  0x2e   : > { %v411_v13 = vsel %vm409_vm0, %v399_v11, 0  ;;  %v414_v14 = vsel %vm409_vm0, %v400_v12, 0  ;;  %v401_v19 = vld [vmem:[%s7157_s16 + $0x10] sm:$0xff]  ;;  %v420_v20 = vsel %vm409_vm0, %v402_v15, 0  ;;  %v403_v21 = vld [vmem:[%s7157_s16 + $0x20] sm:$0xff]  ;;  %v404_v37 = vld [vmem:[%s7157_s16 + $0x28] sm:$0xff] }
  0x2f   : > { %v533_v16 = vand.u32 4294901760, %v532_v10  ;;  %v7164_v17 = vand.u32 4294901760, %v411_v13  ;;  %587 = vmatpush.msrb.mxu0 %v532_v10  ;;  %v7166_v18 = vand.u32 4294901760, %v414_v14  ;;  %6842 = vmatpush.msra.mxu2 %v532_v10  ;;  %v417_v25 = vsel %vm409_vm0, %v401_v19, 0  ;;  %v405_v46 = vld [vmem:[%s7157_s16 + $0x30] sm:$0xff]  ;;  %v406_v55 = vld [vmem:[%s7157_s16 + $0x38] sm:$0xff] }
  0x30   : > { %v7178_v26 = vand.u32 4294901760, %v420_v20  ;;  %v423_v29 = vsel %vm409_vm0, %v403_v21, 0  ;;  %v7192_v33 = vand.u32 4294901760, %v417_v25  ;;  %v426_v41 = vsel %vm409_vm0, %v404_v37, 0  ;;  %v1203_v12 = vld [vmem:[%s8721_s3 + $0x18] sm:$0xff]  ;;  %s7049_s16 = smov 32  }
  0x31   : > { %v534_v22 = vsub.f32 %v532_v10, %v533_v16  ;;  %v7172_v23 = vsub.f32 %v411_v13, %v7164_v17  ;;  %v7175_v24 = vsub.f32 %v414_v14, %v7166_v18  ;;  %v7199_v35 = vand.u32 4294901760, %v423_v29  ;;  %813 = vmatpush.msrb.mxu2 %v812_v50  ;;  %s6830_s25 = sld [smem:[#allocation6 + $0x3]]  ;;  %s6839_s15 = sshll.u32 (%p7138_p5), %s6807_s0, 3 }
  0x32   : > { %v7185_v30 = vsub.f32 %v420_v20, %v7178_v26  ;;  %v7206_v39 = vsub.f32 %v417_v25, %v7192_v33  ;;  %v7220_v45 = vand.u32 4294901760, %v426_v41  ;;  %v429_v51 = vsel %vm409_vm0, %v405_v46, 0  ;;  %s6832_s26 = sld [smem:[#allocation6 + $0x4]]  ;;  %s6689_s12 = scalar_lea.vmem (%p7138_p5), %s8728_s10, %s6839_s15 }
  0x33   : > { %v535_v27 = vand.u32 4294901760, %v534_v22  ;;  %v7181_v28 = vand.u32 4294901760, %v7172_v23  ;;  %v7190_v32 = vand.u32 4294901760, %v7175_v24  ;;  %v7209_v40 = vsub.f32 %v423_v29, %v7199_v35  ;;  %v1202_v22 = vld [vmem:[%s8721_s3 + $0x10] sm:$0xff]  ;;  %s6834_s11 = sld [smem:[#allocation6 + $0x5]] }
  0x34   : > { %605 = vmatmul.f32.vlgmr.msra.gmra.mxu2 %v7185_v30  ;;  %v7197_v34 = vand.u32 4294901760, %v7185_v30  ;;  %v7213_v43 = vand.u32 4294901760, %v7206_v39  ;;  %v7230_v49 = vsub.f32 %v426_v41, %v7220_v45  ;;  %v7238_v54 = vand.u32 4294901760, %v429_v51  ;;  %s6836_s28 = sld [smem:[#allocation6 + $0x6]] }
  0x35   : > { %536 = vmatpush.msra.mxu1 %v535_v27  ;;  %v454_v31 = vsub.f32 %v7172_v23, %v7181_v28  ;;  %v462_v38 = vsub.f32 %v7175_v24, %v7190_v32  ;;  %v7218_v44 = vand.u32 4294901760, %v7209_v40  ;;  %v896_v59 = vand.u32 4294901760, %v895_v57 }
  0x36   : > { %538 = vmatmul.f32.vlgmr.msra.gmra.mxu1 %v7164_v17  ;;  %667 = vmatmul.f32.vlgmr.msra.gmra.mxu3 %v7197_v34  ;;  %v470_v47 = vsub.f32 %v7206_v39, %v7213_v43  ;;  %v7236_v53 = vand.u32 4294901760, %v7230_v49  ;;  %v478_v56 = vsub.f32 %v7185_v30, %v7197_v34  ;;  %v7245_v58 = vsub.f32 %v429_v51, %v7238_v54 }
  0x37   : > { %v455_v36 = vand.u32 4294901760, %v454_v31  ;;  %645 = vmatpush.msrb.mxu1 %v449_v9  ;;  %v463_v42 = vand.u32 4294901760, %v462_v38  ;;  %v432_v60 = vsel %vm409_vm0, %v406_v55, 0  ;;  %v897_v62 = vsub.f32 %v895_v57, %v896_v59  ;;  %1076 = vmatpush.msra.mxu2 %v896_v59 }
  0x38   : > { %v471_v52 = vand.u32 4294901760, %v470_v47  ;;  %v479_v61 = vand.u32 4294901760, %v478_v56  ;;  %v7251_v63 = vand.u32 4294901760, %v7245_v58  ;;  %v7253_v0 = vand.u32 4294901760, %v432_v60 }
  0x39   : > { %763 = vmatpush.msra.mxu1 %v449_v9  ;;  %456 = vmatmul.f32.vlgmr.msra.gmra.mxu0 %v455_v36  ;;  %v898_v1 = vand.u32 4294901760, %v897_v62  ;;  %v486_v2 = vsub.f32 %v7209_v40, %v7218_v44  ;;  %v494_v6 = vsub.f32 %v7230_v49, %v7236_v53  ;;  %v7307_v13 = vand.u32 4294901760, %v1203_v12 }
  0x3a   : > { %713 = vmatpush.msra.mxu0 %v533_v16  ;;  %v7259_v3 = vsub.f32 %v432_v60, %v7253_v0  ;;  %v502_v8 = vsub.f32 %v7245_v58, %v7251_v63  ;;  %v7344_v27 = vand.u32 4294901760, %v1202_v22  ;;  %v1200_v60 = vld [vmem:[%s8721_s3] sm:$0xff] }
  0x3b   : > { %899 = vmatpush.msrb.mxu3 %v898_v1  ;;  %v487_v4 = vand.u32 4294901760, %v486_v2  ;;  %v495_v7 = vand.u32 4294901760, %v494_v6  ;;  %v7312_v14 = vsub.f32 %v1203_v12, %v7307_v13 }
  0x3c   : > { %610 = vmatmul.f32.gmra.mxu2 %v7209_v40  ;;  %v7264_v5 = vand.u32 4294901760, %v7259_v3  ;;  %v503_v9 = vand.u32 4294901760, %v502_v8  ;;  %v7351_v29 = vsub.f32 %v1202_v22, %v7344_v27 }
  0x3d   : > { %1126 = vmatpush.msra.mxu3 %v812_v50  ;;  %v7320_v16 = vand.u32 4294901760, %v7312_v14 }
  0x3e   : > { %542 = vmatmul.f32.gmra.mxu1 %v7166_v18  ;;  %673 = vmatmul.f32.gmra.mxu3 %v7218_v44  ;;  %v510_v10 = vsub.f32 %v7259_v3, %v7264_v5 }
  0x40   : > { %v511_v11 = vand.u32 4294901760, %v510_v10 }
  0x41   : > { %464 = vmatmul.f32.gmra.mxu0 %v463_v42 }
  0x44   : > { %615 = vmatmul.f32.gmra.mxu2 %v7230_v49 }
  0x46   : > { %546 = vmatmul.f32.gmra.mxu1 %v7192_v33  ;;  %679 = vmatmul.f32.gmra.mxu3 %v7236_v53 }
  0x49   : > { %472 = vmatmul.f32.gmra.mxu0 %v471_v52 }
  0x4c   : > { %620 = vmatmul.f32.gmra.mxu2 %v7245_v58 }
  0x4e   : > { %550 = vmatmul.f32.gmra.mxu1 %v7178_v26  ;;  %685 = vmatmul.f32.gmra.mxu3 %v7251_v63 }
  0x51   : > { %480 = vmatmul.f32.gmra.mxu0 %v479_v61 }
  0x54   : > { %625 = vmatmul.f32.gmra.mxu2 %v7259_v3 }
  0x56   : > { %554 = vmatmul.f32.gmra.mxu1 %v7199_v35  ;;  %691 = vmatmul.f32.gmra.mxu3 %v7264_v5 }
  0x59   : > { %488 = vmatmul.f32.gmra.mxu0 %v487_v4 }
  0x5c   : > { %819 = vmatmul.f32.vlgmr.msrb.gmra.mxu2 %v455_v36 }
  0x5d   : > { %1303 = vmatpush.msrb.mxu2 %v7312_v14 }
  0x5e   : > { %558 = vmatmul.f32.gmra.mxu1 %v7220_v45  ;;  %901 = vmatmul.f32.vlgmr.msrb.gmra.mxu3 %v7164_v17 }
  0x5f   : > { %1332 = vmatpush.msrb.mxu3 %v7307_v13  ;;  %1306 = vmatpush.msrb.mxu2 %v7351_v29 }
  0x61   : > { %496 = vmatmul.f32.gmra.mxu0 %v495_v7  ;;  %1334 = vmatpush.msrb.mxu3 %v7344_v27 }
  0x64   : > { %827 = vmatmul.f32.gmra.mxu2 %v463_v42 }
  0x66   : > { %562 = vmatmul.f32.gmra.mxu1 %v7238_v54  ;;  %905 = vmatmul.f32.gmra.mxu3 %v7166_v18 }
  0x69   : > { %504 = vmatmul.f32.gmra.mxu0 %v503_v9 }
  0x6c   : > { %835 = vmatmul.f32.gmra.mxu2 %v471_v52 }
  0x6e   : > { %566 = vmatmul.f32.gmra.mxu1 %v7253_v0  ;;  %909 = vmatmul.f32.gmra.mxu3 %v7192_v33 }
  0x71   : > { %512 = vmatmul.f32.gmra.mxu0 %v511_v11 }
  0x74   : > { %843 = vmatmul.f32.gmra.mxu2 %v479_v61  ;;  %v7428_v61 = vand.u32 4294901760, %v1200_v60 }
  0x76   : > { %649 = vmatmul.f32.vlgmr.msrb.gmra.mxu1 %v7181_v28  ;;  %913 = vmatmul.f32.gmra.mxu3 %v7178_v26  ;;  %v7433_v62 = vsub.f32 %v1200_v60, %v7428_v61 }
  0x77   : > { %1008 = vmatpush.msrb.mxu1 %v812_v50 }
  0x79   : > { %590 = vmatmul.f32.vlgmr.msrb.gmra.mxu0 %v7172_v23 }
  0x7a   : > { %950 = vmatpush.msrb.mxu0 %v895_v57 }
  0x7c   : > { %851 = vmatmul.f32.gmra.mxu2 %v487_v4  ;;  %v7047_v4 = vmov 0.0  }
  0x7e   : > { %655 = vmatmul.f32.gmra.mxu1 %v7190_v32  ;;  %917 = vmatmul.f32.gmra.mxu3 %v7199_v35 }
  0x81   : > { %595 = vmatmul.f32.gmra.mxu0 %v7175_v24 }
  0x84   : > { %859 = vmatmul.f32.gmra.mxu2 %v495_v7 }
  0x86   : > { %661 = vmatmul.f32.gmra.mxu1 %v7213_v43  ;;  %921 = vmatmul.f32.gmra.mxu3 %v7220_v45 }
  0x89   : > { %600 = vmatmul.f32.gmra.mxu0 %v7206_v39 }
  0x8c   : > { %867 = vmatmul.f32.gmra.mxu2 %v503_v9 }
  0x8e   : > { %765 = vmatmul.f32.vlgmr.msra.gmra.mxu1 %v7164_v17  ;;  %925 = vmatmul.f32.gmra.mxu3 %v7238_v54 }
  0x91   : > { %715 = vmatmul.f32.vlgmr.msra.gmra.mxu0 %v7164_v17 }
  0x92   : > { %1232 = vmatpush.msra.mxu0 %v7307_v13 }
  0x94   : > { %875 = vmatmul.f32.gmra.mxu2 %v511_v11  ;;  %1234 = vmatpush.msra.mxu0 %v7344_v27 }
  0x96   : > { %769 = vmatmul.f32.gmra.mxu1 %v7166_v18  ;;  %929 = vmatmul.f32.gmra.mxu3 %v7253_v0 }
  0x99   : > { %719 = vmatmul.f32.gmra.mxu0 %v7166_v18 }
  0x9c   : > { %1078 = vmatmul.f32.vlgmr.msra.gmra.mxu2 %v7164_v17 }
  0x9e   : > { %773 = vmatmul.f32.gmra.mxu1 %v7192_v33  ;;  %1128 = vmatmul.f32.vlgmr.msra.gmra.mxu3 %v7164_v17 }
  0xa1   : > { %723 = vmatmul.f32.gmra.mxu0 %v7192_v33 }
  0xa4   : > { %1082 = vmatmul.f32.gmra.mxu2 %v7166_v18 }
  0xa6   : > { %777 = vmatmul.f32.gmra.mxu1 %v7178_v26  ;;  %1132 = vmatmul.f32.gmra.mxu3 %v7166_v18  ;;  %v1263_v18 = vsub.f32 %v7312_v14, %v7320_v16 }
  0xa8   : > { %v7328_v19 = vand.u32 4294901760, %v1263_v18 }
  0xa9   : > { %727 = vmatmul.f32.gmra.mxu0 %v7178_v26 }
  0xaa   : > { %1265 = vmatpush.msra.mxu1 %v7328_v19 }
  0xac   : > { %1086 = vmatmul.f32.gmra.mxu2 %v7192_v33 }
  0xae   : > { %781 = vmatmul.f32.gmra.mxu1 %v7199_v35  ;;  %1136 = vmatmul.f32.gmra.mxu3 %v7192_v33  ;;  %v7359_v33 = vand.u32 4294901760, %v7351_v29 }
  0xb1   : > { %731 = vmatmul.f32.gmra.mxu0 %v7199_v35 }
  0xb3   : > { %v7316_v15 = vpop.f32.mrf.mxu1 }
  0xb4   : > { %1090 = vmatmul.f32.gmra.mxu2 %v7178_v26 }
  0xb6   : > { %v7322_v17 = vpop.f32.mrf.mxu0  ;;  %785 = vmatmul.f32.gmra.mxu1 %v7220_v45  ;;  %1140 = vmatmul.f32.gmra.mxu3 %v7178_v26 }
  0xb7   : > { %v7342_v25 = vpop.f32.mrf.mxu2 }
  0xb9   : > { %735 = vmatmul.f32.gmra.mxu0 %v7220_v45  ;;  %v7348_v26 = vpop.f32.mrf.mxu3 }
  0xbb   : > { %v7333_v20 = vpop.f32.mrf.mxu1 }
  0xbc   : > { %1094 = vmatmul.f32.gmra.mxu2 %v7199_v35 }
  0xbe   : > { %v7335_v21 = vpop.f32.mrf.mxu0  ;;  %789 = vmatmul.f32.gmra.mxu1 %v7238_v54  ;;  %1144 = vmatmul.f32.gmra.mxu3 %v7199_v35  ;;  %v1269_v35 = vsub.f32 %v7351_v29, %v7359_v33 }
  0xbf   : > { %v7371_v38 = vpop.f32.mrf.mxu2 }
  0xc0   : > { %v7367_v37 = vand.u32 4294901760, %v1269_v35 }
  0xc1   : > { %739 = vmatmul.f32.gmra.mxu0 %v7238_v54  ;;  %v7376_v42 = vpop.f32.mrf.mxu3 }
  0xc2   : > { %1271 = vmatpush.msra.mxu1 %v7367_v37 }
  0xc3   : > { %v7355_v31 = vpop.f32.mrf.mxu1 }
  0xc4   : > { %1098 = vmatmul.f32.gmra.mxu2 %v7220_v45 }
  0xc6   : > { %v7361_v36 = vpop.f32.mrf.mxu0  ;;  %793 = vmatmul.f32.gmra.mxu1 %v7253_v0  ;;  %1148 = vmatmul.f32.gmra.mxu3 %v7220_v45  ;;  %v1201_v45 = vld [vmem:[%s8721_s3 + $0x8] sm:$0xff] }
  0xc7   : > { %v7385_v47 = vand.u32 4294901760, %v1201_v45  ;;  %v7396_v50 = vpop.f32.mrf.mxu2 }
  0xc9   : > { %743 = vmatmul.f32.gmra.mxu0 %v7253_v0  ;;  %v7390_v48 = vsub.f32 %v1201_v45, %v7385_v47  ;;  %1336 = vmatpush.msrb.mxu3 %v7385_v47 }
  0xca   : > { %1236 = vmatpush.msra.mxu0 %v7385_v47 }
  0xcb   : > { %v7374_v41 = vpop.f32.mrf.mxu1  ;;  %1309 = vmatpush.msrb.mxu2 %v7390_v48  ;;  %v7400_v51 = vand.u32 4294901760, %v7390_v48  ;;  %1338 = vmatpush.msrb.mxu3 %v7428_v61 }
  0xcc   : > { %1102 = vmatmul.f32.gmra.mxu2 %v7238_v54  ;;  %1238 = vmatpush.msra.mxu0 %v7428_v61 }
  0xcd   : > { %1494 = vmatpush.msra.mxu3 %v7328_v19  ;;  %1312 = vmatpush.msrb.mxu2 %v7433_v62 }
  0xce   : > { %v7378_v46 = vpop.f32.mrf.mxu0  ;;  %1012 = vmatmul.f32.vlgmr.msrb.gmra.mxu1 %v7181_v28  ;;  %1152 = vmatmul.f32.gmra.mxu3 %v7238_v54  ;;  %v1275_v54 = vsub.f32 %v7390_v48, %v7400_v51 }
  0xcf   : > { %1500 = vmatpush.msra.mxu3 %v7367_v37  ;;  %1461 = vmatpush.msra.mxu2 %v7307_v13 }
  0xd0   : > { %v7410_v55 = vand.u32 4294901760, %v1275_v54 }
  0xd1   : > { %953 = vmatmul.f32.vlgmr.msrb.gmra.mxu0 %v7172_v23  ;;  %v7405_v23 = vpop.f32.mrf.mxu3  ;;  %1463 = vmatpush.msra.mxu2 %v7344_v27 }
  0xd2   : > { %1277 = vmatpush.msra.mxu1 %v7410_v55  ;;  %1361 = vmatpush.msrb.mxu0 %v7320_v16 }
  0xd3   : > { %v7394_v28 = vpop.f32.mrf.mxu1  ;;  %1506 = vmatpush.msra.mxu3 %v7410_v55  ;;  %1465 = vmatpush.msra.mxu2 %v7385_v47 }
  0xd4   : > { %1106 = vmatmul.f32.gmra.mxu2 %v7253_v0  ;;  %1365 = vmatpush.msrb.mxu0 %v7359_v33 }
  0xd5   : > { %1467 = vmatpush.msra.mxu2 %v7428_v61 }
  0xd6   : > { %v7402_v52 = vpop.f32.mrf.mxu0  ;;  %1018 = vmatmul.f32.gmra.mxu1 %v7190_v32  ;;  %1156 = vmatmul.f32.gmra.mxu3 %v7253_v0  ;;  %v7420_v32 = vpop.f32.mrf.mxu2 }
  0xd7   : > { %1369 = vmatpush.msrb.mxu0 %v7400_v51 }
  0xd9   : > { %958 = vmatmul.f32.gmra.mxu0 %v7175_v24  ;;  %v7422_v59 = vpop.f32.mrf.mxu3 }
  0xdb   : > { %v7415_v56 = vpop.f32.mrf.mxu1 }
  0xdc   : > { %1315 = vmatmul.f32.vlgmr.msrb.gmra.mxu2 %v7047_v4 }
  0xdd   : > { %1590 = vmatpush.msrb.mxu2 %v7320_v16 }
  0xde   : > { %v7417_v57 = vpop.f32.mrf.mxu0  ;;  %1024 = vmatmul.f32.gmra.mxu1 %v7213_v43  ;;  %v7444_v43 = vand.u32 4294901760, %v7433_v62  ;;  %v7448_v0 = vpop.f32.mrf.mxu2  ;;  %1342 = vmatmul.f32.vlgmr.msrb.gmra.mxu3 %v7047_v4 }
  0xdf   : > { %1594 = vmatpush.msrb.mxu2 %v7359_v33 }
  0xe0   : > { %v1281_v1 = vsub.f32 %v7433_v62, %v7444_v43  ;;  %1373 = vmatpush.msrb.mxu0 %v7444_v43 }
  0xe1   : > { %963 = vmatmul.f32.gmra.mxu0 %v7206_v39  ;;  %1598 = vmatpush.msrb.mxu2 %v7400_v51 }
  0xe2   : > { %v7457_v2 = vand.u32 4294901760, %v1281_v1 }
  0xe3   : > { %v7430_v24 = vpop.f32.mrf.mxu1  ;;  %1602 = vmatpush.msrb.mxu2 %v7444_v43 }
  0xe4   : > { %1283 = vmatpush.msra.mxu1 %v7457_v2  ;;  %1512 = vmatpush.msra.mxu3 %v7457_v2 }
  0xe6   : > { %v7439_v39 = vpop.f32.mrf.mxu0  ;;  %1030 = vmatmul.f32.gmra.mxu1 %v7197_v34  ;;  %v7455_v34 = vpop.f32.mrf.mxu3  ;;  %1621 = vmatpush.msrb.mxu3 %v7307_v13 }
  0xe7   : > { %1392 = vmatpush.msrb.mxu1 %v7307_v13  ;;  %v7475_v7 = vpop.f32.mrf.mxu2 }
  0xe8   : > { %1623 = vmatpush.msrb.mxu3 %v7344_v27 }
  0xe9   : > { %968 = vmatmul.f32.gmra.mxu0 %v7185_v30  ;;  %1394 = vmatpush.msrb.mxu1 %v7344_v27 }
  0xea   : > { %1625 = vmatpush.msrb.mxu3 %v7385_v47 }
  0xeb   : > { %v7461_v6 = vpop.f32.mrf.mxu1  ;;  %1396 = vmatpush.msrb.mxu1 %v7385_v47 }
  0xec   : > { %1627 = vmatpush.msrb.mxu3 %v7428_v61 }
  0xed   : > { %1398 = vmatpush.msrb.mxu1 %v7428_v61 }
  0xee   : > { %v7469_v30 = vpop.f32.mrf.mxu0  ;;  %1036 = vmatmul.f32.gmra.mxu1 %v7218_v44  ;;  %v7480_v8 = vpop.f32.mrf.mxu3 }
  0xf1   : > { %973 = vmatmul.f32.gmra.mxu0 %v7209_v40  ;;  %v7494_v40 = vpop.f32.mrf.mxu2 }
  0xf2   : > { %8730 = vst [vmem:[#allocation10_spill] sm:$0xff] %v7494_v40 }
  0xf3   : > { %v7484_v44 = vpop.f32.mrf.mxu1 }
  0xf6   : > { %v7490_v9 = vpop.f32.mrf.mxu0  ;;  %1042 = vmatmul.f32.gmra.mxu1 %v7236_v53  ;;  %v7498_v10 = vpop.f32.mrf.mxu3 }
  0xf7   : > { %8731 = vst [vmem:[#allocation11_spill] sm:$0xff] %v7498_v10 }
  0xf9   : > { %978 = vmatmul.f32.gmra.mxu0 %v7230_v49  ;;  %v7501_v18 = vpop.f32.mrf.mxu2 }
  0xfa   : > { %8732 = vst [vmem:[#allocation12_spill] sm:$0xff] %v7501_v18 }
  0xfb   : > { %v656_v11 = vpop.f32.mrf.mxu1 }
  0xfe   : > { %v596_v12 = vpop.f32.mrf.mxu0  ;;  %1048 = vmatmul.f32.gmra.mxu1 %v7251_v63  ;;  %v7504_v22 = vpop.f32.mrf.mxu3 }
  0xff   : > { %8733 = vst [vmem:[#allocation13_spill] sm:$0xff] %v7504_v22 }
 0x101   : > { %983 = vmatmul.f32.gmra.mxu0 %v7245_v58  ;;  %v7507_v45 = vpop.f32.mrf.mxu2  ;;  %v544_v58 = vadd.f32 %v7333_v20, %v7335_v21  ;;  %v548_v21 = vadd.f32 %v7355_v31, %v7361_v36 }
 0x102   : > { %8734 = vst [vmem:[#allocation14_spill] sm:$0xff] %v7507_v45 }
 0x103   : > { %v662_v53 = vpop.f32.mrf.mxu1 }
 0x106   : > { %v601_v35 = vpop.f32.mrf.mxu0  ;;  %1054 = vmatmul.f32.gmra.mxu1 %v7264_v5  ;;  %v7510_v49 = vpop.f32.mrf.mxu3  ;;  %v597_v5 = vadd.f32 %v596_v12, %v544_v58 }
 0x107   : > { %8735 = vst [vmem:[#allocation15_spill] sm:$0xff] %v7510_v49 }
 0x108   : > { %v657_v49 = vadd.f32 %v656_v11, %v597_v5  ;;  %v7541_v11 = vld [vmem:[%s8722_s4] ss:$0 sm:$0xff] }
 0x109   : > { %988 = vmatmul.f32.gmra.mxu0 %v7259_v3  ;;  %v7520_v63 = vpop.f32.mrf.mxu2 }
 0x10a   : > { %8736 = vst [vmem:[#allocation16_spill] sm:$0xff] %v7520_v63 }
 0x10b   : > { %v7512_v54 = vpop.f32.mrf.mxu1 }
 0x10e   : > { %v7514_v60 = vpop.f32.mrf.mxu0  ;;  %1285 = vmatmul.f32.vlgmr.msra.gmra.mxu1 %v7047_v4  ;;  %v7524_v3 = vpop.f32.mrf.mxu3 }
 0x10f   : > { %1561 = vmatpush.msra.mxu1 %v7307_v13  ;;  %8737 = vst [vmem:[#allocation17_spill] sm:$0xff] %v7524_v3  ;;  %v602_v3 = vadd.f32 %v601_v35, %v548_v21  ;;  %v552_v35 = vadd.f32 %v7374_v41, %v7378_v46 }
 0x111   : > { %1244 = vmatmul.f32.vlgmr.msra.gmra.mxu0 %v7047_v4  ;;  %1563 = vmatpush.msra.mxu1 %v7344_v27  ;;  %v7535_v58 = vpop.f32.mrf.mxu2  ;;  %v607_v21 = vadd.f32 %v7342_v25, %v552_v35 }
 0x112   : > { %1532 = vmatpush.msra.mxu0 %v7312_v14  ;;  %8738 = vst [vmem:[#allocation18_spill] sm:$0xff] %v7535_v58 }
 0x113   : > { %v770_v1 = vpop.f32.mrf.mxu1  ;;  %1565 = vmatpush.msra.mxu1 %v7385_v47  ;;  %v669_v46 = vadd.f32 %v7348_v26, %v607_v21 }
 0x114   : > { %1535 = vmatpush.msra.mxu0 %v7351_v29 }
 0x115   : > { %1567 = vmatpush.msra.mxu1 %v7428_v61 }
 0x116   : > { %v720_v20 = vpop.f32.mrf.mxu0  ;;  %1400 = vmatmul.f32.vlgmr.msrb.gmra.mxu1 %v7047_v4  ;;  %1538 = vmatpush.msra.mxu0 %v7390_v48  ;;  %v7545_v63 = vpop.f32.mrf.mxu3 }
 0x117   : > { %v721_v12 = vadd.f32 %v720_v20, %v657_v49  ;;  %1723 = vmatpush.msrb.mxu1 %v7328_v19  ;;  %8739 = vst [vmem:[#allocation19_spill] sm:$0xff] %v7545_v63  ;;  %v663_v49 = vadd.f32 %v662_v53, %v602_v3  ;;  %v556_v53 = vadd.f32 %v7394_v28, %v7402_v52 }
 0x118   : > { %1541 = vmatpush.msra.mxu0 %v7433_v62 }
 0x119   : > { %v771_v5 = vadd.f32 %v770_v1, %v721_v12  ;;  %1375 = vmatmul.f32.vlgmr.msrb.gmra.mxu0 %v7047_v4  ;;  %1729 = vmatpush.msrb.mxu1 %v7367_v37  ;;  %v7557_v20 = vpop.f32.mrf.mxu2 }
 0x11a   : > { %1690 = vmatpush.msrb.mxu0 %v7307_v13  ;;  %8740 = vst [vmem:[#allocation20_spill] sm:$0xff] %v7557_v20  ;;  %v612_v20 = vadd.f32 %v7371_v38, %v556_v53 }
 0x11b   : > { %v7549_v31 = vadd.f32 %v7541_v11, %v771_v5  ;;  %v774_v36 = vpop.f32.mrf.mxu1  ;;  %1735 = vmatpush.msrb.mxu1 %v7410_v55 }
 0x11c   : > { %1692 = vmatpush.msrb.mxu0 %v7344_v27  ;;  %v675_v35 = vadd.f32 %v7376_v42, %v612_v20 }
 0x11d   : > { %1741 = vmatpush.msrb.mxu1 %v7457_v2 }
 0x11e   : > { %v724_v4 = vpop.f32.mrf.mxu0  ;;  %1694 = vmatpush.msrb.mxu0 %v7385_v47  ;;  %v7561_v5 = vpop.f32.mrf.mxu3 }
 0x11f   : > { %v725_v1 = vadd.f32 %v724_v4, %v663_v49  ;;  %8741 = vst [vmem:[#allocation21_spill] sm:$0xff] %v7561_v5 }
 0x120   : > { %1696 = vmatpush.msrb.mxu0 %v7428_v61 }
 0x121   : > { %v775_v12 = vadd.f32 %v774_v36, %v725_v1  ;;  %v876_v4 = vpop.f32.mrf.mxu2 }
 0x123   : > { %v7564_v63 = vadd.f32 %v7541_v11, %v775_v12  ;;  %v778_v41 = vpop.f32.mrf.mxu1 }
 0x126   : > { %v728_v3 = vpop.f32.mrf.mxu0  ;;  %v930_v45 = vpop.f32.mrf.mxu3 }
 0x127   : > { %v729_v49 = vadd.f32 %v728_v3, %v669_v46 }
 0x129   : > { %v779_v58 = vadd.f32 %v778_v41, %v729_v49  ;;  %v7574_v5 = vpop.f32.mrf.mxu2 }
 0x12a   : > { %8742 = vst [vmem:[#allocation22_spill] sm:$0xff] %v7574_v5 }
 0x12b   : > { %v7571_v25 = vadd.f32 %v7541_v11, %v779_v58  ;;  %v782_v36 = vpop.f32.mrf.mxu1 }
 0x12e   : > { %v732_v1 = vpop.f32.mrf.mxu0  ;;  %v7576_v21 = vpop.f32.mrf.mxu3 }
 0x12f   : > { %v733_v12 = vadd.f32 %v732_v1, %v675_v35  ;;  %8743 = vst [vmem:[#allocation23_spill] sm:$0xff] %v7576_v21 }
 0x131   : > { %v783_v26 = vadd.f32 %v782_v36, %v733_v12  ;;  %v7585_v45 = vpop.f32.mrf.mxu2 }
 0x132   : > { %8744 = vst [vmem:[#allocation24_spill] sm:$0xff] %v7585_v45 }
 0x133   : > { %v7579_v28 = vadd.f32 %v7541_v11, %v783_v26  ;;  %v7581_v52 = vpop.f32.mrf.mxu1 }
 0x136   : > { %v7583_v38 = vpop.f32.mrf.mxu0  ;;  %v7587_v58 = vpop.f32.mrf.mxu3 }
 0x137   : > { %8745 = vst [vmem:[#allocation25_spill] sm:$0xff] %v7587_v58 }
 0x139   : > { %v7593_v20 = vpop.f32.mrf.mxu2 }
 0x13a   : > { %8746 = vst [vmem:[#allocation26_spill] sm:$0xff] %v7593_v20 }
 0x13b   : > { %v7589_v41 = vpop.f32.mrf.mxu1 }
 0x13e   : > { %v7591_v42 = vpop.f32.mrf.mxu0  ;;  %v7595_v46 = vpop.f32.mrf.mxu3 }
 0x13f   : > { %8747 = vst [vmem:[#allocation27_spill] sm:$0xff] %v7595_v46 }
 0x141   : > { %v7601_v49 = vpop.f32.mrf.mxu2 }
 0x142   : > { %8748 = vst [vmem:[#allocation28_spill] sm:$0xff] %v7601_v49 }
 0x143   : > { %v7597_v53 = vpop.f32.mrf.mxu1 }
 0x146   : > { %v7599_v3 = vpop.f32.mrf.mxu0  ;;  %v7603_v4 = vpop.f32.mrf.mxu3 }
 0x147   : > { %8749 = vst [vmem:[#allocation29_spill] sm:$0xff] %v7603_v4 }
 0x149   : > { %v7609_v1 = vpop.f32.mrf.mxu2 }
 0x14a   : > { %8750 = vst [vmem:[#allocation30_spill] sm:$0xff] %v7609_v1 }
 0x14b   : > { %v7605_v36 = vpop.f32.mrf.mxu1 }
 0x14e   : > { %v7607_v35 = vpop.f32.mrf.mxu0  ;;  %v7611_v12 = vpop.f32.mrf.mxu3 }
 0x14f   : > { %8751 = vst [vmem:[#allocation31_spill] sm:$0xff] %v7611_v12 }
 0x151   : > { %v7617_v46 = vpop.f32.mrf.mxu2 }
 0x152   : > { %8754 = vst [vmem:[#allocation34_spill] sm:$0xff] %v7617_v46 }
 0x153   : > { %v7613_v26 = vpop.f32.mrf.mxu1 }
 0x154   : > { %8752 = vst [vmem:[#allocation32_spill] sm:$0xff] %v7613_v26 }
 0x156   : > { %v7615_v20 = vpop.f32.mrf.mxu0  ;;  %v7619_v22 = vpop.f32.mrf.mxu3 }
 0x157   : > { %8753 = vst [vmem:[#allocation33_spill] sm:$0xff] %v7615_v20 }
 0x158   : > { %8755 = vst [vmem:[#allocation35_spill] sm:$0xff] %v7619_v22 }
 0x159   : > { %v7625_v4 = vpop.f32.mrf.mxu2 }
 0x15a   : > { %8758 = vst [vmem:[#allocation38_spill] sm:$0xff] %v7625_v4 }
 0x15b   : > { %v7621_v18 = vpop.f32.mrf.mxu1 }
 0x15c   : > { %8756 = vst [vmem:[#allocation36_spill] sm:$0xff] %v7621_v18 }
 0x15e   : > { %v7623_v49 = vpop.f32.mrf.mxu0  ;;  %v7627_v58 = vpop.f32.mrf.mxu3 }
 0x15f   : > { %8757 = vst [vmem:[#allocation37_spill] sm:$0xff] %v7623_v49 }
 0x160   : > { %8759 = vst [vmem:[#allocation39_spill] sm:$0xff] %v7627_v58 }
 0x161   : > { %v1107_v12 = vpop.f32.mrf.mxu2 }
 0x163   : > { %v7629_v45 = vpop.f32.mrf.mxu1 }
 0x164   : > { %8760 = vst [vmem:[#allocation40_spill] sm:$0xff] %v7629_v45  ;;  %v540_v45 = vadd.f32 %v7316_v15, %v7322_v17 }
 0x166   : > { %v7631_v1 = vpop.f32.mrf.mxu0  ;;  %v1157_v26 = vpop.f32.mrf.mxu3  ;;  %v592_v12 = vadd.f32 %v7490_v9, %v540_v45 }
 0x167   : > { %8761 = vst [vmem:[#allocation41_spill] sm:$0xff] %v7631_v1 }
 0x16b   : > { %v7633_v10 = vpop.f32.mrf.mxu1 }
 0x16c   : > { %8762 = vst [vmem:[#allocation42_spill] sm:$0xff] %v7633_v10  ;;  %v1316_v10 = vpop.f32.mrf.mxu2 }
 0x16e   : > { %v7635_v20 = vpop.f32.mrf.mxu0  ;;  %v1343_v21 = vpop.f32.mrf.mxu3 }
 0x16f   : > { %8763 = vst [vmem:[#allocation43_spill] sm:$0xff] %v7635_v20  ;;  %v651_v20 = vadd.f32 %v7484_v44, %v592_v12 }
 0x173   : > { %v7637_v46 = vpop.f32.mrf.mxu1 }
 0x174   : > { %8764 = vst [vmem:[#allocation44_spill] sm:$0xff] %v7637_v46  ;;  %v717_v46 = vadd.f32 %v7514_v60, %v651_v20 }
 0x176   : > { %v7639_v22 = vpop.f32.mrf.mxu0 }
 0x177   : > { %8765 = vst [vmem:[#allocation45_spill] sm:$0xff] %v7639_v22 }
 0x17b   : > { %v7641_v18 = vpop.f32.mrf.mxu1 }
 0x17c   : > { %8766 = vst [vmem:[#allocation46_spill] sm:$0xff] %v7641_v18  ;;  %v767_v18 = vadd.f32 %v7512_v54, %v717_v46 }
 0x17e   : > { %v7643_v49 = vpop.f32.mrf.mxu0  ;;  %v1164_v15 = vadd.f32 %v7541_v11, %v767_v18 }
 0x17f   : > { %8767 = vst [vmem:[#allocation47_spill] sm:$0xff] %v7643_v49 }
 0x183   : > { %v1055_v4 = vpop.f32.mrf.mxu1 }
 0x186   : > { %v989_v58 = vpop.f32.mrf.mxu0 }
 0x18b   : > { %v1286_v26 = vpop.f32.mrf.mxu1 }
 0x18e   : > { %v1245_v1 = vpop.f32.mrf.mxu0 }
 0x18f   : > { %v1287_v40 = vadd.f32 %v1286_v26, %v1245_v1 }
 0x191   : > { %v1317_v22 = vadd.f32 %v1316_v10, %v1287_v40 }
 0x193   : > { %v1344_v49 = vadd.f32 %v1343_v21, %v1317_v22  ;;  %v1401_v58 = vpop.f32.mrf.mxu1 }
 0x196   : > { %v1376_v4 = vpop.f32.mrf.mxu0 }
 0x197   : > { %v1377_v5 = vadd.f32 %v1376_v4, %v1344_v49 }
 0x199   : > { %v1402_v17 = vadd.f32 %v1401_v58, %v1377_v5 }
 0x19b   : > { %v1404_v9 = vadd.f32 %v1402_v17, %v1164_v15 }
 0x19d   : > { %6877 = vtanh.f32 %v1404_v9  ;;  %v6816_v44 = vmul.f32 -1.442695, %v1404_v9 }
 0x19f   : > { %6879 = vpow2.f32 %v6816_v44 }
 0x1a3   : > { %v6878_v45 = vpop.eup %6877 }
 0x1a4   : > { %1427 = vrot.lane.b32.xlu0 %v6878_v45, %s7048_s14 }
 0x1a5   : > { %v6880_v60 = vpop.eup %6879 }
 0x1a6   : > { %v1408_v40 = vadd.f32 1.0, %v6880_v60 }
 0x1a8   : > { %6881 = vrcp.f32 %v1408_v40  ;;  %v1420_v46 = vand.u32 2147483648, %v1408_v40  ;;  %vm1414_vm2 = vweird.f32 %v1408_v40  ;;  %v1418_v18 = vand.u32 2147483647, %v1408_v40 }
 0x1aa   : > { %v1421_v5 = vor.u32 1.1754944e-38, %v1420_v46  ;;  %vm1419_vm4 = vcmp.eq.f32.partialorder %v1418_v18, 8.507059e+37 }
 0x1ae   : > { %v6882_v10 = vpop.eup %6881 }
 0x1af   : > { %v1410_v54 = vmul.f32 %v6882_v10, %v1408_v40  ;;  %vm1415_vm1 = vweird.f32 %v6882_v10 }
 0x1b0   : > { %vm1416_vm3 = vmor %vm1414_vm2, %vm1415_vm1 }
 0x1b1   : > { %v1411_v22 = vsub.f32 1.0, %v1410_v54 }
 0x1b3   : > { %v1412_v21 = vmul.f32 %v6882_v10, %v1411_v22 }
 0x1b5   : > { %v1413_v20 = vadd.f32 %v6882_v10, %v1412_v21 }
 0x1b7   : > { %v1417_v11 = vsel %vm1416_vm3, %v6882_v10, %v1413_v20 }
 0x1b8   : > { %v1422_v1 = vsel %vm1419_vm4, %v1421_v5, %v1417_v11 }
 0x1b9   : > { %v1425_v26 = vmul.f32 0.0, %v1422_v1 }
 0x216   : > { %v1428_v49 = vpop.permute.xlu0 %1427 }
 0x217   : > { %v1430_v12 = vmul.f32 %v1428_v49, %v1422_v1 }
 0x219   : > { %1432 = vrot.lane.b32.xlu0 %v1430_v12, %s7049_s16 }
 0x28b   : > { %v1433_v4 = vpop.permute.xlu0 %1432 }
 0x28c   : > { %v7654_v58 = vadd.f32 %v1433_v4, %v1425_v26 }
 0x28e   : > { %6883 = vtanh.f32 %v7654_v58 }
 0x294   : > { %v6884_v15 = vpop.eup %6883 }
 0x295   : > { %1438 = vrot.lane.b32.xlu1 %v6884_v15, %s7048_s14 }
 0x307   : > { %v1439_v17 = vpop.permute.xlu1 %1438 }
 0x308   : > { %v1441_v9 = vmul.f32 %v1439_v17, %v1422_v1 }
 0x30a   : > { %1444 = vrot.lane.b32.xlu1 %v1441_v9, %s7049_s16 }
 0x37c   : > { %v1445_v45 = vpop.permute.xlu1 %1444 }
 0x37d   : > { %v1446_v44 = vsel %vm1215_vm5, %v1445_v45, 0 }
 0x37e   : > { %v1468_v60 = vand.u32 4294901760, %v1446_v44 }
 0x380   : > { %v1469_v40 = vsub.f32 %v1446_v44, %v1468_v60  ;;  %1514 = vmatmul.f32.vlgmr.msra.gmra.mxu3 %v1468_v60 }
 0x381   : > { %1790 = vmatpush.msra.mxu3 %v7307_v13 }
 0x382   : > { %v1470_v10 = vand.u32 4294901760, %v1469_v40  ;;  %1544 = vmatmul.f32.vlgmr.msra.gmra.mxu0 %v1469_v40 }
 0x383   : > { %1792 = vmatpush.msra.mxu3 %v7344_v27  ;;  %1819 = vmatpush.msra.mxu0 %v7320_v16 }
 0x384   : > { %v1471_v54 = vsub.f32 %v1469_v40, %v1470_v10  ;;  %1571 = vmatmul.f32.vlgmr.msra.gmra.mxu1 %v1470_v10 }
 0x385   : > { %1794 = vmatpush.msra.mxu3 %v7385_v47  ;;  %1850 = vmatpush.msra.mxu1 %v7307_v13 }
 0x386   : > { %v1472_v22 = vand.u32 4294901760, %v1471_v54  ;;  %1823 = vmatpush.msra.mxu0 %v7359_v33 }
 0x387   : > { %1796 = vmatpush.msra.mxu3 %v7428_v61  ;;  %1852 = vmatpush.msra.mxu1 %v7344_v27 }
 0x388   : > { %1473 = vmatmul.f32.vlgmr.msra.gmra.mxu2 %v1472_v22  ;;  %1629 = vmatmul.f32.vlgmr.msrb.gmra.mxu3 %v1468_v60 }
 0x389   : > { %1761 = vmatpush.msra.mxu2 %v7312_v14  ;;  %1854 = vmatpush.msra.mxu1 %v7385_v47 }
 0x38a   : > { %1827 = vmatpush.msra.mxu0 %v7400_v51  ;;  %1952 = vmatpush.msrb.mxu3 %v7328_v19 }
 0x38b   : > { %1764 = vmatpush.msra.mxu2 %v7351_v29  ;;  %1856 = vmatpush.msra.mxu1 %v7428_v61 }
 0x38c   : > { %1831 = vmatpush.msra.mxu0 %v7444_v43  ;;  %1958 = vmatpush.msrb.mxu3 %v7367_v37 }
 0x38d   : > { %1767 = vmatpush.msra.mxu2 %v7390_v48 }
 0x38e   : > { %1964 = vmatpush.msrb.mxu3 %v7410_v55 }
 0x38f   : > { %1770 = vmatpush.msra.mxu2 %v7433_v62 }
 0x390   : > { %1604 = vmatmul.f32.vlgmr.msrb.gmra.mxu2 %v1468_v60  ;;  %1970 = vmatpush.msrb.mxu3 %v7457_v2 }
 0x391   : > { %1919 = vmatpush.msrb.mxu2 %v7307_v13 }
 0x393   : > { %1921 = vmatpush.msrb.mxu2 %v7344_v27 }
 0x395   : > { %1923 = vmatpush.msrb.mxu2 %v7385_v47 }
 0x397   : > { %1925 = vmatpush.msrb.mxu2 %v7428_v61 }
 0x3ff   : > { %v1545_v18 = vpop.f32.mrf.mxu0 }
 0x401   : > { %v1572_v5 = vpop.f32.mrf.mxu1 }
 0x403   : > { %v1515_v21 = vpop.f32.mrf.mxu3 }
 0x40b   : > { %v1474_v20 = vpop.f32.mrf.mxu2  ;;  %v1630_v26 = vpop.f32.mrf.mxu3 }
 0x40c   : > { %v1516_v46 = vadd.f32 %v1515_v21, %v1474_v20 }
 0x40e   : > { %v1546_v11 = vadd.f32 %v1545_v18, %v1516_v46 }
 0x410   : > { %v1573_v49 = vadd.f32 %v1572_v5, %v1546_v11 }
 0x413   : > { %v1605_v1 = vpop.f32.mrf.mxu2 }
 0x414   : > { %v1606_v12 = vadd.f32 %v1605_v1, %v1573_v49 }
 0x416   : > { %v1631_v4 = vadd.f32 %v1630_v26, %v1606_v12 }
 0x418   : > { %v1633_v15 = vadd.f32 %v1631_v4, %v7549_v31 }
 0x41a   : > { %6885 = vtanh.f32 %v1633_v15  ;;  %v6817_v9 = vmul.f32 -1.442695, %v1633_v15 }
 0x41c   : > { %6887 = vpow2.f32 %v6817_v9 }
 0x420   : > { %v6886_v17 = vpop.eup %6885 }
 0x421   : > { %1656 = vrot.lane.b32.xlu2 %v6886_v17, %s7048_s14 }
 0x422   : > { %v6888_v45 = vpop.eup %6887 }
 0x423   : > { %v1637_v44 = vadd.f32 1.0, %v6888_v45 }
 0x425   : > { %6889 = vrcp.f32 %v1637_v44  ;;  %v1649_v21 = vand.u32 2147483648, %v1637_v44  ;;  %vm1643_vm7 = vweird.f32 %v1637_v44  ;;  %v1647_v20 = vand.u32 2147483647, %v1637_v44 }
 0x427   : > { %v1650_v46 = vor.u32 1.1754944e-38, %v1649_v21  ;;  %vm1648_vm9 = vcmp.eq.f32.partialorder %v1647_v20, 8.507059e+37 }
 0x42b   : > { %v6890_v60 = vpop.eup %6889 }
 0x42c   : > { %v1639_v40 = vmul.f32 %v6890_v60, %v1637_v44  ;;  %vm1644_vm6 = vweird.f32 %v6890_v60 }
 0x42d   : > { %vm1645_vm8 = vmor %vm1643_vm7, %vm1644_vm6 }
 0x42e   : > { %v1640_v10 = vsub.f32 1.0, %v1639_v40 }
 0x430   : > { %v1641_v54 = vmul.f32 %v6890_v60, %v1640_v10 }
 0x432   : > { %v1642_v22 = vadd.f32 %v6890_v60, %v1641_v54 }
 0x434   : > { %v1646_v31 = vsel %vm1645_vm8, %v6890_v60, %v1642_v22 }
 0x435   : > { %v1651_v11 = vsel %vm1648_vm9, %v1650_v46, %v1646_v31 }
 0x436   : > { %v1654_v49 = vmul.f32 %v1651_v11, %v7654_v58 }
 0x47b   : > { %v1657_v18 = vpop.permute.xlu2 %1656 }
 0x47c   : > { %v1659_v5 = vmul.f32 %v1657_v18, %v1651_v11 }
 0x47e   : > { %1661 = vrot.lane.b32.xlu2 %v1659_v5, %s7049_s16 }
 0x4d8   : > { %v1662_v1 = vpop.permute.xlu2 %1661 }
 0x4d9   : > { %v7688_v12 = vadd.f32 %v1662_v1, %v1654_v49 }
 0x4db   : > { %6891 = vtanh.f32 %v7688_v12 }
 0x4e1   : > { %v6892_v26 = vpop.eup %6891 }
 0x4e2   : > { %1667 = vrot.lane.b32.xlu0 %v6892_v26, %s7048_s14 }
 0x554   : > { %v1668_v4 = vpop.permute.xlu0 %1667 }
 0x555   : > { %v1670_v15 = vmul.f32 %v1668_v4, %v1651_v11 }
 0x557   : > { %1673 = vrot.lane.b32.xlu1 %v1670_v15, %s7049_s16 }
 0x5c9   : > { %v1674_v17 = vpop.permute.xlu1 %1673 }
 0x5ca   : > { %v1675_v9 = vsel %vm1215_vm5, %v1674_v17, 0 }
 0x5cb   : > { %v1697_v45 = vand.u32 4294901760, %v1675_v9 }
 0x5cd   : > { %v1698_v44 = vsub.f32 %v1675_v9, %v1697_v45  ;;  %1743 = vmatmul.f32.vlgmr.msrb.gmra.mxu1 %v1697_v45 }
 0x5ce   : > { %2019 = vmatpush.msrb.mxu1 %v7307_v13 }
 0x5cf   : > { %v1699_v58 = vand.u32 4294901760, %v1698_v44  ;;  %1773 = vmatmul.f32.vlgmr.msra.gmra.mxu2 %v1698_v44 }
 0x5d0   : > { %2021 = vmatpush.msrb.mxu1 %v7344_v27  ;;  %2048 = vmatpush.msra.mxu2 %v7320_v16 }
 0x5d1   : > { %v1700_v60 = vsub.f32 %v1698_v44, %v1699_v58  ;;  %1800 = vmatmul.f32.vlgmr.msra.gmra.mxu3 %v1699_v58 }
 0x5d2   : > { %2023 = vmatpush.msrb.mxu1 %v7385_v47  ;;  %2079 = vmatpush.msra.mxu3 %v7307_v13 }
 0x5d3   : > { %v1701_v40 = vand.u32 4294901760, %v1700_v60  ;;  %2052 = vmatpush.msra.mxu2 %v7359_v33 }
 0x5d4   : > { %2025 = vmatpush.msrb.mxu1 %v7428_v61  ;;  %2081 = vmatpush.msra.mxu3 %v7344_v27 }
 0x5d5   : > { %1702 = vmatmul.f32.vlgmr.msrb.gmra.mxu0 %v1701_v40  ;;  %1858 = vmatmul.f32.vlgmr.msra.gmra.mxu1 %v1697_v45 }
 0x5d6   : > { %1990 = vmatpush.msrb.mxu0 %v7312_v14  ;;  %2083 = vmatpush.msra.mxu3 %v7385_v47 }
 0x5d7   : > { %2056 = vmatpush.msra.mxu2 %v7400_v51  ;;  %2181 = vmatpush.msra.mxu1 %v7328_v19 }
 0x5d8   : > { %1993 = vmatpush.msrb.mxu0 %v7351_v29  ;;  %2085 = vmatpush.msra.mxu3 %v7428_v61 }
 0x5d9   : > { %2060 = vmatpush.msra.mxu2 %v7444_v43  ;;  %2187 = vmatpush.msra.mxu1 %v7367_v37 }
 0x5da   : > { %1996 = vmatpush.msrb.mxu0 %v7390_v48 }
 0x5db   : > { %2193 = vmatpush.msra.mxu1 %v7410_v55 }
 0x5dc   : > { %1999 = vmatpush.msrb.mxu0 %v7433_v62 }
 0x5dd   : > { %1833 = vmatmul.f32.vlgmr.msra.gmra.mxu0 %v1697_v45  ;;  %2199 = vmatpush.msra.mxu1 %v7457_v2 }
 0x5de   : > { %2148 = vmatpush.msra.mxu0 %v7307_v13 }
 0x5e0   : > { %2150 = vmatpush.msra.mxu0 %v7344_v27 }
 0x5e2   : > { %2152 = vmatpush.msra.mxu0 %v7385_v47 }
 0x5e4   : > { %2154 = vmatpush.msra.mxu0 %v7428_v61 }
 0x64a   : > { %v1744_v10 = vpop.f32.mrf.mxu1 }
 0x652   : > { %v1703_v54 = vpop.f32.mrf.mxu0  ;;  %v1774_v21 = vpop.f32.mrf.mxu2 }
 0x653   : > { %v1745_v22 = vadd.f32 %v1744_v10, %v1703_v54  ;;  %v1859_v5 = vpop.f32.mrf.mxu1 }
 0x654   : > { %v1801_v31 = vpop.f32.mrf.mxu3 }
 0x655   : > { %v1775_v20 = vadd.f32 %v1774_v21, %v1745_v22 }
 0x657   : > { %v1802_v46 = vadd.f32 %v1801_v31, %v1775_v20 }
 0x65a   : > { %v1834_v18 = vpop.f32.mrf.mxu0 }
 0x65b   : > { %v1835_v11 = vadd.f32 %v1834_v18, %v1802_v46 }
 0x65d   : > { %v1860_v49 = vadd.f32 %v1859_v5, %v1835_v11 }
 0x65f   : > { %v1862_v1 = vadd.f32 %v1860_v49, %v7564_v63 }
 0x661   : > { %6893 = vtanh.f32 %v1862_v1  ;;  %v6818_v4 = vmul.f32 -1.442695, %v1862_v1 }
 0x663   : > { %6895 = vpow2.f32 %v6818_v4 }
 0x667   : > { %v6894_v26 = vpop.eup %6893 }
 0x668   : > { %1885 = vrot.lane.b32.xlu2 %v6894_v26, %s7048_s14 }
 0x669   : > { %v6896_v15 = vpop.eup %6895 }
 0x66a   : > { %v1866_v17 = vadd.f32 1.0, %v6896_v15 }
 0x66c   : > { %6897 = vrcp.f32 %v1866_v17  ;;  %v1878_v40 = vand.u32 2147483648, %v1866_v17  ;;  %vm1872_vm11 = vweird.f32 %v1866_v17  ;;  %v1876_v10 = vand.u32 2147483647, %v1866_v17 }
 0x66e   : > { %v1879_v54 = vor.u32 1.1754944e-38, %v1878_v40  ;;  %vm1877_vm13 = vcmp.eq.f32.partialorder %v1876_v10, 8.507059e+37 }
 0x672   : > { %v6898_v9 = vpop.eup %6897 }
 0x673   : > { %v1868_v45 = vmul.f32 %v6898_v9, %v1866_v17  ;;  %vm1873_vm10 = vweird.f32 %v6898_v9 }
 0x674   : > { %vm1874_vm12 = vmor %vm1872_vm11, %vm1873_vm10 }
 0x675   : > { %v1869_v44 = vsub.f32 1.0, %v1868_v45 }
 0x677   : > { %v1870_v58 = vmul.f32 %v6898_v9, %v1869_v44 }
 0x679   : > { %v1871_v60 = vadd.f32 %v6898_v9, %v1870_v58 }
 0x67b   : > { %v1875_v63 = vsel %vm1874_vm12, %v6898_v9, %v1871_v60 }
 0x67c   : > { %v1880_v21 = vsel %vm1877_vm13, %v1879_v54, %v1875_v63 }
 0x67d   : > { %v1883_v31 = vmul.f32 %v1880_v21, %v7688_v12 }
 0x6c2   : > { %v1886_v22 = vpop.permute.xlu2 %1885 }
 0x6c3   : > { %v1888_v20 = vmul.f32 %v1886_v22, %v1880_v21 }
 0x6c5   : > { %1890 = vrot.lane.b32.xlu0 %v1888_v20, %s7049_s16 }
 0x737   : > { %v1891_v46 = vpop.permute.xlu0 %1890 }
 0x738   : > { %v7722_v18 = vadd.f32 %v1891_v46, %v1883_v31 }
 0x73a   : > { %6899 = vtanh.f32 %v7722_v18 }
 0x740   : > { %v6900_v11 = vpop.eup %6899 }
 0x741   : > { %1896 = vrot.lane.b32.xlu1 %v6900_v11, %s7048_s14 }
 0x7b3   : > { %v1897_v5 = vpop.permute.xlu1 %1896 }
 0x7b4   : > { %v1899_v49 = vmul.f32 %v1897_v5, %v1880_v21 }
 0x7b6   : > { %1902 = vrot.lane.b32.xlu2 %v1899_v49, %s7049_s16 }
 0x810   : > { %v1903_v1 = vpop.permute.xlu2 %1902 }
 0x811   : > { %v1904_v26 = vsel %vm1215_vm5, %v1903_v1, 0 }
 0x812   : > { %v1926_v4 = vand.u32 4294901760, %v1904_v26 }
 0x814   : > { %v1927_v15 = vsub.f32 %v1904_v26, %v1926_v4  ;;  %1972 = vmatmul.f32.vlgmr.msrb.gmra.mxu3 %v1926_v4 }
 0x815   : > { %2248 = vmatpush.msrb.mxu3 %v7307_v13 }
 0x816   : > { %v1928_v12 = vand.u32 4294901760, %v1927_v15  ;;  %2002 = vmatmul.f32.vlgmr.msrb.gmra.mxu0 %v1927_v15 }
 0x817   : > { %2250 = vmatpush.msrb.mxu3 %v7344_v27  ;;  %2277 = vmatpush.msrb.mxu0 %v7320_v16 }
 0x818   : > { %v1929_v17 = vsub.f32 %v1927_v15, %v1928_v12  ;;  %2029 = vmatmul.f32.vlgmr.msrb.gmra.mxu1 %v1928_v12 }
 0x819   : > { %2252 = vmatpush.msrb.mxu3 %v7385_v47  ;;  %2308 = vmatpush.msrb.mxu1 %v7307_v13 }
 0x81a   : > { %v1930_v9 = vand.u32 4294901760, %v1929_v17  ;;  %2281 = vmatpush.msrb.mxu0 %v7359_v33 }
 0x81b   : > { %2254 = vmatpush.msrb.mxu3 %v7428_v61  ;;  %2310 = vmatpush.msrb.mxu1 %v7344_v27 }
 0x81c   : > { %1931 = vmatmul.f32.vlgmr.msrb.gmra.mxu2 %v1930_v9  ;;  %2087 = vmatmul.f32.vlgmr.msra.gmra.mxu3 %v1926_v4 }
 0x81d   : > { %2219 = vmatpush.msrb.mxu2 %v7312_v14  ;;  %2312 = vmatpush.msrb.mxu1 %v7385_v47 }
 0x81e   : > { %2285 = vmatpush.msrb.mxu0 %v7400_v51  ;;  %2410 = vmatpush.msra.mxu3 %v7328_v19 }
 0x81f   : > { %2222 = vmatpush.msrb.mxu2 %v7351_v29  ;;  %2314 = vmatpush.msrb.mxu1 %v7428_v61 }
 0x820   : > { %2289 = vmatpush.msrb.mxu0 %v7444_v43  ;;  %2416 = vmatpush.msra.mxu3 %v7367_v37 }
 0x821   : > { %2225 = vmatpush.msrb.mxu2 %v7390_v48 }
 0x822   : > { %2422 = vmatpush.msra.mxu3 %v7410_v55 }
 0x823   : > { %2228 = vmatpush.msrb.mxu2 %v7433_v62 }
 0x824   : > { %2062 = vmatmul.f32.vlgmr.msra.gmra.mxu2 %v1926_v4  ;;  %2428 = vmatpush.msra.mxu3 %v7457_v2 }
 0x825   : > { %2377 = vmatpush.msra.mxu2 %v7307_v13 }
 0x827   : > { %2379 = vmatpush.msra.mxu2 %v7344_v27 }
 0x829   : > { %2381 = vmatpush.msra.mxu2 %v7385_v47 }
 0x82b   : > { %2383 = vmatpush.msra.mxu2 %v7428_v61 }
 0x893   : > { %v2003_v60 = vpop.f32.mrf.mxu0 }
 0x895   : > { %v2030_v10 = vpop.f32.mrf.mxu1 }
 0x897   : > { %v1973_v45 = vpop.f32.mrf.mxu3 }
 0x89f   : > { %v1932_v44 = vpop.f32.mrf.mxu2  ;;  %v2088_v21 = vpop.f32.mrf.mxu3 }
 0x8a0   : > { %v1974_v58 = vadd.f32 %v1973_v45, %v1932_v44 }
 0x8a2   : > { %v2004_v40 = vadd.f32 %v2003_v60, %v1974_v58 }
 0x8a4   : > { %v2031_v63 = vadd.f32 %v2030_v10, %v2004_v40 }
 0x8a7   : > { %v2063_v54 = vpop.f32.mrf.mxu2 }
 0x8a8   : > { %v2064_v22 = vadd.f32 %v2063_v54, %v2031_v63 }
 0x8aa   : > { %v2089_v20 = vadd.f32 %v2088_v21, %v2064_v22 }
 0x8ac   : > { %v2091_v31 = vadd.f32 %v2089_v20, %v7571_v25 }
 0x8ae   : > { %6901 = vtanh.f32 %v2091_v31  ;;  %v6819_v11 = vmul.f32 -1.442695, %v2091_v31 }
 0x8b0   : > { %6903 = vpow2.f32 %v6819_v11 }
 0x8b4   : > { %v6902_v46 = vpop.eup %6901 }
 0x8b5   : > { %2114 = vrot.lane.b32.xlu0 %v6902_v46, %s7048_s14 }
 0x8b6   : > { %v6904_v5 = vpop.eup %6903 }
 0x8b7   : > { %v2095_v49 = vadd.f32 1.0, %v6904_v5 }
 0x8b9   : > { %6905 = vrcp.f32 %v2095_v49  ;;  %v2107_v17 = vand.u32 2147483648, %v2095_v49  ;;  %vm2101_vm15 = vweird.f32 %v2095_v49  ;;  %v2105_v9 = vand.u32 2147483647, %v2095_v49 }
 0x8bb   : > { %v2108_v45 = vor.u32 1.1754944e-38, %v2107_v17  ;;  %vm2106_vm2 = vcmp.eq.f32.partialorder %v2105_v9, 8.507059e+37 }
 0x8bf   : > { %v6906_v1 = vpop.eup %6905 }
 0x8c0   : > { %v2097_v26 = vmul.f32 %v6906_v1, %v2095_v49  ;;  %vm2102_vm14 = vweird.f32 %v6906_v1 }
 0x8c1   : > { %vm2103_vm1 = vmor %vm2101_vm15, %vm2102_vm14 }
 0x8c2   : > { %v2098_v4 = vsub.f32 1.0, %v2097_v26 }
 0x8c4   : > { %v2099_v15 = vmul.f32 %v6906_v1, %v2098_v4 }
 0x8c6   : > { %v2100_v12 = vadd.f32 %v6906_v1, %v2099_v15 }
 0x8c8   : > { %v2104_v25 = vsel %vm2103_vm1, %v6906_v1, %v2100_v12 }
 0x8c9   : > { %v2109_v58 = vsel %vm2106_vm2, %v2108_v45, %v2104_v25 }
 0x8ca   : > { %v2112_v40 = vmul.f32 %v2109_v58, %v7722_v18 }
 0x927   : > { %v2115_v44 = vpop.permute.xlu0 %2114 }
 0x928   : > { %v2117_v60 = vmul.f32 %v2115_v44, %v2109_v58 }
 0x92a   : > { %2119 = vrot.lane.b32.xlu1 %v2117_v60, %s7049_s16 }
 0x99c   : > { %v2120_v10 = vpop.permute.xlu1 %2119 }
 0x99d   : > { %v7756_v63 = vadd.f32 %v2120_v10, %v2112_v40 }
 0x99f   : > { %6907 = vtanh.f32 %v7756_v63 }
 0x9a5   : > { %v6908_v54 = vpop.eup %6907 }
 0x9a6   : > { %2125 = vrot.lane.b32.xlu2 %v6908_v54, %s7048_s14 }
 0xa00   : > { %v2126_v22 = vpop.permute.xlu2 %2125 }
 0xa01   : > { %v2128_v21 = vmul.f32 %v2126_v22, %v2109_v58 }
 0xa03   : > { %2131 = vrot.lane.b32.xlu0 %v2128_v21, %s7049_s16 }
 0xa75   : > { %v2132_v20 = vpop.permute.xlu0 %2131 }
 0xa76   : > { %v2133_v31 = vsel %vm1215_vm5, %v2132_v20, 0 }
 0xa77   : > { %v2155_v46 = vand.u32 4294901760, %v2133_v31 }
 0xa79   : > { %v2156_v11 = vsub.f32 %v2133_v31, %v2155_v46  ;;  %2201 = vmatmul.f32.vlgmr.msra.gmra.mxu1 %v2155_v46 }
 0xa7a   : > { %2477 = vmatpush.msra.mxu1 %v7307_v13 }
 0xa7b   : > { %v2157_v18 = vand.u32 4294901760, %v2156_v11  ;;  %2231 = vmatmul.f32.vlgmr.msrb.gmra.mxu2 %v2156_v11 }
 0xa7c   : > { %2479 = vmatpush.msra.mxu1 %v7344_v27  ;;  %2506 = vmatpush.msrb.mxu2 %v7320_v16 }
 0xa7d   : > { %v2158_v5 = vsub.f32 %v2156_v11, %v2157_v18  ;;  %2258 = vmatmul.f32.vlgmr.msrb.gmra.mxu3 %v2157_v18 }
 0xa7e   : > { %2481 = vmatpush.msra.mxu1 %v7385_v47  ;;  %2537 = vmatpush.msrb.mxu3 %v7307_v13 }
 0xa7f   : > { %v2159_v49 = vand.u32 4294901760, %v2158_v5  ;;  %2510 = vmatpush.msrb.mxu2 %v7359_v33 }
 0xa80   : > { %2483 = vmatpush.msra.mxu1 %v7428_v61  ;;  %2539 = vmatpush.msrb.mxu3 %v7344_v27 }
 0xa81   : > { %2160 = vmatmul.f32.vlgmr.msra.gmra.mxu0 %v2159_v49  ;;  %2316 = vmatmul.f32.vlgmr.msrb.gmra.mxu1 %v2155_v46 }
 0xa82   : > { %2448 = vmatpush.msra.mxu0 %v7312_v14  ;;  %2541 = vmatpush.msrb.mxu3 %v7385_v47 }
 0xa83   : > { %2514 = vmatpush.msrb.mxu2 %v7400_v51  ;;  %2639 = vmatpush.msrb.mxu1 %v7328_v19 }
 0xa84   : > { %2451 = vmatpush.msra.mxu0 %v7351_v29  ;;  %2543 = vmatpush.msrb.mxu3 %v7428_v61 }
 0xa85   : > { %2518 = vmatpush.msrb.mxu2 %v7444_v43  ;;  %2645 = vmatpush.msrb.mxu1 %v7367_v37 }
 0xa86   : > { %2454 = vmatpush.msra.mxu0 %v7390_v48 }
 0xa87   : > { %2651 = vmatpush.msrb.mxu1 %v7410_v55 }
 0xa88   : > { %2457 = vmatpush.msra.mxu0 %v7433_v62 }
 0xa89   : > { %2291 = vmatmul.f32.vlgmr.msrb.gmra.mxu0 %v2155_v46  ;;  %2657 = vmatpush.msrb.mxu1 %v7457_v2 }
 0xa8a   : > { %2606 = vmatpush.msrb.mxu0 %v7307_v13 }
 0xa8c   : > { %2608 = vmatpush.msrb.mxu0 %v7344_v27 }
 0xa8e   : > { %2610 = vmatpush.msrb.mxu0 %v7385_v47 }
 0xa90   : > { %2612 = vmatpush.msrb.mxu0 %v7428_v61 }
 0xaf6   : > { %v2202_v1 = vpop.f32.mrf.mxu1 }
 0xafe   : > { %v2161_v26 = vpop.f32.mrf.mxu0  ;;  %v2232_v15 = vpop.f32.mrf.mxu2 }
 0xaff   : > { %v2203_v4 = vadd.f32 %v2202_v1, %v2161_v26  ;;  %v2317_v44 = vpop.f32.mrf.mxu1 }
 0xb00   : > { %v2259_v17 = vpop.f32.mrf.mxu3 }
 0xb01   : > { %v2233_v12 = vadd.f32 %v2232_v15, %v2203_v4 }
 0xb03   : > { %v2260_v9 = vadd.f32 %v2259_v17, %v2233_v12 }
 0xb06   : > { %v2292_v25 = vpop.f32.mrf.mxu0 }
 0xb07   : > { %v2293_v45 = vadd.f32 %v2292_v25, %v2260_v9 }
 0xb09   : > { %v2318_v58 = vadd.f32 %v2317_v44, %v2293_v45 }
 0xb0b   : > { %v2320_v60 = vadd.f32 %v2318_v58, %v7579_v28 }
 0xb0d   : > { %6909 = vtanh.f32 %v2320_v60  ;;  %v6820_v10 = vmul.f32 -1.442695, %v2320_v60 }
 0xb0f   : > { %6911 = vpow2.f32 %v6820_v10 }
 0xb13   : > { %v6910_v40 = vpop.eup %6909 }
 0xb14   : > { %2343 = vrot.lane.b32.xlu1 %v6910_v40, %s7048_s14 }
 0xb15   : > { %v6912_v54 = vpop.eup %6911 }
 0xb16   : > { %v2324_v22 = vadd.f32 1.0, %v6912_v54 }
 0xb18   : > { %6913 = vrcp.f32 %v2324_v22  ;;  %v2336_v18 = vand.u32 2147483648, %v2324_v22  ;;  %vm2330_vm4 = vweird.f32 %v2324_v22  ;;  %v2334_v5 = vand.u32 2147483647, %v2324_v22 }
 0xb1a   : > { %v2337_v49 = vor.u32 1.1754944e-38, %v2336_v18  ;;  %vm2335_vm7 = vcmp.eq.f32.partialorder %v2334_v5, 8.507059e+37 }
 0xb1e   : > { %v6914_v21 = vpop.eup %6913 }
 0xb1f   : > { %v2326_v20 = vmul.f32 %v6914_v21, %v2324_v22  ;;  %vm2331_vm3 = vweird.f32 %v6914_v21 }
 0xb20   : > { %vm2332_vm6 = vmor %vm2330_vm4, %vm2331_vm3 }
 0xb21   : > { %v2327_v31 = vsub.f32 1.0, %v2326_v20 }
 0xb23   : > { %v2328_v46 = vmul.f32 %v6914_v21, %v2327_v31 }
 0xb25   : > { %v2329_v11 = vadd.f32 %v6914_v21, %v2328_v46 }
 0xb27   : > { %v2333_v28 = vsel %vm2332_vm6, %v6914_v21, %v2329_v11 }
 0xb28   : > { %v2338_v26 = vsel %vm2335_vm7, %v2337_v49, %v2333_v28 }
 0xb29   : > { %v2341_v15 = vmul.f32 %v2338_v26, %v7756_v63 }
 0xb86   : > { %v2344_v1 = vpop.permute.xlu1 %2343 }
 0xb87   : > { %v2346_v4 = vmul.f32 %v2344_v1, %v2338_v26 }
 0xb89   : > { %2348 = vrot.lane.b32.xlu2 %v2346_v4, %s7049_s16 }
 0xbe3   : > { %v2349_v12 = vpop.permute.xlu2 %2348 }
 0xbe4   : > { %v7790_v17 = vadd.f32 %v2349_v12, %v2341_v15 }
 0xbe6   : > { %6915 = vtanh.f32 %v7790_v17 }
 0xbec   : > { %v6916_v9 = vpop.eup %6915 }
 0xbed   : > { %2354 = vrot.lane.b32.xlu0 %v6916_v9, %s7048_s14 }
 0xc5f   : > { %v2355_v25 = vpop.permute.xlu0 %2354 }
 0xc60   : > { %v2357_v45 = vmul.f32 %v2355_v25, %v2338_v26 }
 0xc62   : > { %2360 = vrot.lane.b32.xlu1 %v2357_v45, %s7049_s16 }
 0xcd4   : > { %v2361_v44 = vpop.permute.xlu1 %2360 }
 0xcd5   : > { %v2362_v58 = vsel %vm1215_vm5, %v2361_v44, 0 }
 0xcd6   : > { %v2384_v60 = vand.u32 4294901760, %v2362_v58 }
 0xcd8   : > { %v2385_v40 = vsub.f32 %v2362_v58, %v2384_v60  ;;  %2430 = vmatmul.f32.vlgmr.msra.gmra.mxu3 %v2384_v60 }
 0xcd9   : > { %2706 = vmatpush.msra.mxu3 %v7307_v13 }
 0xcda   : > { %v2386_v63 = vand.u32 4294901760, %v2385_v40  ;;  %2460 = vmatmul.f32.vlgmr.msra.gmra.mxu0 %v2385_v40 }
 0xcdb   : > { %2708 = vmatpush.msra.mxu3 %v7344_v27  ;;  %2735 = vmatpush.msra.mxu0 %v7320_v16 }
 0xcdc   : > { %v2387_v10 = vsub.f32 %v2385_v40, %v2386_v63  ;;  %2487 = vmatmul.f32.vlgmr.msra.gmra.mxu1 %v2386_v63 }
 0xcdd   : > { %2710 = vmatpush.msra.mxu3 %v7385_v47  ;;  %2766 = vmatpush.msra.mxu1 %v7307_v13 }
 0xcde   : > { %v2388_v54 = vand.u32 4294901760, %v2387_v10  ;;  %2739 = vmatpush.msra.mxu0 %v7359_v33 }
 0xcdf   : > { %2712 = vmatpush.msra.mxu3 %v7428_v61  ;;  %2768 = vmatpush.msra.mxu1 %v7344_v27 }
 0xce0   : > { %2389 = vmatmul.f32.vlgmr.msra.gmra.mxu2 %v2388_v54  ;;  %2545 = vmatmul.f32.vlgmr.msrb.gmra.mxu3 %v2384_v60 }
 0xce1   : > { %2677 = vmatpush.msra.mxu2 %v7312_v14  ;;  %2770 = vmatpush.msra.mxu1 %v7385_v47 }
 0xce2   : > { %2743 = vmatpush.msra.mxu0 %v7400_v51  ;;  %2868 = vmatpush.msrb.mxu3 %v7328_v19  ;;  %v560_v19 = vadd.f32 %v7415_v56, %v7417_v57 }
 0xce3   : > { %2680 = vmatpush.msra.mxu2 %v7351_v29  ;;  %2772 = vmatpush.msra.mxu1 %v7428_v61 }
 0xce4   : > { %2747 = vmatpush.msra.mxu0 %v7444_v43  ;;  %2874 = vmatpush.msrb.mxu3 %v7367_v37  ;;  %v617_v37 = vadd.f32 %v7396_v50, %v560_v19  ;;  %v7829_v50 = vld [vmem:[%s8722_s4] ss:$0 sm:$0xff] }
 0xce5   : > { %2683 = vmatpush.msra.mxu2 %v7390_v48 }
 0xce6   : > { %2880 = vmatpush.msrb.mxu3 %v7410_v55  ;;  %v681_v21 = vadd.f32 %v7405_v23, %v617_v37 }
 0xce7   : > { %2686 = vmatpush.msra.mxu2 %v7433_v62 }
 0xce8   : > { %2520 = vmatmul.f32.vlgmr.msrb.gmra.mxu2 %v2384_v60  ;;  %2886 = vmatpush.msrb.mxu3 %v7457_v2  ;;  %v737_v2 = vadd.f32 %v7583_v38, %v681_v21 }
 0xce9   : > { %2835 = vmatpush.msrb.mxu2 %v7307_v13 }
 0xcea   : > { %v787_v18 = vadd.f32 %v7581_v52, %v737_v2 }
 0xceb   : > { %2837 = vmatpush.msrb.mxu2 %v7344_v27 }
 0xcec   : > { %v1169_v56 = vadd.f32 %v7829_v50, %v787_v18 }
 0xced   : > { %2839 = vmatpush.msrb.mxu2 %v7385_v47 }
 0xcef   : > { %2841 = vmatpush.msrb.mxu2 %v7428_v61 }
 0xd57   : > { %v2461_v31 = vpop.f32.mrf.mxu0 }
 0xd59   : > { %v2488_v11 = vpop.f32.mrf.mxu1 }
 0xd5b   : > { %v2431_v22 = vpop.f32.mrf.mxu3 }
 0xd63   : > { %v2390_v55 = vpop.f32.mrf.mxu2  ;;  %v2546_v1 = vpop.f32.mrf.mxu3 }
 0xd64   : > { %v2432_v20 = vadd.f32 %v2431_v22, %v2390_v55 }
 0xd66   : > { %v2462_v46 = vadd.f32 %v2461_v31, %v2432_v20 }
 0xd68   : > { %v2489_v5 = vadd.f32 %v2488_v11, %v2462_v46 }
 0xd6b   : > { %v2521_v28 = vpop.f32.mrf.mxu2 }
 0xd6c   : > { %v2522_v49 = vadd.f32 %v2521_v28, %v2489_v5 }
 0xd6e   : > { %v2547_v23 = vadd.f32 %v2546_v1, %v2522_v49 }
 0xd70   : > { %v2549_v57 = vadd.f32 %v2547_v23, %v1169_v56 }
 0xd72   : > { %6917 = vtanh.f32 %v2549_v57  ;;  %v6821_v38 = vmul.f32 -1.442695, %v2549_v57 }
 0xd74   : > { %6919 = vpow2.f32 %v6821_v38 }
 0xd78   : > { %v6918_v26 = vpop.eup %6917 }
 0xd79   : > { %2572 = vrot.lane.b32.xlu2 %v6918_v26, %s7048_s14 }
 0xd7a   : > { %v6920_v52 = vpop.eup %6919 }
 0xd7b   : > { %v2553_v4 = vadd.f32 1.0, %v6920_v52 }
 0xd7d   : > { %6921 = vrcp.f32 %v2553_v4  ;;  %v2565_v44 = vand.u32 2147483648, %v2553_v4  ;;  %vm2559_vm9 = vweird.f32 %v2553_v4  ;;  %v2563_v58 = vand.u32 2147483647, %v2553_v4 }
 0xd7f   : > { %v2566_v40 = vor.u32 1.1754944e-38, %v2565_v44  ;;  %vm2564_vm11 = vcmp.eq.f32.partialorder %v2563_v58, 8.507059e+37 }
 0xd83   : > { %v6922_v15 = vpop.eup %6921 }
 0xd84   : > { %v2555_v12 = vmul.f32 %v6922_v15, %v2553_v4  ;;  %vm2560_vm8 = vweird.f32 %v6922_v15 }
 0xd85   : > { %vm2561_vm10 = vmor %vm2559_vm9, %vm2560_vm8 }
 0xd86   : > { %v2556_v9 = vsub.f32 1.0, %v2555_v12 }
 0xd88   : > { %v2557_v25 = vmul.f32 %v6922_v15, %v2556_v9 }
 0xd8a   : > { %v2558_v45 = vadd.f32 %v6922_v15, %v2557_v25 }
 0xd8c   : > { %v2562_v60 = vsel %vm2561_vm10, %v6922_v15, %v2558_v45 }
 0xd8d   : > { %v2567_v10 = vsel %vm2564_vm11, %v2566_v40, %v2562_v60 }
 0xd8e   : > { %v2570_v19 = vmul.f32 %v2567_v10, %v7790_v17 }
 0xdd3   : > { %v2573_v63 = vpop.permute.xlu2 %2572 }
 0xdd4   : > { %v2575_v54 = vmul.f32 %v2573_v63, %v2567_v10 }
 0xdd6   : > { %2577 = vrot.lane.b32.xlu0 %v2575_v54, %s7049_s16 }
 0xe48   : > { %v2578_v37 = vpop.permute.xlu0 %2577 }
 0xe49   : > { %v7835_v22 = vadd.f32 %v2578_v37, %v2570_v19 }
 0xe4b   : > { %6923 = vtanh.f32 %v7835_v22 }
 0xe51   : > { %v6924_v55 = vpop.eup %6923 }
 0xe52   : > { %2583 = vrot.lane.b32.xlu1 %v6924_v55, %s7048_s14 }
 0xec4   : > { %v2584_v21 = vpop.permute.xlu1 %2583 }
 0xec5   : > { %v2586_v20 = vmul.f32 %v2584_v21, %v2567_v10 }
 0xec7   : > { %2589 = vrot.lane.b32.xlu2 %v2586_v20, %s7049_s16 }
 0xf21   : > { %v2590_v31 = vpop.permute.xlu2 %2589 }
 0xf22   : > { %v2591_v2 = vsel %vm1215_vm5, %v2590_v31, 0 }
 0xf23   : > { %v2613_v46 = vand.u32 4294901760, %v2591_v2 }
 0xf25   : > { %v2614_v11 = vsub.f32 %v2591_v2, %v2613_v46  ;;  %2659 = vmatmul.f32.vlgmr.msrb.gmra.mxu1 %v2613_v46  ;;  %v568_v2 = vadd.f32 %v7461_v6, %v7469_v30 }
 0xf26   : > { %2935 = vmatpush.msrb.mxu1 %v7307_v13 }
 0xf27   : > { %v2615_v17 = vand.u32 4294901760, %v2614_v11  ;;  %2689 = vmatmul.f32.vlgmr.msra.gmra.mxu2 %v2614_v11 }
 0xf28   : > { %2937 = vmatpush.msrb.mxu1 %v7344_v27  ;;  %2964 = vmatpush.msra.mxu2 %v7320_v16 }
 0xf29   : > { %v2616_v18 = vsub.f32 %v2614_v11, %v2615_v17  ;;  %2716 = vmatmul.f32.vlgmr.msra.gmra.mxu3 %v2615_v17 }
 0xf2a   : > { %2939 = vmatpush.msrb.mxu1 %v7385_v47  ;;  %2995 = vmatpush.msra.mxu3 %v7307_v13  ;;  %v564_v13 = vadd.f32 %v7430_v24, %v7439_v39 }
 0xf2b   : > { %v2617_v5 = vand.u32 4294901760, %v2616_v18  ;;  %2968 = vmatpush.msra.mxu2 %v7359_v33 }
 0xf2c   : > { %2941 = vmatpush.msrb.mxu1 %v7428_v61  ;;  %2997 = vmatpush.msra.mxu3 %v7344_v27 }
 0xf2d   : > { %2618 = vmatmul.f32.vlgmr.msrb.gmra.mxu0 %v2617_v5  ;;  %2774 = vmatmul.f32.vlgmr.msra.gmra.mxu1 %v2613_v46 }
 0xf2e   : > { %2906 = vmatpush.msrb.mxu0 %v7312_v14  ;;  %2999 = vmatpush.msra.mxu3 %v7385_v47  ;;  %v622_v14 = vadd.f32 %v7420_v32, %v564_v13 }
 0xf2f   : > { %2972 = vmatpush.msra.mxu2 %v7400_v51 }
 0xf30   : > { %2909 = vmatpush.msrb.mxu0 %v7351_v29  ;;  %3001 = vmatpush.msra.mxu3 %v7428_v61  ;;  %v687_v33 = vadd.f32 %v7422_v59, %v622_v14 }
 0xf31   : > { %2976 = vmatpush.msra.mxu2 %v7444_v43 }
 0xf32   : > { %2912 = vmatpush.msrb.mxu0 %v7390_v48  ;;  %v741_v51 = vadd.f32 %v7591_v42, %v687_v33 }
 0xf34   : > { %2915 = vmatpush.msrb.mxu0 %v7433_v62  ;;  %v791_v48 = vadd.f32 %v7589_v41, %v741_v51 }
 0xf35   : > { %2749 = vmatmul.f32.vlgmr.msra.gmra.mxu0 %v2613_v46  ;;  %v627_v46 = vadd.f32 %v7448_v0, %v568_v2 }
 0xf36   : > { %v1170_v24 = vadd.f32 %v7829_v50, %v791_v48 }
 0xf37   : > { %v693_v18 = vadd.f32 %v7455_v34, %v627_v46 }
 0xf39   : > { %v745_v14 = vadd.f32 %v7599_v3, %v693_v18 }
 0xf3b   : > { %v795_v33 = vadd.f32 %v7597_v53, %v745_v14 }
 0xf3d   : > { %v1171_v6 = vadd.f32 %v7829_v50, %v795_v33 }
 0xfa2   : > { %v2660_v16 = vpop.f32.mrf.mxu1 }
 0xfaa   : > { %v2619_v27 = vpop.f32.mrf.mxu0  ;;  %v2690_v29 = vpop.f32.mrf.mxu2 }
 0xfab   : > { %v2661_v47 = vadd.f32 %v2660_v16, %v2619_v27  ;;  %v2775_v1 = vpop.f32.mrf.mxu1 }
 0xfac   : > { %v2717_v43 = vpop.f32.mrf.mxu3 }
 0xfad   : > { %v2691_v61 = vadd.f32 %v2690_v29, %v2661_v47 }
 0xfaf   : > { %v2718_v28 = vadd.f32 %v2717_v43, %v2691_v61 }
 0xfb2   : > { %v2750_v62 = vpop.f32.mrf.mxu0 }
 0xfb3   : > { %v2751_v49 = vadd.f32 %v2750_v62, %v2718_v28 }
 0xfb5   : > { %v2776_v39 = vadd.f32 %v2775_v1, %v2751_v49 }
 0xfb7   : > { %v2778_v32 = vadd.f32 %v2776_v39, %v1170_v24 }
 0xfb9   : > { %6925 = vtanh.f32 %v2778_v32  ;;  %v6822_v59 = vmul.f32 -1.442695, %v2778_v32 }
 0xfbb   : > { %6927 = vpow2.f32 %v6822_v59 }
 0xfbf   : > { %v6926_v56 = vpop.eup %6925 }
 0xfc0   : > { %2801 = vrot.lane.b32.xlu0 %v6926_v56, %s7048_s14 }
 0xfc1   : > { %v6928_v23 = vpop.eup %6927 }
 0xfc2   : > { %v2782_v42 = vadd.f32 1.0, %v6928_v23 }
 0xfc4   : > { %6929 = vrcp.f32 %v2782_v42  ;;  %v2794_v4 = vand.u32 2147483648, %v2782_v42  ;;  %vm2788_vm13 = vweird.f32 %v2782_v42  ;;  %v2792_v15 = vand.u32 2147483647, %v2782_v42 }
 0xfc6   : > { %v2795_v9 = vor.u32 1.1754944e-38, %v2794_v4  ;;  %vm2793_vm15 = vcmp.eq.f32.partialorder %v2792_v15, 8.507059e+37 }
 0xfca   : > { %v6930_v57 = vpop.eup %6929 }
 0xfcb   : > { %v2784_v26 = vmul.f32 %v6930_v57, %v2782_v42  ;;  %vm2789_vm12 = vweird.f32 %v6930_v57 }
 0xfcc   : > { %vm2790_vm14 = vmor %vm2788_vm13, %vm2789_vm12 }
 0xfcd   : > { %v2785_v41 = vsub.f32 1.0, %v2784_v26 }
 0xfcf   : > { %v2786_v38 = vmul.f32 %v6930_v57, %v2785_v41 }
 0xfd1   : > { %v2787_v52 = vadd.f32 %v6930_v57, %v2786_v38  ;;  %v1210_v38 = vld [vmem:[%s8723_s5 + $0x30] sm:$0xff] }
 0xfd2   : > { %v7893_v4 = vand.u32 4294901760, %v1210_v38 }
 0xfd3   : > { %v2791_v12 = vsel %vm2790_vm14, %v6930_v57, %v2787_v52  ;;  %v1208_v52 = vld [vmem:[%s8723_s5 + $0x20] sm:$0xff] }
 0xfd4   : > { %v2796_v45 = vsel %vm2793_vm15, %v2795_v9, %v2791_v12  ;;  %v7895_v15 = vand.u32 4294901760, %v1208_v52  ;;  %v7898_v12 = vsub.f32 %v1210_v38, %v7893_v4  ;;  %3063 = vmatpush.msra.mxu0 %v7893_v4 }
 0xfd5   : > { %v2799_v58 = vmul.f32 %v2796_v45, %v7835_v22 }
 0xfd6   : > { %v7901_v9 = vsub.f32 %v1208_v52, %v7895_v15  ;;  %3065 = vmatpush.msra.mxu0 %v7895_v15 }
0x1032   : > { %v2802_v25 = vpop.permute.xlu0 %2801 }
0x1033   : > { %v2804_v44 = vmul.f32 %v2802_v25, %v2796_v45  ;;  %v7906_v25 = vand.u32 4294901760, %v7898_v12 }
0x1035   : > { %2806 = vrot.lane.b32.xlu1 %v2804_v44, %s7049_s16  ;;  %v3094_v44 = vsub.f32 %v7898_v12, %v7906_v25 }
0x10a7   : > { %v2807_v60 = vpop.permute.xlu1 %2806 }
0x10a8   : > { %v7867_v40 = vadd.f32 %v2807_v60, %v2799_v58  ;;  %v7919_v60 = vand.u32 4294901760, %v3094_v44 }
0x10aa   : > { %6931 = vtanh.f32 %v7867_v40  ;;  %3096 = vmatpush.msra.mxu1 %v7919_v60 }
0x10b0   : > { %v6932_v63 = vpop.eup %6931 }
0x10b1   : > { %2812 = vrot.lane.b32.xlu2 %v6932_v63, %s7048_s14 }
0x110b   : > { %v2813_v10 = vpop.permute.xlu2 %2812 }
0x110c   : > { %v2815_v54 = vmul.f32 %v2813_v10, %v2796_v45  ;;  %v7909_v45 = vand.u32 4294901760, %v7901_v9 }
0x110e   : > { %2818 = vrot.lane.b32.xlu0 %v2815_v54, %s7049_s16  ;;  %v3100_v58 = vsub.f32 %v7901_v9, %v7909_v45  ;;  %v1206_v54 = vld [vmem:[%s8723_s5 + $0x10] sm:$0xff] }
0x1180   : > { %v2819_v19 = vpop.permute.xlu0 %2818 }
0x1181   : > { %v2820_v37 = vsel %vm1215_vm5, %v2819_v19, 0  ;;  %v7929_v19 = vand.u32 4294901760, %v1206_v54 }
0x1182   : > { %v2842_v55 = vand.u32 4294901760, %v2820_v37 }
0x1183   : > { %3067 = vmatpush.msra.mxu0 %v7929_v19 }
0x1184   : > { %v2843_v21 = vsub.f32 %v2820_v37, %v2842_v55  ;;  %2888 = vmatmul.f32.vlgmr.msrb.gmra.mxu3 %v2842_v55  ;;  %v1204_v37 = vld [vmem:[%s8723_s5] sm:$0xff] }
0x1185   : > { %3163 = vmatpush.msrb.mxu3 %v7893_v4 }
0x1186   : > { %v2844_v20 = vand.u32 4294901760, %v2843_v21  ;;  %2918 = vmatmul.f32.vlgmr.msrb.gmra.mxu0 %v2843_v21 }
0x1187   : > { %3165 = vmatpush.msrb.mxu3 %v7895_v15 }
0x1188   : > { %v2845_v22 = vsub.f32 %v2843_v21, %v2844_v20  ;;  %2945 = vmatmul.f32.vlgmr.msrb.gmra.mxu1 %v2844_v20  ;;  %v7937_v21 = vand.u32 4294901760, %v1204_v37 }
0x1189   : > { %3167 = vmatpush.msrb.mxu3 %v7929_v19 }
0x118a   : > { %v2846_v31 = vand.u32 4294901760, %v2845_v22  ;;  %v7945_v22 = vsub.f32 %v1204_v37, %v7937_v21  ;;  %3069 = vmatpush.msra.mxu0 %v7937_v21 }
0x118b   : > { %3169 = vmatpush.msrb.mxu3 %v7937_v21 }
0x118c   : > { %2847 = vmatmul.f32.vlgmr.msrb.gmra.mxu2 %v2846_v31  ;;  %3003 = vmatmul.f32.vlgmr.msra.gmra.mxu3 %v2842_v55  ;;  %v7954_v2 = vand.u32 4294901760, %v7945_v22 }
0x118d   : > { %3134 = vmatpush.msrb.mxu2 %v7898_v12  ;;  %3329 = vmatpush.msra.mxu3 %v7919_v60 }
0x118e   : > { %3192 = vmatpush.msrb.mxu0 %v7906_v25 }
0x118f   : > { %3137 = vmatpush.msrb.mxu2 %v7901_v9 }
0x1190   : > { %3196 = vmatpush.msrb.mxu0 %v7909_v45 }
0x1194   : > { %2978 = vmatmul.f32.vlgmr.msra.gmra.mxu2 %v2842_v55  ;;  %v7935_v55 = vsub.f32 %v1206_v54, %v7929_v19 }
0x1196   : > { %v7942_v20 = vand.u32 4294901760, %v7935_v55  ;;  %3140 = vmatpush.msrb.mxu2 %v7935_v55 }
0x1198   : > { %v3106_v31 = vsub.f32 %v7935_v55, %v7942_v20  ;;  %3143 = vmatpush.msrb.mxu2 %v7945_v22  ;;  %3200 = vmatpush.msrb.mxu0 %v7942_v20 }
0x119a   : > { %3296 = vmatpush.msra.mxu2 %v7893_v4  ;;  %v7960_v46 = vand.u32 4294901760, %v3106_v31  ;;  %3204 = vmatpush.msrb.mxu0 %v7954_v2 }
0x119c   : > { %3298 = vmatpush.msra.mxu2 %v7895_v15 }
0x119e   : > { %3300 = vmatpush.msra.mxu2 %v7929_v19 }
0x11a0   : > { %3302 = vmatpush.msra.mxu2 %v7937_v21 }
0x1203   : > { %v2919_v13 = vpop.f32.mrf.mxu0 }
0x1205   : > { %v2946_v27 = vpop.f32.mrf.mxu1 }
0x1207   : > { %v2889_v11 = vpop.f32.mrf.mxu3 }
0x120f   : > { %v2848_v17 = vpop.f32.mrf.mxu2  ;;  %v3004_v61 = vpop.f32.mrf.mxu3 }
0x1210   : > { %v2890_v5 = vadd.f32 %v2889_v11, %v2848_v17  ;;  %v3112_v11 = vsub.f32 %v7945_v22, %v7954_v2 }
0x1212   : > { %v2920_v16 = vadd.f32 %v2919_v13, %v2890_v5  ;;  %v7967_v17 = vand.u32 4294901760, %v3112_v11  ;;  %v1211_v11 = vld [vmem:[%s8723_s5 + $0x38] sm:$0xff] }
0x1214   : > { %v2947_v47 = vadd.f32 %v2946_v27, %v2920_v16 }
0x1217   : > { %v2979_v29 = vpop.f32.mrf.mxu2 }
0x1218   : > { %v2980_v51 = vadd.f32 %v2979_v29, %v2947_v47 }
0x121a   : > { %v3005_v30 = vadd.f32 %v3004_v61, %v2980_v51 }
0x121c   : > { %v3007_v0 = vadd.f32 %v3005_v30, %v1171_v6 }
0x121e   : > { %6933 = vtanh.f32 %v3007_v0  ;;  %v6823_v34 = vmul.f32 -1.442695, %v3007_v0 }
0x1220   : > { %6935 = vpow2.f32 %v6823_v34 }
0x1224   : > { %v6934_v43 = vpop.eup %6933 }
0x1225   : > { %3030 = vrot.lane.b32.xlu1 %v6934_v43, %s7048_s14 }
0x1226   : > { %v6936_v48 = vpop.eup %6935 }
0x1227   : > { %v3011_v3 = vadd.f32 1.0, %v6936_v48  ;;  %v6874_v48 = vld [vmem:[%s8724_s6] ss:$0 sm:$0xff] }
0x1229   : > { %6937 = vrcp.f32 %v3011_v3  ;;  %v3023_v24 = vand.u32 2147483648, %v3011_v3  ;;  %vm3017_vm2 = vweird.f32 %v3011_v3  ;;  %v3021_v50 = vand.u32 2147483647, %v3011_v3 }
0x122b   : > { %v3024_v32 = vor.u32 1.1754944e-38, %v3023_v24  ;;  %vm3022_vm4 = vcmp.eq.f32.partialorder %v3021_v50, 8.507059e+37 }
0x122f   : > { %v6938_v28 = vpop.eup %6937 }
0x1230   : > { %v3013_v62 = vmul.f32 %v6938_v28, %v3011_v3  ;;  %vm3018_vm1 = vweird.f32 %v6938_v28 }
0x1231   : > { %vm3019_vm3 = vmor %vm3017_vm2, %vm3018_vm1 }
0x1232   : > { %v3014_v53 = vsub.f32 1.0, %v3013_v62 }
0x1234   : > { %v3015_v49 = vmul.f32 %v6938_v28, %v3014_v53 }
0x1236   : > { %v3016_v1 = vadd.f32 %v6938_v28, %v3015_v49 }
0x1238   : > { %v3020_v39 = vsel %vm3019_vm3, %v6938_v28, %v3016_v1 }
0x1239   : > { %v3025_v59 = vsel %vm3022_vm4, %v3024_v32, %v3020_v39 }
0x123a   : > { %v3028_v42 = vmul.f32 %v3025_v59, %v7867_v40  ;;  %v7921_v40 = vand.u32 4294901760, %v3100_v58 }
0x123c   : > { %3102 = vmatpush.msra.mxu1 %v7921_v40  ;;  %3335 = vmatpush.msra.mxu3 %v7921_v40 }
0x123e   : > { %3108 = vmatpush.msra.mxu1 %v7960_v46  ;;  %3341 = vmatpush.msra.mxu3 %v7960_v46 }
0x1240   : > { %3114 = vmatpush.msra.mxu1 %v7967_v17  ;;  %3347 = vmatpush.msra.mxu3 %v7967_v17 }
0x1242   : > { %3223 = vmatpush.msrb.mxu1 %v7893_v4 }
0x1244   : > { %3225 = vmatpush.msrb.mxu1 %v7895_v15 }
0x1246   : > { %3227 = vmatpush.msrb.mxu1 %v7929_v19 }
0x1248   : > { %3229 = vmatpush.msrb.mxu1 %v7937_v21 }
0x1297   : > { %v3031_v56 = vpop.permute.xlu1 %3030 }
0x1298   : > { %v3033_v23 = vmul.f32 %v3031_v56, %v3025_v59 }
0x129a   : > { %3035 = vrot.lane.b32.xlu2 %v3033_v23, %s7049_s16 }
0x12f4   : > { %v3036_v57 = vpop.permute.xlu2 %3035 }
0x12f5   : > { %v7883_v26 = vadd.f32 %v3036_v57, %v3028_v42 }
0x12f7   : > { %6939 = vtanh.f32 %v7883_v26 }
0x12fd   : > { %v6940_v41 = vpop.eup %6939 }
0x12fe   : > { %3041 = vrot.lane.b32.xlu0 %v6940_v41, %s7048_s14 }
0x1370   : > { %v3042_v63 = vpop.permute.xlu0 %3041 }
0x1371   : > { %v3044_v10 = vmul.f32 %v3042_v63, %v3025_v59 }
0x1373   : > { %3046 = vrot.lane.b32.xlu1 %v3044_v10, %s7049_s16 }
0x13e5   : > { %v3047_v18 = vpop.permute.xlu1 %3046 }
0x13e6   : > { %v3048_v5 = vsel %vm1215_vm5, %v3047_v18, 0  ;;  %v8011_v18 = vand.u32 4294901760, %v1211_v11 }
0x13e7   : > { %v3070_v13 = vand.u32 4294901760, %v3048_v5 }
0x13e9   : > { %v3071_v14 = vsub.f32 %v3048_v5, %v3070_v13  ;;  %3116 = vmatmul.f32.vlgmr.msra.gmra.mxu1 %v3070_v13 }
0x13ea   : > { %3396 = vmatpush.msra.mxu1 %v7893_v4 }
0x13eb   : > { %v3072_v16 = vand.u32 4294901760, %v3071_v14  ;;  %3146 = vmatmul.f32.vlgmr.msrb.gmra.mxu2 %v3071_v14 }
0x13ec   : > { %3398 = vmatpush.msra.mxu1 %v7895_v15  ;;  %3425 = vmatpush.msrb.mxu2 %v7906_v25 }
0x13ed   : > { %v3073_v27 = vsub.f32 %v3071_v14, %v3072_v16  ;;  %3173 = vmatmul.f32.vlgmr.msrb.gmra.mxu3 %v3072_v16  ;;  %v1207_v14 = vld [vmem:[%s8723_s5 + $0x18] sm:$0xff] }
0x13ee   : > { %3400 = vmatpush.msra.mxu1 %v7929_v19  ;;  %3456 = vmatpush.msrb.mxu3 %v7893_v4 }
0x13ef   : > { %v3074_v33 = vand.u32 4294901760, %v3073_v27  ;;  %3429 = vmatpush.msrb.mxu2 %v7909_v45  ;;  %v8029_v27 = vand.u32 4294901760, %v1207_v14 }
0x13f0   : > { %3402 = vmatpush.msra.mxu1 %v7937_v21  ;;  %3458 = vmatpush.msrb.mxu3 %v7895_v15 }
0x13f1   : > { %3075 = vmatmul.f32.vlgmr.msra.gmra.mxu0 %v3074_v33  ;;  %3231 = vmatmul.f32.vlgmr.msrb.gmra.mxu1 %v3070_v13 }
0x13f2   : > { %3367 = vmatpush.msra.mxu0 %v7898_v12  ;;  %3460 = vmatpush.msrb.mxu3 %v7929_v19 }
0x13f3   : > { %3433 = vmatpush.msrb.mxu2 %v7942_v20 }
0x13f4   : > { %3370 = vmatpush.msra.mxu0 %v7901_v9  ;;  %3462 = vmatpush.msrb.mxu3 %v7937_v21 }
0x13f5   : > { %3437 = vmatpush.msrb.mxu2 %v7954_v2 }
0x13f6   : > { %3373 = vmatpush.msra.mxu0 %v7935_v55 }
0x13f8   : > { %3376 = vmatpush.msra.mxu0 %v7945_v22 }
0x13f9   : > { %3206 = vmatmul.f32.vlgmr.msrb.gmra.mxu0 %v3070_v13  ;;  %v8020_v13 = vsub.f32 %v1211_v11, %v8011_v18 }
0x13fa   : > { %3481 = vmatpush.msrb.mxu0 %v8011_v18 }
0x13fb   : > { %v8027_v16 = vand.u32 4294901760, %v8020_v13 }
0x1466   : > { %v3117_v47 = vpop.f32.mrf.mxu1 }
0x146e   : > { %v3076_v29 = vpop.f32.mrf.mxu0  ;;  %v3147_v61 = vpop.f32.mrf.mxu2 }
0x146f   : > { %v3118_v51 = vadd.f32 %v3117_v47, %v3076_v29  ;;  %v3232_v3 = vpop.f32.mrf.mxu1  ;;  %v1205_v47 = vld [vmem:[%s8723_s5 + $0x8] sm:$0xff]  ;;  %v3512_v29 = vsub.f32 %v8020_v13, %v8027_v16 }
0x1470   : > { %v3174_v30 = vpop.f32.mrf.mxu3 }
0x1471   : > { %v3148_v6 = vadd.f32 %v3147_v61, %v3118_v51  ;;  %v8043_v61 = vand.u32 4294901760, %v1205_v47 }
0x1473   : > { %v3175_v0 = vadd.f32 %v3174_v30, %v3148_v6  ;;  %v8046_v6 = vsub.f32 %v1207_v14, %v8029_v27  ;;  %v8048_v30 = vand.u32 4294901760, %v3512_v29 }
0x1475   : > { %3514 = vmatpush.msrb.mxu1 %v8048_v30 }
0x1476   : > { %v3207_v43 = vpop.f32.mrf.mxu0 }
0x1477   : > { %v3208_v34 = vadd.f32 %v3207_v43, %v3175_v0  ;;  %v8054_v43 = vand.u32 4294901760, %v8046_v6 }
0x1479   : > { %v3233_v28 = vadd.f32 %v3232_v3, %v3208_v34  ;;  %v8057_v34 = vsub.f32 %v1205_v47, %v8043_v61  ;;  %v3524_v3 = vsub.f32 %v8046_v6, %v8054_v43 }
0x147b   : > { %v3238_v62 = vadd.f32 %v6874_v48, %v3233_v28  ;;  %v8065_v28 = vand.u32 4294901760, %v8057_v34 }
0x147d   : > { %6941 = vtanh.f32 %v3238_v62  ;;  %v6824_v49 = vmul.f32 -1.442695, %v3238_v62  ;;  %v8068_v62 = vand.u32 4294901760, %v3524_v3 }
0x147f   : > { %6943 = vpow2.f32 %v6824_v49 }
0x1483   : > { %v6942_v53 = vpop.eup %6941 }
0x1484   : > { %3261 = vrot.lane.b32.xlu2 %v6942_v53, %s7048_s14  ;;  %v3530_v53 = vsub.f32 %v8057_v34, %v8065_v28 }
0x1485   : > { %v6944_v1 = vpop.eup %6943 }
0x1486   : > { %v3242_v24 = vadd.f32 1.0, %v6944_v1  ;;  %v8073_v49 = vand.u32 4294901760, %v3530_v53 }
0x1488   : > { %6945 = vrcp.f32 %v3242_v24  ;;  %v3254_v23 = vand.u32 2147483648, %v3242_v24  ;;  %vm3248_vm7 = vweird.f32 %v3242_v24  ;;  %v3252_v42 = vand.u32 2147483647, %v3242_v24 }
0x148a   : > { %v3255_v41 = vor.u32 1.1754944e-38, %v3254_v23  ;;  %vm3253_vm9 = vcmp.eq.f32.partialorder %v3252_v42, 8.507059e+37 }
0x148e   : > { %v6946_v50 = vpop.eup %6945 }
0x148f   : > { %v3244_v39 = vmul.f32 %v6946_v50, %v3242_v24  ;;  %vm3249_vm6 = vweird.f32 %v6946_v50 }
0x1490   : > { %vm3250_vm8 = vmor %vm3248_vm7, %vm3249_vm6 }
0x1491   : > { %v3245_v32 = vsub.f32 1.0, %v3244_v39 }
0x1493   : > { %v3246_v56 = vmul.f32 %v6946_v50, %v3245_v32 }
0x1495   : > { %v3247_v59 = vadd.f32 %v6946_v50, %v3246_v56 }
0x1497   : > { %v3251_v57 = vsel %vm3250_vm8, %v6946_v50, %v3247_v59 }
0x1498   : > { %v3256_v52 = vsel %vm3253_vm9, %v3255_v41, %v3251_v57 }
0x1499   : > { %v3259_v58 = vmul.f32 %v3256_v52, %v7883_v26  ;;  %v1209_v26 = vld [vmem:[%s8723_s5 + $0x28] sm:$0xff] }
0x149a   : > { %v8017_v5 = vand.u32 4294901760, %v1209_v26 }
0x149c   : > { %3483 = vmatpush.msrb.mxu0 %v8017_v5  ;;  %v8032_v33 = vsub.f32 %v1209_v26, %v8017_v5  ;;  %v8768_v26 = vld [vmem:[#allocation22_spill] sm:$0xff] }
0x149e   : > { %3485 = vmatpush.msrb.mxu0 %v8029_v27  ;;  %v8041_v51 = vand.u32 4294901760, %v8032_v33 }
0x14a0   : > { %v3518_v0 = vsub.f32 %v8032_v33, %v8041_v51  ;;  %3487 = vmatpush.msrb.mxu0 %v8043_v61 }
0x14a2   : > { %v8060_v48 = vand.u32 4294901760, %v3518_v0 }
0x14a4   : > { %3520 = vmatpush.msrb.mxu1 %v8060_v48 }
0x14a6   : > { %3526 = vmatpush.msrb.mxu1 %v8068_v62 }
0x14a8   : > { %3532 = vmatpush.msrb.mxu1 %v8073_v49 }
0x14de   : > { %v3262_v38 = vpop.permute.xlu2 %3261 }
0x14df   : > { %v3264_v44 = vmul.f32 %v3262_v38, %v3256_v52  ;;  %v903_v38 = vadd.f32 %v7480_v8, %v7475_v7  ;;  %v8769_v7 = vld [vmem:[#allocation23_spill] sm:$0xff] }
0x14e1   : > { %3266 = vrot.lane.b32.xlu0 %v3264_v44, %s7049_s16 }
0x1553   : > { %v3267_v63 = vpop.permute.xlu0 %3266 }
0x1554   : > { %v8003_v10 = vadd.f32 %v3267_v63, %v3259_v58 }
0x1556   : > { %6947 = vtanh.f32 %v8003_v10 }
0x155c   : > { %v6948_v54 = vpop.eup %6947 }
0x155d   : > { %3272 = vrot.lane.b32.xlu1 %v6948_v54, %s7048_s14 }
0x15cf   : > { %v3273_v37 = vpop.permute.xlu1 %3272 }
0x15d0   : > { %v3275_v31 = vmul.f32 %v3273_v37, %v3256_v52  ;;  %v955_v52 = vadd.f32 %v7607_v35, %v903_v38  ;;  %v8135_v35 = vld [vmem:[%s8724_s6] ss:$0 sm:$0xff] }
0x15d2   : > { %3277 = vrot.lane.b32.xlu2 %v3275_v31, %s7049_s16  ;;  %v1014_v37 = vadd.f32 %v7605_v36, %v955_v52 }
0x15d4   : > { %v1080_v14 = vadd.f32 %v8768_v26, %v1014_v37 }
0x15d6   : > { %v1130_v8 = vadd.f32 %v8769_v7, %v1080_v14 }
0x162c   : > { %v3278_v1 = vpop.permute.xlu2 %3277 }
0x162d   : > { %3280 = vst.msk [vmem:[#allocation4] sm:$0xff] %vm1215_vm5, %v3278_v1  ;;  %v3281_v24 = vsel %vm1215_vm5, %v3278_v1, 0 }
0x162e   : > { %v3303_v50 = vand.u32 4294901760, %v3281_v24 }
0x1630   : > { %v3304_v39 = vsub.f32 %v3281_v24, %v3303_v50  ;;  %3349 = vmatmul.f32.vlgmr.msra.gmra.mxu3 %v3303_v50 }
0x1631   : > { %3581 = vmatpush.msra.mxu3 %v8011_v18 }
0x1632   : > { %v3305_v32 = vand.u32 4294901760, %v3304_v39  ;;  %3379 = vmatmul.f32.vlgmr.msra.gmra.mxu0 %v3304_v39 }
0x1633   : > { %3583 = vmatpush.msra.mxu3 %v8017_v5  ;;  %3610 = vmatpush.msra.mxu0 %v8027_v16 }
0x1634   : > { %v3306_v56 = vsub.f32 %v3304_v39, %v3305_v32  ;;  %3406 = vmatmul.f32.vlgmr.msra.gmra.mxu1 %v3305_v32 }
0x1635   : > { %3585 = vmatpush.msra.mxu3 %v8029_v27  ;;  %3614 = vmatpush.msra.mxu0 %v8041_v51 }
0x1636   : > { %v3307_v59 = vand.u32 4294901760, %v3306_v56  ;;  %3641 = vmatpush.msra.mxu1 %v8011_v18  ;;  %v8140_v56 = vld [vmem:[%s8725_s7] ss:$0 sm:$0xff] }
0x1637   : > { %3587 = vmatpush.msra.mxu3 %v8043_v61  ;;  %3618 = vmatpush.msra.mxu0 %v8054_v43 }
0x1638   : > { %3308 = vmatmul.f32.vlgmr.msra.gmra.mxu2 %v3307_v59  ;;  %3464 = vmatmul.f32.vlgmr.msrb.gmra.mxu3 %v3303_v50 }
0x1639   : > { %3643 = vmatpush.msra.mxu1 %v8017_v5  ;;  %3552 = vmatpush.msra.mxu2 %v8020_v13 }
0x163a   : > { %3493 = vmatmul.f32.vlgmr.msrb.gmra.mxu0 %v3307_v59  ;;  %3753 = vmatpush.msrb.mxu3 %v7919_v60 }
0x163b   : > { %3622 = vmatpush.msra.mxu0 %v8065_v28  ;;  %3645 = vmatpush.msra.mxu1 %v8029_v27 }
0x163c   : > { %3534 = vmatmul.f32.vlgmr.msrb.gmra.mxu1 %v3303_v50  ;;  %3555 = vmatpush.msra.mxu2 %v8032_v33 }
0x163d   : > { %3647 = vmatpush.msra.mxu1 %v8043_v61  ;;  %3759 = vmatpush.msrb.mxu3 %v7921_v40 }
0x163e   : > { %3558 = vmatpush.msra.mxu2 %v8046_v6  ;;  %3791 = vmatpush.msrb.mxu0 %v7898_v12 }
0x163f   : > { %3765 = vmatpush.msrb.mxu3 %v7960_v46  ;;  %3820 = vmatpush.msrb.mxu1 %v7893_v4 }
0x1640   : > { %3439 = vmatmul.f32.vlgmr.msrb.gmra.mxu2 %v3303_v50  ;;  %3591 = vmatmul.f32.vlgmr.msra.gmra.mxu3 %v3305_v32  ;;  %v3654_v32 = vstv %s3653_s30 }
0x1641   : > { %3561 = vmatpush.msra.mxu2 %v8057_v34  ;;  %3794 = vmatpush.msrb.mxu0 %v7901_v9  ;;  %vm3655_vm10 = vcmp.ne.s32.totalorder %v3654_v32, 0 }
0x1642   : > { %3624 = vmatmul.f32.vlgmr.msra.gmra.mxu0 %v3303_v50  ;;  %3771 = vmatpush.msrb.mxu3 %v7967_v17 }
0x1643   : > { %3797 = vmatpush.msrb.mxu0 %v7935_v55  ;;  %3822 = vmatpush.msrb.mxu1 %v7895_v15 }
0x1644   : > { %3649 = vmatmul.f32.vlgmr.msra.gmra.mxu1 %v3303_v50  ;;  %3720 = vmatpush.msrb.mxu2 %v7893_v4 }
0x1645   : > { %3800 = vmatpush.msrb.mxu0 %v7945_v22  ;;  %3824 = vmatpush.msrb.mxu1 %v7929_v19 }
0x1646   : > { %3880 = vmatpush.msra.mxu3 %v7893_v4  ;;  %3722 = vmatpush.msrb.mxu2 %v7895_v15 }
0x1647   : > { %3826 = vmatpush.msrb.mxu1 %v7937_v21  ;;  %3905 = vmatpush.msra.mxu0 %v8011_v18 }
0x1648   : > { %3564 = vmatmul.f32.vlgmr.msra.gmra.mxu2 %v3304_v39  ;;  %3882 = vmatpush.msra.mxu3 %v7895_v15 }
0x1649   : > { %3724 = vmatpush.msrb.mxu2 %v7929_v19  ;;  %3907 = vmatpush.msra.mxu0 %v8017_v5 }
0x164a   : > { %3884 = vmatpush.msra.mxu3 %v7929_v19  ;;  %3938 = vmatpush.msra.mxu1 %v8048_v30 }
0x164b   : > { %3726 = vmatpush.msrb.mxu2 %v7937_v21  ;;  %3909 = vmatpush.msra.mxu0 %v8029_v27 }
0x164c   : > { %3886 = vmatpush.msra.mxu3 %v7937_v21  ;;  %3944 = vmatpush.msra.mxu1 %v8060_v48 }
0x164d   : > { %3849 = vmatpush.msra.mxu2 %v7906_v25  ;;  %3911 = vmatpush.msra.mxu0 %v8043_v61 }
0x164e   : > { %3950 = vmatpush.msra.mxu1 %v8068_v62 }
0x164f   : > { %3853 = vmatpush.msra.mxu2 %v7909_v45 }
0x1650   : > { %3956 = vmatpush.msra.mxu1 %v8073_v49 }
0x1651   : > { %3857 = vmatpush.msra.mxu2 %v7942_v20 }
0x1653   : > { %3861 = vmatpush.msra.mxu2 %v7954_v2 }
0x16af   : > { %v3380_v42 = vpop.f32.mrf.mxu0 }
0x16b1   : > { %v3407_v41 = vpop.f32.mrf.mxu1 }
0x16b3   : > { %v3350_v23 = vpop.f32.mrf.mxu3 }
0x16b7   : > { %v3494_v54 = vpop.f32.mrf.mxu0 }
0x16b9   : > { %v3535_v11 = vpop.f32.mrf.mxu1 }
0x16ba   : > { %v3536_v47 = vadd.f32 %v3535_v11, %v3494_v54 }
0x16bb   : > { %v3309_v57 = vpop.f32.mrf.mxu2  ;;  %v3465_v58 = vpop.f32.mrf.mxu3 }
0x16bc   : > { %v3351_v44 = vadd.f32 %v3350_v23, %v3309_v57  ;;  %v1184_v23 = vadd.f32 %v8135_v35, %v1130_v8 }
0x16be   : > { %v3381_v31 = vadd.f32 %v3380_v42, %v3351_v44 }
0x16bf   : > { %v3625_v36 = vpop.f32.mrf.mxu0 }
0x16c0   : > { %v3408_v29 = vadd.f32 %v3407_v41, %v3381_v31 }
0x16c1   : > { %v3650_v59 = vpop.f32.mrf.mxu1 }
0x16c3   : > { %v3440_v63 = vpop.f32.mrf.mxu2  ;;  %v3592_v1 = vpop.f32.mrf.mxu3 }
0x16c4   : > { %v3441_v3 = vadd.f32 %v3440_v63, %v3408_v29 }
0x16c6   : > { %v3466_v50 = vadd.f32 %v3465_v58, %v3441_v3 }
0x16c8   : > { %v3657_v57 = vadd.f32 %v3466_v50, %v1184_v23 }
0x16cb   : > { %v3565_v0 = vpop.f32.mrf.mxu2 }
0x16cc   : > { %v3566_v53 = vadd.f32 %v3565_v0, %v3536_v47 }
0x16ce   : > { %v3593_v24 = vadd.f32 %v3592_v1, %v3566_v53 }
0x16d0   : > { %v3626_v39 = vadd.f32 %v3625_v36, %v3593_v24 }
0x16d2   : > { %v3651_v42 = vadd.f32 %v3650_v59, %v3626_v39 }
0x16d4   : > { %v3661_v41 = vadd.f32 %v8140_v56, %v3651_v42 }
0x16d6   : > { %v3662_v38 = vsel %vm3655_vm10, %v3657_v57, %v3661_v41 }
0x16d7   : > { %6949 = vtanh.f32 %v3662_v38  ;;  %v6825_v44 = vmul.f32 -1.442695, %v3662_v38 }
0x16d9   : > { %6951 = vpow2.f32 %v6825_v44 }
0x16dd   : > { %v6950_v52 = vpop.eup %6949 }
0x16de   : > { %3685 = vrot.lane.b32.xlu0 %v6950_v52, %s7048_s14 }
0x16df   : > { %v6952_v58 = vpop.eup %6951 }
0x16e0   : > { %v3666_v63 = vadd.f32 1.0, %v6952_v58 }
0x16e2   : > { %6953 = vrcp.f32 %v3666_v63  ;;  %v3678_v14 = vand.u32 2147483648, %v3666_v63  ;;  %vm3672_vm12 = vweird.f32 %v3666_v63  ;;  %v3676_v47 = vand.u32 2147483647, %v3666_v63 }
0x16e4   : > { %v3679_v0 = vor.u32 1.1754944e-38, %v3678_v14  ;;  %vm3677_vm14 = vcmp.eq.f32.partialorder %v3676_v47, 8.507059e+37 }
0x16e8   : > { %v6954_v54 = vpop.eup %6953 }
0x16e9   : > { %v3668_v37 = vmul.f32 %v6954_v54, %v3666_v63  ;;  %vm3673_vm11 = vweird.f32 %v6954_v54  ;;  %v8770_v63 = vld [vmem:[#allocation10_spill] sm:$0xff] }
0x16ea   : > { %vm3674_vm13 = vmor %vm3672_vm12, %vm3673_vm11 }
0x16eb   : > { %v3669_v31 = vsub.f32 1.0, %v3668_v37 }
0x16ed   : > { %v3670_v11 = vmul.f32 %v6954_v54, %v3669_v31  ;;  %v8772_v31 = vld [vmem:[#allocation33_spill] sm:$0xff] }
0x16ef   : > { %v3671_v26 = vadd.f32 %v6954_v54, %v3670_v11 }
0x16f1   : > { %v3675_v29 = vsel %vm3674_vm13, %v6954_v54, %v3671_v26  ;;  %v8771_v54 = vld [vmem:[#allocation11_spill] sm:$0xff] }
0x16f2   : > { %v3680_v53 = vsel %vm3677_vm14, %v3679_v0, %v3675_v29  ;;  %v907_v37 = vadd.f32 %v8771_v54, %v8770_v63  ;;  %v8773_v0 = vld [vmem:[#allocation32_spill] sm:$0xff]  ;;  %v4078_v63 = vstv %s6826_s21 }
0x16f3   : > { %v3683_v7 = vmul.f32 %v3680_v53, %v8003_v10  ;;  %vm4079_vm15 = vcmp.ne.s32.totalorder %v4078_v63, 0 }
0x16f4   : > { %v960_v11 = vadd.f32 %v8772_v31, %v907_v37 }
0x1750   : > { %v3686_v3 = vpop.permute.xlu0 %3685 }
0x1751   : > { %v3688_v1 = vmul.f32 %v3686_v3, %v3680_v53  ;;  %v1020_v3 = vadd.f32 %v8773_v0, %v960_v11 }
0x1753   : > { %3690 = vrot.lane.b32.xlu1 %v3688_v1, %s7049_s16 }
0x17c5   : > { %v3691_v8 = vpop.permute.xlu1 %3690 }
0x17c6   : > { %v8147_v24 = vadd.f32 %v3691_v8, %v3683_v7  ;;  %v8774_v7 = vld [vmem:[#allocation24_spill] sm:$0xff] }
0x17c7   : > { %v1084_v8 = vadd.f32 %v8774_v7, %v1020_v3 }
0x17c8   : > { %6955 = vtanh.f32 %v8147_v24 }
0x17ce   : > { %v6956_v36 = vpop.eup %6955 }
0x17cf   : > { %3696 = vrot.lane.b32.xlu2 %v6956_v36, %s7048_s14 }
0x1829   : > { %v3697_v50 = vpop.permute.xlu2 %3696 }
0x182a   : > { %v3699_v39 = vmul.f32 %v3697_v50, %v3680_v53 }
0x182c   : > { %3701 = vrot.lane.b32.xlu0 %v3699_v39, %s7049_s16 }
0x189e   : > { %v3702_v32 = vpop.permute.xlu0 %3701 }
0x189f   : > { %3704 = vst.msk [vmem:[#allocation4 + $0x8] sm:$0xff] %vm1215_vm5, %v3702_v32  ;;  %v3705_v59 = vsel %vm1215_vm5, %v3702_v32, 0 }
0x18a0   : > { %v3727_v23 = vand.u32 4294901760, %v3705_v59 }
0x18a2   : > { %v3728_v42 = vsub.f32 %v3705_v59, %v3727_v23  ;;  %3773 = vmatmul.f32.vlgmr.msrb.gmra.mxu3 %v3727_v23 }
0x18a3   : > { %4005 = vmatpush.msrb.mxu3 %v8011_v18 }
0x18a4   : > { %v3729_v10 = vand.u32 4294901760, %v3728_v42  ;;  %3803 = vmatmul.f32.vlgmr.msrb.gmra.mxu0 %v3728_v42 }
0x18a5   : > { %4007 = vmatpush.msrb.mxu3 %v8017_v5  ;;  %4034 = vmatpush.msrb.mxu0 %v8027_v16 }
0x18a6   : > { %v3730_v57 = vsub.f32 %v3728_v42, %v3729_v10  ;;  %3830 = vmatmul.f32.vlgmr.msrb.gmra.mxu1 %v3729_v10 }
0x18a7   : > { %4009 = vmatpush.msrb.mxu3 %v8029_v27  ;;  %4038 = vmatpush.msrb.mxu0 %v8041_v51 }
0x18a8   : > { %v3731_v41 = vand.u32 4294901760, %v3730_v57  ;;  %4065 = vmatpush.msrb.mxu1 %v8011_v18 }
0x18a9   : > { %4011 = vmatpush.msrb.mxu3 %v8043_v61  ;;  %4042 = vmatpush.msrb.mxu0 %v8054_v43 }
0x18aa   : > { %3732 = vmatmul.f32.vlgmr.msrb.gmra.mxu2 %v3731_v41  ;;  %3888 = vmatmul.f32.vlgmr.msra.gmra.mxu3 %v3727_v23 }
0x18ab   : > { %4067 = vmatpush.msrb.mxu1 %v8017_v5  ;;  %3976 = vmatpush.msrb.mxu2 %v8020_v13 }
0x18ac   : > { %3917 = vmatmul.f32.vlgmr.msra.gmra.mxu0 %v3731_v41  ;;  %4174 = vmatpush.msra.mxu3 %v7919_v60 }
0x18ad   : > { %4046 = vmatpush.msrb.mxu0 %v8065_v28  ;;  %4069 = vmatpush.msrb.mxu1 %v8029_v27 }
0x18ae   : > { %3958 = vmatmul.f32.vlgmr.msra.gmra.mxu1 %v3727_v23  ;;  %3979 = vmatpush.msrb.mxu2 %v8032_v33 }
0x18af   : > { %4071 = vmatpush.msrb.mxu1 %v8043_v61  ;;  %4180 = vmatpush.msra.mxu3 %v7921_v40 }
0x18b0   : > { %3982 = vmatpush.msrb.mxu2 %v8046_v6  ;;  %4212 = vmatpush.msra.mxu0 %v7898_v12 }
0x18b1   : > { %4186 = vmatpush.msra.mxu3 %v7960_v46  ;;  %4241 = vmatpush.msra.mxu1 %v7893_v4 }
0x18b2   : > { %3863 = vmatmul.f32.vlgmr.msra.gmra.mxu2 %v3727_v23  ;;  %4015 = vmatmul.f32.vlgmr.msrb.gmra.mxu3 %v3729_v10 }
0x18b3   : > { %3985 = vmatpush.msrb.mxu2 %v8057_v34  ;;  %4215 = vmatpush.msra.mxu0 %v7901_v9 }
0x18b4   : > { %4048 = vmatmul.f32.vlgmr.msrb.gmra.mxu0 %v3727_v23  ;;  %4192 = vmatpush.msra.mxu3 %v7967_v17 }
0x18b5   : > { %4218 = vmatpush.msra.mxu0 %v7935_v55  ;;  %4243 = vmatpush.msra.mxu1 %v7895_v15 }
0x18b6   : > { %4073 = vmatmul.f32.vlgmr.msrb.gmra.mxu1 %v3727_v23  ;;  %4141 = vmatpush.msra.mxu2 %v7893_v4 }
0x18b7   : > { %4221 = vmatpush.msra.mxu0 %v7945_v22  ;;  %4245 = vmatpush.msra.mxu1 %v7929_v19 }
0x18b8   : > { %4301 = vmatpush.msrb.mxu3 %v7893_v4  ;;  %4143 = vmatpush.msra.mxu2 %v7895_v15 }
0x18b9   : > { %4247 = vmatpush.msra.mxu1 %v7937_v21  ;;  %4326 = vmatpush.msrb.mxu0 %v8011_v18 }
0x18ba   : > { %3988 = vmatmul.f32.vlgmr.msrb.gmra.mxu2 %v3728_v42  ;;  %4303 = vmatpush.msrb.mxu3 %v7895_v15  ;;  %v8775_v42 = vld [vmem:[#allocation25_spill] sm:$0xff] }
0x18bb   : > { %4145 = vmatpush.msra.mxu2 %v7929_v19  ;;  %4328 = vmatpush.msrb.mxu0 %v8017_v5  ;;  %v1134_v10 = vadd.f32 %v8775_v42, %v1084_v8 }
0x18bc   : > { %4305 = vmatpush.msrb.mxu3 %v7929_v19  ;;  %4359 = vmatpush.msrb.mxu1 %v8048_v30 }
0x18bd   : > { %4147 = vmatpush.msra.mxu2 %v7937_v21  ;;  %4330 = vmatpush.msrb.mxu0 %v8029_v27 }
0x18be   : > { %4307 = vmatpush.msrb.mxu3 %v7937_v21  ;;  %4365 = vmatpush.msrb.mxu1 %v8060_v48 }
0x18bf   : > { %4270 = vmatpush.msrb.mxu2 %v7906_v25  ;;  %4332 = vmatpush.msrb.mxu0 %v8043_v61 }
0x18c0   : > { %4371 = vmatpush.msrb.mxu1 %v8068_v62 }
0x18c1   : > { %4274 = vmatpush.msrb.mxu2 %v7909_v45 }
0x18c2   : > { %4377 = vmatpush.msrb.mxu1 %v8073_v49 }
0x18c3   : > { %4278 = vmatpush.msrb.mxu2 %v7942_v20 }
0x18c5   : > { %4282 = vmatpush.msrb.mxu2 %v7954_v2 }
0x1921   : > { %v3804_v52 = vpop.f32.mrf.mxu0 }
0x1923   : > { %v3831_v58 = vpop.f32.mrf.mxu1 }
0x1925   : > { %v3774_v38 = vpop.f32.mrf.mxu3 }
0x1929   : > { %v3918_v29 = vpop.f32.mrf.mxu0 }
0x192b   : > { %v3959_v1 = vpop.f32.mrf.mxu1 }
0x192c   : > { %v3960_v36 = vadd.f32 %v3959_v1, %v3918_v29 }
0x192d   : > { %v3733_v44 = vpop.f32.mrf.mxu2  ;;  %v3889_v14 = vpop.f32.mrf.mxu3 }
0x192e   : > { %v3775_v26 = vadd.f32 %v3774_v38, %v3733_v44 }
0x1930   : > { %v3805_v53 = vadd.f32 %v3804_v52, %v3775_v26  ;;  %v1185_v52 = vadd.f32 %v8135_v35, %v1134_v10 }
0x1931   : > { %v4049_v41 = vpop.f32.mrf.mxu0 }
0x1932   : > { %v3832_v50 = vadd.f32 %v3831_v58, %v3805_v53 }
0x1933   : > { %v4074_v54 = vpop.f32.mrf.mxu1 }
0x1935   : > { %v3864_v47 = vpop.f32.mrf.mxu2  ;;  %v4016_v23 = vpop.f32.mrf.mxu3 }
0x1936   : > { %v3865_v32 = vadd.f32 %v3864_v47, %v3832_v50 }
0x1938   : > { %v3890_v38 = vadd.f32 %v3889_v14, %v3865_v32 }
0x193a   : > { %v4081_v31 = vadd.f32 %v3890_v38, %v1185_v52 }
0x193d   : > { %v3989_v39 = vpop.f32.mrf.mxu2 }
0x193e   : > { %v3990_v59 = vadd.f32 %v3989_v39, %v3960_v36 }
0x1940   : > { %v4017_v57 = vadd.f32 %v4016_v23, %v3990_v59 }
0x1942   : > { %v4050_v44 = vadd.f32 %v4049_v41, %v4017_v57 }
0x1944   : > { %v4075_v37 = vadd.f32 %v4074_v54, %v4050_v44 }
0x1946   : > { %v4082_v11 = vadd.f32 %v8140_v56, %v4075_v37 }
0x1948   : > { %v4083_v58 = vsel %vm4079_vm15, %v4081_v31, %v4082_v11 }
0x1949   : > { %6957 = vtanh.f32 %v4083_v58  ;;  %v6827_v47 = vmul.f32 -1.442695, %v4083_v58 }
0x194b   : > { %6959 = vpow2.f32 %v6827_v47 }
0x194f   : > { %v6958_v26 = vpop.eup %6957 }
0x1950   : > { %4106 = vrot.lane.b32.xlu1 %v6958_v26, %s7048_s14 }
0x1951   : > { %v6960_v29 = vpop.eup %6959 }
0x1952   : > { %v4087_v0 = vadd.f32 1.0, %v6960_v29 }
0x1954   : > { %6961 = vrcp.f32 %v4087_v0  ;;  %v4099_v8 = vand.u32 2147483648, %v4087_v0  ;;  %vm4093_vm2 = vweird.f32 %v4087_v0  ;;  %v4097_v36 = vand.u32 2147483647, %v4087_v0 }
0x1956   : > { %v4100_v39 = vor.u32 1.1754944e-38, %v4099_v8  ;;  %vm4098_vm4 = vcmp.eq.f32.partialorder %v4097_v36, 8.507059e+37 }
0x195a   : > { %v6962_v14 = vpop.eup %6961 }
0x195b   : > { %v4089_v3 = vmul.f32 %v6962_v14, %v4087_v0  ;;  %vm4094_vm1 = vweird.f32 %v6962_v14  ;;  %v8776_v0 = vld [vmem:[#allocation12_spill] sm:$0xff] }
0x195c   : > { %vm4095_vm3 = vmor %vm4093_vm2, %vm4094_vm1 }
0x195d   : > { %v4090_v53 = vsub.f32 1.0, %v4089_v3 }
0x195f   : > { %v4091_v1 = vmul.f32 %v6962_v14, %v4090_v53  ;;  %v8778_v53 = vld [vmem:[#allocation37_spill] sm:$0xff] }
0x1961   : > { %v4092_v7 = vadd.f32 %v6962_v14, %v4091_v1 }
0x1963   : > { %v4096_v50 = vsel %vm4095_vm3, %v6962_v14, %v4092_v7  ;;  %v8777_v14 = vld [vmem:[#allocation13_spill] sm:$0xff] }
0x1964   : > { %v4101_v59 = vsel %vm4098_vm4, %v4100_v39, %v4096_v50  ;;  %v911_v3 = vadd.f32 %v8777_v14, %v8776_v0  ;;  %v8779_v39 = vld [vmem:[#allocation36_spill] sm:$0xff]  ;;  %v4499_v0 = vstv %s6828_s22 }
0x1965   : > { %v4104_v42 = vmul.f32 %v4101_v59, %v8147_v24  ;;  %vm4500_vm6 = vcmp.ne.s32.totalorder %v4499_v0, 0 }
0x1966   : > { %v965_v1 = vadd.f32 %v8778_v53, %v911_v3 }
0x19c2   : > { %v4107_v32 = vpop.permute.xlu1 %4106 }
0x19c3   : > { %v4109_v23 = vmul.f32 %v4107_v32, %v4101_v59  ;;  %v1026_v32 = vadd.f32 %v8779_v39, %v965_v1 }
0x19c5   : > { %4111 = vrot.lane.b32.xlu2 %v4109_v23, %s7049_s16 }
0x1a1f   : > { %v4112_v10 = vpop.permute.xlu2 %4111 }
0x1a20   : > { %v8213_v57 = vadd.f32 %v4112_v10, %v4104_v42  ;;  %v8780_v42 = vld [vmem:[#allocation26_spill] sm:$0xff] }
0x1a21   : > { %v1088_v10 = vadd.f32 %v8780_v42, %v1026_v32 }
0x1a22   : > { %6963 = vtanh.f32 %v8213_v57 }
0x1a28   : > { %v6964_v41 = vpop.eup %6963 }
0x1a29   : > { %4117 = vrot.lane.b32.xlu0 %v6964_v41, %s7048_s14 }
0x1a9b   : > { %v4118_v38 = vpop.permute.xlu0 %4117 }
0x1a9c   : > { %v4120_v44 = vmul.f32 %v4118_v38, %v4101_v59 }
0x1a9e   : > { %4122 = vrot.lane.b32.xlu1 %v4120_v44, %s7049_s16 }
0x1b10   : > { %v4123_v63 = vpop.permute.xlu1 %4122 }
0x1b11   : > { %4125 = vst.msk [vmem:[#allocation4 + $0x10] sm:$0xff] %vm1215_vm5, %v4123_v63  ;;  %v4126_v54 = vsel %vm1215_vm5, %v4123_v63, 0 }
0x1b12   : > { %v4148_v52 = vand.u32 4294901760, %v4126_v54 }
0x1b14   : > { %v4149_v37 = vsub.f32 %v4126_v54, %v4148_v52  ;;  %4194 = vmatmul.f32.vlgmr.msra.gmra.mxu3 %v4148_v52 }
0x1b15   : > { %4426 = vmatpush.msra.mxu3 %v8011_v18 }
0x1b16   : > { %v4150_v24 = vand.u32 4294901760, %v4149_v37  ;;  %4224 = vmatmul.f32.vlgmr.msra.gmra.mxu0 %v4149_v37 }
0x1b17   : > { %4428 = vmatpush.msra.mxu3 %v8017_v5  ;;  %4455 = vmatpush.msra.mxu0 %v8027_v16 }
0x1b18   : > { %v4151_v31 = vsub.f32 %v4149_v37, %v4150_v24  ;;  %4251 = vmatmul.f32.vlgmr.msra.gmra.mxu1 %v4150_v24 }
0x1b19   : > { %4430 = vmatpush.msra.mxu3 %v8029_v27  ;;  %4459 = vmatpush.msra.mxu0 %v8041_v51 }
0x1b1a   : > { %v4152_v11 = vand.u32 4294901760, %v4151_v31  ;;  %4486 = vmatpush.msra.mxu1 %v8011_v18 }
0x1b1b   : > { %4432 = vmatpush.msra.mxu3 %v8043_v61  ;;  %4463 = vmatpush.msra.mxu0 %v8054_v43 }
0x1b1c   : > { %4153 = vmatmul.f32.vlgmr.msra.gmra.mxu2 %v4152_v11  ;;  %4309 = vmatmul.f32.vlgmr.msrb.gmra.mxu3 %v4148_v52 }
0x1b1d   : > { %4488 = vmatpush.msra.mxu1 %v8017_v5  ;;  %4397 = vmatpush.msra.mxu2 %v8020_v13 }
0x1b1e   : > { %4338 = vmatmul.f32.vlgmr.msrb.gmra.mxu0 %v4152_v11  ;;  %4595 = vmatpush.msrb.mxu3 %v7919_v60 }
0x1b1f   : > { %4467 = vmatpush.msra.mxu0 %v8065_v28  ;;  %4490 = vmatpush.msra.mxu1 %v8029_v27 }
0x1b20   : > { %4379 = vmatmul.f32.vlgmr.msrb.gmra.mxu1 %v4148_v52  ;;  %4400 = vmatpush.msra.mxu2 %v8032_v33 }
0x1b21   : > { %4492 = vmatpush.msra.mxu1 %v8043_v61  ;;  %4601 = vmatpush.msrb.mxu3 %v7921_v40 }
0x1b22   : > { %4403 = vmatpush.msra.mxu2 %v8046_v6  ;;  %4633 = vmatpush.msrb.mxu0 %v7898_v12 }
0x1b23   : > { %4607 = vmatpush.msrb.mxu3 %v7960_v46  ;;  %4662 = vmatpush.msrb.mxu1 %v7893_v4 }
0x1b24   : > { %4284 = vmatmul.f32.vlgmr.msrb.gmra.mxu2 %v4148_v52  ;;  %4436 = vmatmul.f32.vlgmr.msra.gmra.mxu3 %v4150_v24 }
0x1b25   : > { %4406 = vmatpush.msra.mxu2 %v8057_v34  ;;  %4636 = vmatpush.msrb.mxu0 %v7901_v9 }
0x1b26   : > { %4469 = vmatmul.f32.vlgmr.msra.gmra.mxu0 %v4148_v52  ;;  %4613 = vmatpush.msrb.mxu3 %v7967_v17 }
0x1b27   : > { %4639 = vmatpush.msrb.mxu0 %v7935_v55  ;;  %4664 = vmatpush.msrb.mxu1 %v7895_v15 }
0x1b28   : > { %4494 = vmatmul.f32.vlgmr.msra.gmra.mxu1 %v4148_v52  ;;  %4562 = vmatpush.msrb.mxu2 %v7893_v4 }
0x1b29   : > { %4642 = vmatpush.msrb.mxu0 %v7945_v22  ;;  %4666 = vmatpush.msrb.mxu1 %v7929_v19 }
0x1b2a   : > { %4722 = vmatpush.msra.mxu3 %v7893_v4  ;;  %4564 = vmatpush.msrb.mxu2 %v7895_v15 }
0x1b2b   : > { %4668 = vmatpush.msrb.mxu1 %v7937_v21  ;;  %4747 = vmatpush.msra.mxu0 %v8011_v18 }
0x1b2c   : > { %4409 = vmatmul.f32.vlgmr.msra.gmra.mxu2 %v4149_v37  ;;  %4724 = vmatpush.msra.mxu3 %v7895_v15  ;;  %v8781_v37 = vld [vmem:[#allocation27_spill] sm:$0xff] }
0x1b2d   : > { %4566 = vmatpush.msrb.mxu2 %v7929_v19  ;;  %4749 = vmatpush.msra.mxu0 %v8017_v5  ;;  %v1138_v24 = vadd.f32 %v8781_v37, %v1088_v10 }
0x1b2e   : > { %4726 = vmatpush.msra.mxu3 %v7929_v19  ;;  %4780 = vmatpush.msra.mxu1 %v8048_v30 }
0x1b2f   : > { %4568 = vmatpush.msrb.mxu2 %v7937_v21  ;;  %4751 = vmatpush.msra.mxu0 %v8029_v27 }
0x1b30   : > { %4728 = vmatpush.msra.mxu3 %v7937_v21  ;;  %4786 = vmatpush.msra.mxu1 %v8060_v48 }
0x1b31   : > { %4691 = vmatpush.msra.mxu2 %v7906_v25  ;;  %4753 = vmatpush.msra.mxu0 %v8043_v61 }
0x1b32   : > { %4792 = vmatpush.msra.mxu1 %v8068_v62 }
0x1b33   : > { %4695 = vmatpush.msra.mxu2 %v7909_v45 }
0x1b34   : > { %4798 = vmatpush.msra.mxu1 %v8073_v49 }
0x1b35   : > { %4699 = vmatpush.msra.mxu2 %v7942_v20 }
0x1b37   : > { %4703 = vmatpush.msra.mxu2 %v7954_v2 }
0x1b93   : > { %v4225_v26 = vpop.f32.mrf.mxu0 }
0x1b95   : > { %v4252_v29 = vpop.f32.mrf.mxu1 }
0x1b97   : > { %v4195_v58 = vpop.f32.mrf.mxu3 }
0x1b9b   : > { %v4339_v50 = vpop.f32.mrf.mxu0 }
0x1b9d   : > { %v4380_v23 = vpop.f32.mrf.mxu1 }
0x1b9e   : > { %v4381_v41 = vadd.f32 %v4380_v23, %v4339_v50 }
0x1b9f   : > { %v4154_v47 = vpop.f32.mrf.mxu2  ;;  %v4310_v8 = vpop.f32.mrf.mxu3 }
0x1ba0   : > { %v4196_v7 = vadd.f32 %v4195_v58, %v4154_v47 }
0x1ba2   : > { %v4226_v59 = vadd.f32 %v4225_v26, %v4196_v7  ;;  %v1186_v26 = vadd.f32 %v8135_v35, %v1138_v24 }
0x1ba3   : > { %v4470_v11 = vpop.f32.mrf.mxu0 }
0x1ba4   : > { %v4253_v38 = vadd.f32 %v4252_v29, %v4226_v59 }
0x1ba5   : > { %v4495_v14 = vpop.f32.mrf.mxu1 }
0x1ba7   : > { %v4285_v36 = vpop.f32.mrf.mxu2  ;;  %v4437_v52 = vpop.f32.mrf.mxu3 }
0x1ba8   : > { %v4286_v63 = vadd.f32 %v4285_v36, %v4253_v38 }
0x1baa   : > { %v4311_v58 = vadd.f32 %v4310_v8, %v4286_v63 }
0x1bac   : > { %v4502_v53 = vadd.f32 %v4311_v58, %v1186_v26 }
0x1baf   : > { %v4410_v44 = vpop.f32.mrf.mxu2 }
0x1bb0   : > { %v4411_v54 = vadd.f32 %v4410_v44, %v4381_v41 }
0x1bb2   : > { %v4438_v31 = vadd.f32 %v4437_v52, %v4411_v54 }
0x1bb4   : > { %v4471_v47 = vadd.f32 %v4470_v11, %v4438_v31 }
0x1bb6   : > { %v4496_v3 = vadd.f32 %v4495_v14, %v4471_v47 }
0x1bb8   : > { %v4503_v1 = vadd.f32 %v8140_v56, %v4496_v3 }
0x1bba   : > { %v4504_v29 = vsel %vm4500_vm6, %v4502_v53, %v4503_v1 }
0x1bbb   : > { %6965 = vtanh.f32 %v4504_v29  ;;  %v6829_v36 = vmul.f32 -1.442695, %v4504_v29 }
0x1bbd   : > { %6967 = vpow2.f32 %v6829_v36 }
0x1bc1   : > { %v6966_v7 = vpop.eup %6965 }
0x1bc2   : > { %4527 = vrot.lane.b32.xlu2 %v6966_v7, %s7048_s14 }
0x1bc3   : > { %v6968_v50 = vpop.eup %6967 }
0x1bc4   : > { %v4508_v39 = vadd.f32 1.0, %v6968_v50 }
0x1bc6   : > { %6969 = vrcp.f32 %v4508_v39  ;;  %v4520_v10 = vand.u32 2147483648, %v4508_v39  ;;  %vm4514_vm8 = vweird.f32 %v4508_v39  ;;  %v4518_v41 = vand.u32 2147483647, %v4508_v39 }
0x1bc8   : > { %v4521_v44 = vor.u32 1.1754944e-38, %v4520_v10  ;;  %vm4519_vm10 = vcmp.eq.f32.partialorder %v4518_v41, 8.507059e+37 }
0x1bcc   : > { %v6970_v8 = vpop.eup %6969 }
0x1bcd   : > { %v4510_v32 = vmul.f32 %v6970_v8, %v4508_v39  ;;  %vm4515_vm7 = vweird.f32 %v6970_v8  ;;  %v8782_v39 = vld [vmem:[#allocation14_spill] sm:$0xff] }
0x1bce   : > { %vm4516_vm9 = vmor %vm4514_vm8, %vm4515_vm7 }
0x1bcf   : > { %v4511_v59 = vsub.f32 1.0, %v4510_v32 }
0x1bd1   : > { %v4512_v23 = vmul.f32 %v6970_v8, %v4511_v59  ;;  %v8784_v59 = vld [vmem:[#allocation41_spill] sm:$0xff] }
0x1bd3   : > { %v4513_v42 = vadd.f32 %v6970_v8, %v4512_v23 }
0x1bd5   : > { %v4517_v38 = vsel %vm4516_vm9, %v6970_v8, %v4513_v42  ;;  %v8783_v8 = vld [vmem:[#allocation15_spill] sm:$0xff] }
0x1bd6   : > { %v4522_v54 = vsel %vm4519_vm10, %v4521_v44, %v4517_v38  ;;  %v915_v32 = vadd.f32 %v8783_v8, %v8782_v39  ;;  %v8785_v44 = vld [vmem:[#allocation40_spill] sm:$0xff]  ;;  %v4920_v39 = vstv %s6830_s25 }
0x1bd7   : > { %v4525_v37 = vmul.f32 %v4522_v54, %v8213_v57  ;;  %vm4921_vm11 = vcmp.ne.s32.totalorder %v4920_v39, 0 }
0x1bd8   : > { %v970_v23 = vadd.f32 %v8784_v59, %v915_v32 }
0x1c1c   : > { %v4528_v63 = vpop.permute.xlu2 %4527 }
0x1c1d   : > { %v4530_v52 = vmul.f32 %v4528_v63, %v4522_v54  ;;  %v1032_v63 = vadd.f32 %v8785_v44, %v970_v23 }
0x1c1f   : > { %4532 = vrot.lane.b32.xlu0 %v4530_v52, %s7049_s16 }
0x1c91   : > { %v4533_v24 = vpop.permute.xlu0 %4532 }
0x1c92   : > { %v8279_v31 = vadd.f32 %v4533_v24, %v4525_v37  ;;  %v8786_v37 = vld [vmem:[#allocation28_spill] sm:$0xff] }
0x1c93   : > { %v1092_v24 = vadd.f32 %v8786_v37, %v1032_v63 }
0x1c94   : > { %6971 = vtanh.f32 %v8279_v31 }
0x1c9a   : > { %v6972_v11 = vpop.eup %6971 }
0x1c9b   : > { %4538 = vrot.lane.b32.xlu1 %v6972_v11, %s7048_s14 }
0x1d0d   : > { %v4539_v58 = vpop.permute.xlu1 %4538 }
0x1d0e   : > { %v4541_v47 = vmul.f32 %v4539_v58, %v4522_v54 }
0x1d10   : > { %4543 = vrot.lane.b32.xlu2 %v4541_v47, %s7049_s16 }
0x1d6a   : > { %v4544_v0 = vpop.permute.xlu2 %4543 }
0x1d6b   : > { %4546 = vst.msk [vmem:[#allocation4 + $0x18] sm:$0xff] %vm1215_vm5, %v4544_v0  ;;  %v4547_v14 = vsel %vm1215_vm5, %v4544_v0, 0 }
0x1d6c   : > { %v4569_v26 = vand.u32 4294901760, %v4547_v14 }
0x1d6e   : > { %v4570_v3 = vsub.f32 %v4547_v14, %v4569_v26  ;;  %4615 = vmatmul.f32.vlgmr.msrb.gmra.mxu3 %v4569_v26 }
0x1d6f   : > { %4847 = vmatpush.msrb.mxu3 %v8011_v18 }
0x1d70   : > { %v4571_v57 = vand.u32 4294901760, %v4570_v3  ;;  %4645 = vmatmul.f32.vlgmr.msrb.gmra.mxu0 %v4570_v3 }
0x1d71   : > { %4849 = vmatpush.msrb.mxu3 %v8017_v5  ;;  %4876 = vmatpush.msrb.mxu0 %v8027_v16 }
0x1d72   : > { %v4572_v53 = vsub.f32 %v4570_v3, %v4571_v57  ;;  %4672 = vmatmul.f32.vlgmr.msrb.gmra.mxu1 %v4571_v57 }
0x1d73   : > { %4851 = vmatpush.msrb.mxu3 %v8029_v27  ;;  %4880 = vmatpush.msrb.mxu0 %v8041_v51 }
0x1d74   : > { %v4573_v1 = vand.u32 4294901760, %v4572_v53  ;;  %4907 = vmatpush.msrb.mxu1 %v8011_v18 }
0x1d75   : > { %4853 = vmatpush.msrb.mxu3 %v8043_v61  ;;  %4884 = vmatpush.msrb.mxu0 %v8054_v43 }
0x1d76   : > { %4574 = vmatmul.f32.vlgmr.msrb.gmra.mxu2 %v4573_v1  ;;  %4730 = vmatmul.f32.vlgmr.msra.gmra.mxu3 %v4569_v26 }
0x1d77   : > { %4909 = vmatpush.msrb.mxu1 %v8017_v5  ;;  %4818 = vmatpush.msrb.mxu2 %v8020_v13 }
0x1d78   : > { %4759 = vmatmul.f32.vlgmr.msra.gmra.mxu0 %v4573_v1  ;;  %5016 = vmatpush.msra.mxu3 %v7919_v60 }
0x1d79   : > { %4888 = vmatpush.msrb.mxu0 %v8065_v28  ;;  %4911 = vmatpush.msrb.mxu1 %v8029_v27 }
0x1d7a   : > { %4800 = vmatmul.f32.vlgmr.msra.gmra.mxu1 %v4569_v26  ;;  %4821 = vmatpush.msrb.mxu2 %v8032_v33 }
0x1d7b   : > { %4913 = vmatpush.msrb.mxu1 %v8043_v61  ;;  %5022 = vmatpush.msra.mxu3 %v7921_v40 }
0x1d7c   : > { %4824 = vmatpush.msrb.mxu2 %v8046_v6  ;;  %5054 = vmatpush.msra.mxu0 %v7898_v12 }
0x1d7d   : > { %5028 = vmatpush.msra.mxu3 %v7960_v46  ;;  %5083 = vmatpush.msra.mxu1 %v7893_v4 }
0x1d7e   : > { %4705 = vmatmul.f32.vlgmr.msra.gmra.mxu2 %v4569_v26  ;;  %4857 = vmatmul.f32.vlgmr.msrb.gmra.mxu3 %v4571_v57 }
0x1d7f   : > { %4827 = vmatpush.msrb.mxu2 %v8057_v34  ;;  %5057 = vmatpush.msra.mxu0 %v7901_v9 }
0x1d80   : > { %4890 = vmatmul.f32.vlgmr.msrb.gmra.mxu0 %v4569_v26  ;;  %5034 = vmatpush.msra.mxu3 %v7967_v17 }
0x1d81   : > { %5060 = vmatpush.msra.mxu0 %v7935_v55  ;;  %5085 = vmatpush.msra.mxu1 %v7895_v15 }
0x1d82   : > { %4915 = vmatmul.f32.vlgmr.msrb.gmra.mxu1 %v4569_v26  ;;  %4983 = vmatpush.msra.mxu2 %v7893_v4 }
0x1d83   : > { %5063 = vmatpush.msra.mxu0 %v7945_v22  ;;  %5087 = vmatpush.msra.mxu1 %v7929_v19 }
0x1d84   : > { %5143 = vmatpush.msrb.mxu3 %v7893_v4  ;;  %4985 = vmatpush.msra.mxu2 %v7895_v15 }
0x1d85   : > { %5089 = vmatpush.msra.mxu1 %v7937_v21  ;;  %5168 = vmatpush.msrb.mxu0 %v8011_v18 }
0x1d86   : > { %4830 = vmatmul.f32.vlgmr.msrb.gmra.mxu2 %v4570_v3  ;;  %5145 = vmatpush.msrb.mxu3 %v7895_v15  ;;  %v8787_v3 = vld [vmem:[#allocation29_spill] sm:$0xff] }
0x1d87   : > { %4987 = vmatpush.msra.mxu2 %v7929_v19  ;;  %5170 = vmatpush.msrb.mxu0 %v8017_v5  ;;  %v1142_v57 = vadd.f32 %v8787_v3, %v1092_v24 }
0x1d88   : > { %5147 = vmatpush.msrb.mxu3 %v7929_v19  ;;  %5201 = vmatpush.msrb.mxu1 %v8048_v30 }
0x1d89   : > { %4989 = vmatpush.msra.mxu2 %v7937_v21  ;;  %5172 = vmatpush.msrb.mxu0 %v8029_v27 }
0x1d8a   : > { %5149 = vmatpush.msrb.mxu3 %v7937_v21  ;;  %5207 = vmatpush.msrb.mxu1 %v8060_v48 }
0x1d8b   : > { %5112 = vmatpush.msrb.mxu2 %v7906_v25  ;;  %5174 = vmatpush.msrb.mxu0 %v8043_v61 }
0x1d8c   : > { %5213 = vmatpush.msrb.mxu1 %v8068_v62 }
0x1d8d   : > { %5116 = vmatpush.msrb.mxu2 %v7909_v45 }
0x1d8e   : > { %5219 = vmatpush.msrb.mxu1 %v8073_v49 }
0x1d8f   : > { %5120 = vmatpush.msrb.mxu2 %v7942_v20 }
0x1d91   : > { %5124 = vmatpush.msrb.mxu2 %v7954_v2 }
0x1ded   : > { %v4646_v7 = vpop.f32.mrf.mxu0 }
0x1def   : > { %v4673_v50 = vpop.f32.mrf.mxu1 }
0x1df1   : > { %v4616_v29 = vpop.f32.mrf.mxu3 }
0x1df5   : > { %v4760_v38 = vpop.f32.mrf.mxu0 }
0x1df7   : > { %v4801_v52 = vpop.f32.mrf.mxu1 }
0x1df8   : > { %v4802_v11 = vadd.f32 %v4801_v52, %v4760_v38 }
0x1df9   : > { %v4575_v36 = vpop.f32.mrf.mxu2  ;;  %v4731_v10 = vpop.f32.mrf.mxu3 }
0x1dfa   : > { %v4617_v42 = vadd.f32 %v4616_v29, %v4575_v36 }
0x1dfc   : > { %v4647_v54 = vadd.f32 %v4646_v7, %v4617_v42  ;;  %v1187_v7 = vadd.f32 %v8135_v35, %v1142_v57 }
0x1dfd   : > { %v4891_v1 = vpop.f32.mrf.mxu0 }
0x1dfe   : > { %v4674_v58 = vadd.f32 %v4673_v50, %v4647_v54 }
0x1dff   : > { %v4916_v8 = vpop.f32.mrf.mxu1 }
0x1e01   : > { %v4706_v41 = vpop.f32.mrf.mxu2  ;;  %v4858_v26 = vpop.f32.mrf.mxu3 }
0x1e02   : > { %v4707_v0 = vadd.f32 %v4706_v41, %v4674_v58 }
0x1e04   : > { %v4732_v29 = vadd.f32 %v4731_v10, %v4707_v0 }
0x1e06   : > { %v4923_v59 = vadd.f32 %v4732_v29, %v1187_v7 }
0x1e09   : > { %v4831_v47 = vpop.f32.mrf.mxu2 }
0x1e0a   : > { %v4832_v14 = vadd.f32 %v4831_v47, %v4802_v11 }
0x1e0c   : > { %v4859_v53 = vadd.f32 %v4858_v26, %v4832_v14 }
0x1e0e   : > { %v4892_v36 = vadd.f32 %v4891_v1, %v4859_v53 }
0x1e10   : > { %v4917_v32 = vadd.f32 %v4916_v8, %v4892_v36 }
0x1e12   : > { %v4924_v23 = vadd.f32 %v8140_v56, %v4917_v32 }
0x1e14   : > { %v4925_v50 = vsel %vm4921_vm11, %v4923_v59, %v4924_v23 }
0x1e15   : > { %6973 = vtanh.f32 %v4925_v50  ;;  %v6831_v41 = vmul.f32 -1.442695, %v4925_v50 }
0x1e17   : > { %6975 = vpow2.f32 %v6831_v41  ;;  %v8788_v41 = vld [vmem:[#allocation16_spill] sm:$0xff] }
0x1e1b   : > { %v6974_v42 = vpop.eup %6973 }
0x1e1c   : > { %4948 = vrot.lane.b32.xlu0 %v6974_v42, %s7048_s14 }
0x1e1d   : > { %v6976_v38 = vpop.eup %6975 }
0x1e1e   : > { %v4929_v44 = vadd.f32 1.0, %v6976_v38  ;;  %v8789_v38 = vld [vmem:[#allocation17_spill] sm:$0xff] }
0x1e20   : > { %6977 = vrcp.f32 %v4929_v44  ;;  %v4941_v37 = vand.u32 2147483648, %v4929_v44  ;;  %vm4935_vm13 = vweird.f32 %v4929_v44  ;;  %v4939_v24 = vand.u32 2147483647, %v4929_v44 }
0x1e22   : > { %v4942_v11 = vor.u32 1.1754944e-38, %v4941_v37  ;;  %vm4940_vm15 = vcmp.eq.f32.partialorder %v4939_v24, 8.507059e+37  ;;  %v8791_v24 = vld [vmem:[#allocation42_spill] sm:$0xff] }
0x1e26   : > { %v6978_v10 = vpop.eup %6977 }
0x1e27   : > { %v4931_v63 = vmul.f32 %v6978_v10, %v4929_v44  ;;  %vm4936_vm12 = vweird.f32 %v6978_v10  ;;  %v919_v44 = vadd.f32 %v8789_v38, %v8788_v41 }
0x1e28   : > { %vm4937_vm14 = vmor %vm4935_vm13, %vm4936_vm12 }
0x1e29   : > { %v4932_v54 = vsub.f32 1.0, %v4931_v63 }
0x1e2b   : > { %v4933_v52 = vmul.f32 %v6978_v10, %v4932_v54 }
0x1e2d   : > { %v4934_v35 = vadd.f32 %v6978_v10, %v4933_v52 }
0x1e2f   : > { %v4938_v56 = vsel %vm4937_vm14, %v6978_v10, %v4934_v35  ;;  %v8790_v10 = vld [vmem:[#allocation43_spill] sm:$0xff] }
0x1e30   : > { %v4943_v47 = vsel %vm4940_vm15, %v4942_v11, %v4938_v56  ;;  %v975_v63 = vadd.f32 %v8790_v10, %v919_v44  ;;  %v8415_v44 = vld [vmem:[%s8725_s7] ss:$0 sm:$0xff] }
0x1e31   : > { %v4946_v14 = vmul.f32 %v4943_v47, %v8279_v31 }
0x1e32   : > { %v1038_v56 = vadd.f32 %v8791_v24, %v975_v63 }
0x1e8e   : > { %v4949_v58 = vpop.permute.xlu0 %4948 }
0x1e8f   : > { %v4951_v0 = vmul.f32 %v4949_v58, %v4943_v47 }
0x1e91   : > { %4953 = vrot.lane.b32.xlu1 %v4951_v0, %s7049_s16 }
0x1f03   : > { %v4954_v26 = vpop.permute.xlu1 %4953 }
0x1f04   : > { %v8345_v3 = vadd.f32 %v4954_v26, %v4946_v14 }
0x1f06   : > { %6979 = vtanh.f32 %v8345_v3 }
0x1f0c   : > { %v6980_v57 = vpop.eup %6979 }
0x1f0d   : > { %4959 = vrot.lane.b32.xlu2 %v6980_v57, %s7048_s14 }
0x1f67   : > { %v4960_v53 = vpop.permute.xlu2 %4959 }
0x1f68   : > { %v4962_v1 = vmul.f32 %v4960_v53, %v4943_v47  ;;  %v8792_v47 = vld [vmem:[#allocation30_spill] sm:$0xff] }
0x1f69   : > { %v1096_v0 = vadd.f32 %v8792_v47, %v1038_v56 }
0x1f6a   : > { %4964 = vrot.lane.b32.xlu0 %v4962_v1, %s7049_s16 }
0x1fdc   : > { %v4965_v29 = vpop.permute.xlu0 %4964 }
0x1fdd   : > { %4967 = vst.msk [vmem:[#allocation4 + $0x20] sm:$0xff] %vm1215_vm5, %v4965_v29  ;;  %v4968_v36 = vsel %vm1215_vm5, %v4965_v29, 0 }
0x1fde   : > { %v4990_v39 = vand.u32 4294901760, %v4968_v36 }
0x1fe0   : > { %v4991_v8 = vsub.f32 %v4968_v36, %v4990_v39  ;;  %5036 = vmatmul.f32.vlgmr.msra.gmra.mxu3 %v4990_v39  ;;  %v8793_v36 = vld [vmem:[#allocation31_spill] sm:$0xff] }
0x1fe1   : > { %5268 = vmatpush.msra.mxu3 %v8011_v18 }
0x1fe2   : > { %v4992_v31 = vand.u32 4294901760, %v4991_v8  ;;  %5066 = vmatmul.f32.vlgmr.msra.gmra.mxu0 %v4991_v8 }
0x1fe3   : > { %5270 = vmatpush.msra.mxu3 %v8017_v5  ;;  %5297 = vmatpush.msra.mxu0 %v8027_v16 }
0x1fe4   : > { %v4993_v7 = vsub.f32 %v4991_v8, %v4992_v31  ;;  %5093 = vmatmul.f32.vlgmr.msra.gmra.mxu1 %v4992_v31 }
0x1fe5   : > { %5272 = vmatpush.msra.mxu3 %v8029_v27  ;;  %5301 = vmatpush.msra.mxu0 %v8041_v51 }
0x1fe6   : > { %v4994_v32 = vand.u32 4294901760, %v4993_v7  ;;  %5328 = vmatpush.msra.mxu1 %v8011_v18 }
0x1fe7   : > { %5274 = vmatpush.msra.mxu3 %v8043_v61  ;;  %5305 = vmatpush.msra.mxu0 %v8054_v43 }
0x1fe8   : > { %4995 = vmatmul.f32.vlgmr.msra.gmra.mxu2 %v4994_v32  ;;  %5151 = vmatmul.f32.vlgmr.msrb.gmra.mxu3 %v4990_v39 }
0x1fe9   : > { %5330 = vmatpush.msra.mxu1 %v8017_v5  ;;  %5239 = vmatpush.msra.mxu2 %v8020_v13 }
0x1fea   : > { %5180 = vmatmul.f32.vlgmr.msrb.gmra.mxu0 %v4994_v32  ;;  %5437 = vmatpush.msrb.mxu3 %v7919_v60 }
0x1feb   : > { %5309 = vmatpush.msra.mxu0 %v8065_v28  ;;  %5332 = vmatpush.msra.mxu1 %v8029_v27 }
0x1fec   : > { %5221 = vmatmul.f32.vlgmr.msrb.gmra.mxu1 %v4990_v39  ;;  %5242 = vmatpush.msra.mxu2 %v8032_v33 }
0x1fed   : > { %5334 = vmatpush.msra.mxu1 %v8043_v61  ;;  %5443 = vmatpush.msrb.mxu3 %v7921_v40 }
0x1fee   : > { %5245 = vmatpush.msra.mxu2 %v8046_v6  ;;  %5475 = vmatpush.msrb.mxu0 %v7898_v12 }
0x1fef   : > { %5449 = vmatpush.msrb.mxu3 %v7960_v46  ;;  %5504 = vmatpush.msrb.mxu1 %v7893_v4 }
0x1ff0   : > { %5126 = vmatmul.f32.vlgmr.msrb.gmra.mxu2 %v4990_v39  ;;  %5278 = vmatmul.f32.vlgmr.msra.gmra.mxu3 %v4992_v31 }
0x1ff1   : > { %5248 = vmatpush.msra.mxu2 %v8057_v34  ;;  %5478 = vmatpush.msrb.mxu0 %v7901_v9 }
0x1ff2   : > { %5311 = vmatmul.f32.vlgmr.msra.gmra.mxu0 %v4990_v39  ;;  %5455 = vmatpush.msrb.mxu3 %v7967_v17 }
0x1ff3   : > { %5481 = vmatpush.msrb.mxu0 %v7935_v55  ;;  %5506 = vmatpush.msrb.mxu1 %v7895_v15 }
0x1ff4   : > { %5336 = vmatmul.f32.vlgmr.msra.gmra.mxu1 %v4990_v39  ;;  %5404 = vmatpush.msrb.mxu2 %v7893_v4  ;;  %v1146_v39 = vadd.f32 %v8793_v36, %v1096_v0 }
0x1ff5   : > { %5484 = vmatpush.msrb.mxu0 %v7945_v22  ;;  %5508 = vmatpush.msrb.mxu1 %v7929_v19 }
0x1ff6   : > { %5564 = vmatpush.msra.mxu3 %v7893_v4  ;;  %5406 = vmatpush.msrb.mxu2 %v7895_v15 }
0x1ff7   : > { %5510 = vmatpush.msrb.mxu1 %v7937_v21  ;;  %5589 = vmatpush.msra.mxu0 %v8011_v18 }
0x1ff8   : > { %5251 = vmatmul.f32.vlgmr.msra.gmra.mxu2 %v4991_v8  ;;  %5566 = vmatpush.msra.mxu3 %v7895_v15 }
0x1ff9   : > { %5408 = vmatpush.msrb.mxu2 %v7929_v19  ;;  %5591 = vmatpush.msra.mxu0 %v8017_v5 }
0x1ffa   : > { %5568 = vmatpush.msra.mxu3 %v7929_v19  ;;  %5622 = vmatpush.msra.mxu1 %v8048_v30 }
0x1ffb   : > { %5410 = vmatpush.msrb.mxu2 %v7937_v21  ;;  %5593 = vmatpush.msra.mxu0 %v8029_v27 }
0x1ffc   : > { %5570 = vmatpush.msra.mxu3 %v7937_v21  ;;  %5628 = vmatpush.msra.mxu1 %v8060_v48 }
0x1ffd   : > { %5533 = vmatpush.msra.mxu2 %v7906_v25  ;;  %5595 = vmatpush.msra.mxu0 %v8043_v61 }
0x1ffe   : > { %5634 = vmatpush.msra.mxu1 %v8068_v62 }
0x1fff   : > { %5537 = vmatpush.msra.mxu2 %v7909_v45 }
0x2000   : > { %5640 = vmatpush.msra.mxu1 %v8073_v49 }
0x2001   : > { %5541 = vmatpush.msra.mxu2 %v7942_v20 }
0x2003   : > { %5545 = vmatpush.msra.mxu2 %v7954_v2 }
0x205f   : > { %v5067_v23 = vpop.f32.mrf.mxu0 }
0x2061   : > { %v5094_v42 = vpop.f32.mrf.mxu1 }
0x2063   : > { %v5037_v59 = vpop.f32.mrf.mxu3 }
0x2067   : > { %v5181_v37 = vpop.f32.mrf.mxu0 }
0x2069   : > { %v5222_v58 = vpop.f32.mrf.mxu1 }
0x206a   : > { %v5223_v14 = vadd.f32 %v5222_v58, %v5181_v37 }
0x206b   : > { %v4996_v50 = vpop.f32.mrf.mxu2  ;;  %v5152_v52 = vpop.f32.mrf.mxu3 }
0x206c   : > { %v5038_v54 = vadd.f32 %v5037_v59, %v4996_v50  ;;  %v5341_v59 = vstv %s6832_s26 }
0x206d   : > { %vm5342_vm1 = vcmp.ne.s32.totalorder %v5341_v59, 0 }
0x206e   : > { %v5068_v11 = vadd.f32 %v5067_v23, %v5038_v54  ;;  %v8409_v23 = vld [vmem:[%s8724_s6] ss:$0 sm:$0xff] }
0x206f   : > { %v5312_v31 = vpop.f32.mrf.mxu0  ;;  %v1188_v41 = vadd.f32 %v8409_v23, %v1146_v39 }
0x2070   : > { %v5095_v26 = vadd.f32 %v5094_v42, %v5068_v11 }
0x2071   : > { %v5337_v50 = vpop.f32.mrf.mxu1 }
0x2073   : > { %v5127_v35 = vpop.f32.mrf.mxu2  ;;  %v5279_v29 = vpop.f32.mrf.mxu3 }
0x2074   : > { %v5128_v53 = vadd.f32 %v5127_v35, %v5095_v26 }
0x2076   : > { %v5153_v7 = vadd.f32 %v5152_v52, %v5128_v53 }
0x2078   : > { %v5344_v38 = vadd.f32 %v5153_v7, %v1188_v41 }
0x207b   : > { %v5252_v57 = vpop.f32.mrf.mxu2 }
0x207c   : > { %v5253_v1 = vadd.f32 %v5252_v57, %v5223_v14 }
0x207e   : > { %v5280_v8 = vadd.f32 %v5279_v29, %v5253_v1 }
0x2080   : > { %v5313_v32 = vadd.f32 %v5312_v31, %v5280_v8 }
0x2082   : > { %v5338_v42 = vadd.f32 %v5337_v50, %v5313_v32 }
0x2084   : > { %v5345_v10 = vadd.f32 %v8415_v44, %v5338_v42 }
0x2086   : > { %v5346_v63 = vsel %vm5342_vm1, %v5344_v38, %v5345_v10 }
0x2087   : > { %6981 = vtanh.f32 %v5346_v63  ;;  %v6833_v52 = vmul.f32 -1.442695, %v5346_v63 }
0x2089   : > { %6983 = vpow2.f32 %v6833_v52 }
0x208d   : > { %v6982_v54 = vpop.eup %6981 }
0x208e   : > { %5369 = vrot.lane.b32.xlu1 %v6982_v54, %s7048_s14 }
0x208f   : > { %v6984_v35 = vpop.eup %6983 }
0x2090   : > { %v5350_v37 = vadd.f32 1.0, %v6984_v35 }
0x2092   : > { %6985 = vrcp.f32 %v5350_v37  ;;  %v5362_v0 = vand.u32 2147483648, %v5350_v37  ;;  %vm5356_vm3 = vweird.f32 %v5350_v37  ;;  %v5360_v14 = vand.u32 2147483647, %v5350_v37 }
0x2094   : > { %v5363_v57 = vor.u32 1.1754944e-38, %v5362_v0  ;;  %vm5361_vm6 = vcmp.eq.f32.partialorder %v5360_v14, 8.507059e+37  ;;  %v5762_v14 = vstv %s6834_s11 }
0x2095   : > { %vm5763_vm7 = vcmp.ne.s32.totalorder %v5762_v14, 0 }
0x2098   : > { %v6986_v24 = vpop.eup %6985 }
0x2099   : > { %v5352_v56 = vmul.f32 %v6986_v24, %v5350_v37  ;;  %vm5357_vm2 = vweird.f32 %v6986_v24 }
0x209a   : > { %vm5358_vm4 = vmor %vm5356_vm3, %vm5357_vm2 }
0x209b   : > { %v5353_v11 = vsub.f32 1.0, %v5352_v56 }
0x209d   : > { %v5354_v58 = vmul.f32 %v6986_v24, %v5353_v11 }
0x209f   : > { %v5355_v47 = vadd.f32 %v6986_v24, %v5354_v58 }
0x20a1   : > { %v5359_v26 = vsel %vm5358_vm4, %v6986_v24, %v5355_v47  ;;  %v8799_v24 = vld [vmem:[#allocation35_spill] sm:$0xff] }
0x20a2   : > { %v5364_v1 = vsel %vm5361_vm6, %v5363_v57, %v5359_v26 }
0x20a3   : > { %v5367_v36 = vmul.f32 %v5364_v1, %v8345_v3 }
0x2100   : > { %v5370_v53 = vpop.permute.xlu1 %5369 }
0x2101   : > { %v5372_v29 = vmul.f32 %v5370_v53, %v5364_v1 }
0x2103   : > { %5374 = vrot.lane.b32.xlu2 %v5372_v29, %s7049_s16 }
0x215d   : > { %v5375_v39 = vpop.permute.xlu2 %5374 }
0x215e   : > { %v8421_v8 = vadd.f32 %v5375_v39, %v5367_v36 }
0x2160   : > { %6987 = vtanh.f32 %v8421_v8 }
0x2166   : > { %v6988_v31 = vpop.eup %6987 }
0x2167   : > { %5380 = vrot.lane.b32.xlu0 %v6988_v31, %s7048_s14 }
0x21d9   : > { %v5381_v7 = vpop.permute.xlu0 %5380 }
0x21da   : > { %v5383_v32 = vmul.f32 %v5381_v7, %v5364_v1 }
0x21dc   : > { %5385 = vrot.lane.b32.xlu1 %v5383_v32, %s7049_s16 }
0x224e   : > { %v5386_v59 = vpop.permute.xlu1 %5385 }
0x224f   : > { %5388 = vst.msk [vmem:[#allocation4 + $0x28] sm:$0xff] %vm1215_vm5, %v5386_v59  ;;  %v5389_v50 = vsel %vm1215_vm5, %v5386_v59, 0 }
0x2250   : > { %v5411_v41 = vand.u32 4294901760, %v5389_v50 }
0x2252   : > { %v5412_v42 = vsub.f32 %v5389_v50, %v5411_v41  ;;  %5457 = vmatmul.f32.vlgmr.msrb.gmra.mxu3 %v5411_v41 }
0x2253   : > { %5689 = vmatpush.msrb.mxu3 %v8011_v18 }
0x2254   : > { %v5413_v3 = vand.u32 4294901760, %v5412_v42  ;;  %5487 = vmatmul.f32.vlgmr.msrb.gmra.mxu0 %v5412_v42 }
0x2255   : > { %5691 = vmatpush.msrb.mxu3 %v8017_v5  ;;  %5718 = vmatpush.msrb.mxu0 %v8027_v16 }
0x2256   : > { %v5414_v38 = vsub.f32 %v5412_v42, %v5413_v3  ;;  %5514 = vmatmul.f32.vlgmr.msrb.gmra.mxu1 %v5413_v3 }
0x2257   : > { %5693 = vmatpush.msrb.mxu3 %v8029_v27  ;;  %5722 = vmatpush.msrb.mxu0 %v8041_v51 }
0x2258   : > { %v5415_v10 = vand.u32 4294901760, %v5414_v38  ;;  %5749 = vmatpush.msrb.mxu1 %v8011_v18 }
0x2259   : > { %5695 = vmatpush.msrb.mxu3 %v8043_v61  ;;  %5726 = vmatpush.msrb.mxu0 %v8054_v43 }
0x225a   : > { %5416 = vmatmul.f32.vlgmr.msrb.gmra.mxu2 %v5415_v10  ;;  %5572 = vmatmul.f32.vlgmr.msra.gmra.mxu3 %v5411_v41 }
0x225b   : > { %5751 = vmatpush.msrb.mxu1 %v8017_v5  ;;  %5660 = vmatpush.msrb.mxu2 %v8020_v13 }
0x225c   : > { %5601 = vmatmul.f32.vlgmr.msra.gmra.mxu0 %v5415_v10  ;;  %5858 = vmatpush.msra.mxu3 %v7919_v60  ;;  %v8794_v60 = vld [vmem:[#allocation18_spill] sm:$0xff] }
0x225d   : > { %5730 = vmatpush.msrb.mxu0 %v8065_v28  ;;  %5753 = vmatpush.msrb.mxu1 %v8029_v27 }
0x225e   : > { %5642 = vmatmul.f32.vlgmr.msra.gmra.mxu1 %v5411_v41  ;;  %5663 = vmatpush.msrb.mxu2 %v8032_v33 }
0x225f   : > { %5755 = vmatpush.msrb.mxu1 %v8043_v61  ;;  %5864 = vmatpush.msra.mxu3 %v7921_v40  ;;  %v8795_v40 = vld [vmem:[#allocation19_spill] sm:$0xff] }
0x2260   : > { %5666 = vmatpush.msrb.mxu2 %v8046_v6  ;;  %5896 = vmatpush.msra.mxu0 %v7898_v12 }
0x2261   : > { %5870 = vmatpush.msra.mxu3 %v7960_v46  ;;  %5925 = vmatpush.msra.mxu1 %v7893_v4 }
0x2262   : > { %5547 = vmatmul.f32.vlgmr.msra.gmra.mxu2 %v5411_v41  ;;  %5699 = vmatmul.f32.vlgmr.msrb.gmra.mxu3 %v5413_v3 }
0x2263   : > { %5669 = vmatpush.msrb.mxu2 %v8057_v34  ;;  %5899 = vmatpush.msra.mxu0 %v7901_v9 }
0x2264   : > { %5732 = vmatmul.f32.vlgmr.msrb.gmra.mxu0 %v5411_v41  ;;  %5876 = vmatpush.msra.mxu3 %v7967_v17 }
0x2265   : > { %5902 = vmatpush.msra.mxu0 %v7935_v55  ;;  %5927 = vmatpush.msra.mxu1 %v7895_v15 }
0x2266   : > { %5757 = vmatmul.f32.vlgmr.msrb.gmra.mxu1 %v5411_v41  ;;  %5825 = vmatpush.msra.mxu2 %v7893_v4 }
0x2267   : > { %5905 = vmatpush.msra.mxu0 %v7945_v22  ;;  %5929 = vmatpush.msra.mxu1 %v7929_v19 }
0x2268   : > { %5985 = vmatpush.msrb.mxu3 %v7893_v4  ;;  %5827 = vmatpush.msra.mxu2 %v7895_v15 }
0x2269   : > { %5931 = vmatpush.msra.mxu1 %v7937_v21  ;;  %6010 = vmatpush.msrb.mxu0 %v8011_v18 }
0x226a   : > { %5672 = vmatmul.f32.vlgmr.msrb.gmra.mxu2 %v5412_v42  ;;  %5987 = vmatpush.msrb.mxu3 %v7895_v15 }
0x226b   : > { %5829 = vmatpush.msra.mxu2 %v7929_v19  ;;  %6012 = vmatpush.msrb.mxu0 %v8017_v5 }
0x226c   : > { %5989 = vmatpush.msrb.mxu3 %v7929_v19  ;;  %6043 = vmatpush.msrb.mxu1 %v8048_v30  ;;  %v923_v19 = vadd.f32 %v8795_v40, %v8794_v60 }
0x226d   : > { %5831 = vmatpush.msra.mxu2 %v7937_v21  ;;  %6014 = vmatpush.msrb.mxu0 %v8029_v27 }
0x226e   : > { %5991 = vmatpush.msrb.mxu3 %v7937_v21  ;;  %6049 = vmatpush.msrb.mxu1 %v8060_v48 }
0x226f   : > { %5954 = vmatpush.msrb.mxu2 %v7906_v25  ;;  %6016 = vmatpush.msrb.mxu0 %v8043_v61  ;;  %v8796_v25 = vld [vmem:[#allocation45_spill] sm:$0xff] }
0x2270   : > { %6055 = vmatpush.msrb.mxu1 %v8068_v62  ;;  %v980_v55 = vadd.f32 %v8796_v25, %v923_v19 }
0x2271   : > { %5958 = vmatpush.msrb.mxu2 %v7909_v45  ;;  %v8797_v45 = vld [vmem:[#allocation44_spill] sm:$0xff] }
0x2272   : > { %6061 = vmatpush.msrb.mxu1 %v8073_v49  ;;  %v1044_v30 = vadd.f32 %v8797_v45, %v980_v55  ;;  %v6240_v45 = vld [vmem:[%s8726_s8 + $0x8] sm:$0xff] }
0x2273   : > { %5962 = vmatpush.msrb.mxu2 %v7942_v20  ;;  %v8798_v20 = vld [vmem:[#allocation34_spill] sm:$0xff] }
0x2275   : > { %5966 = vmatpush.msrb.mxu2 %v7954_v2  ;;  %v1100_v2 = vadd.f32 %v8798_v20, %v1044_v30  ;;  %v6239_v20 = vld [vmem:[%s8726_s8] sm:$0xff] }
0x2277   : > { %v1150_v56 = vadd.f32 %v8799_v24, %v1100_v2 }
0x2279   : > { %v1189_v57 = vadd.f32 %v8409_v23, %v1150_v56 }
0x22d1   : > { %v5488_v15 = vpop.f32.mrf.mxu0 }
0x22d3   : > { %v5515_v9 = vpop.f32.mrf.mxu1 }
0x22d5   : > { %v5458_v4 = vpop.f32.mrf.mxu3 }
0x22d9   : > { %v5602_v17 = vpop.f32.mrf.mxu0 }
0x22db   : > { %v5643_v62 = vpop.f32.mrf.mxu1 }
0x22dc   : > { %v5644_v49 = vadd.f32 %v5643_v62, %v5602_v17  ;;  %v8508_v62 = vand.u32 4294901760, %v6240_v45 }
0x22dd   : > { %v5417_v12 = vpop.f32.mrf.mxu2  ;;  %v5573_v22 = vpop.f32.mrf.mxu3 }
0x22de   : > { %v5459_v21 = vadd.f32 %v5458_v4, %v5417_v12 }
0x22e0   : > { %v5489_v48 = vadd.f32 %v5488_v15, %v5459_v21 }
0x22e1   : > { %v5733_v58 = vpop.f32.mrf.mxu0 }
0x22e2   : > { %v5516_v63 = vadd.f32 %v5515_v9, %v5489_v48 }
0x22e3   : > { %v5758_v26 = vpop.f32.mrf.mxu1 }
0x22e5   : > { %v5548_v46 = vpop.f32.mrf.mxu2  ;;  %v5700_v37 = vpop.f32.mrf.mxu3 }
0x22e6   : > { %v5549_v52 = vadd.f32 %v5548_v46, %v5516_v63  ;;  %v6242_v46 = vld [vmem:[%s8726_s8 + $0x18] sm:$0xff] }
0x22e7   : > { %v8495_v17 = vand.u32 4294901760, %v6242_v46 }
0x22e8   : > { %v5574_v47 = vadd.f32 %v5573_v22, %v5549_v52 }
0x22e9   : > { %v8506_v48 = vsub.f32 %v6242_v46, %v8495_v17 }
0x22ea   : > { %v5765_v1 = vadd.f32 %v5574_v47, %v1189_v57 }
0x22eb   : > { %v6370_v52 = vand.u32 4294901760, %v8506_v48 }
0x22ed   : > { %v5673_v54 = vpop.f32.mrf.mxu2 }
0x22ee   : > { %v5674_v35 = vadd.f32 %v5673_v54, %v5644_v49 }
0x22f0   : > { %v5701_v11 = vadd.f32 %v5700_v37, %v5674_v35  ;;  %v8519_v35 = vand.u32 4294901760, %v6239_v20  ;;  %v8522_v37 = vsub.f32 %v6240_v45, %v8508_v62 }
0x22f2   : > { %v5734_v0 = vadd.f32 %v5733_v58, %v5701_v11  ;;  %v6371_v58 = vsub.f32 %v8506_v48, %v6370_v52  ;;  %v8534_v47 = vsub.f32 %v6239_v20, %v8519_v35 }
0x22f4   : > { %v5759_v53 = vadd.f32 %v5758_v26, %v5734_v0  ;;  %v6382_v0 = vand.u32 4294901760, %v8522_v37 }
0x22f6   : > { %v5766_v29 = vadd.f32 %v8415_v44, %v5759_v53  ;;  %v6372_v53 = vand.u32 4294901760, %v6371_v58 }
0x22f8   : > { %v5767_v36 = vsel %vm5763_vm7, %v5765_v1, %v5766_v29  ;;  %v6388_v1 = vand.u32 4294901760, %v8534_v47 }
0x22f9   : > { %6989 = vtanh.f32 %v5767_v36  ;;  %v6835_v31 = vmul.f32 -1.442695, %v5767_v36 }
0x22fb   : > { %6991 = vpow2.f32 %v6835_v31 }
0x22ff   : > { %v6990_v39 = vpop.eup %6989 }
0x2300   : > { %5790 = vrot.lane.b32.xlu2 %v6990_v39, %s7048_s14 }
0x2301   : > { %v6992_v7 = vpop.eup %6991 }
0x2302   : > { %v5771_v32 = vadd.f32 1.0, %v6992_v7 }
0x2304   : > { %6993 = vrcp.f32 %v5771_v32  ;;  %v5783_v38 = vand.u32 2147483648, %v5771_v32  ;;  %vm5777_vm9 = vweird.f32 %v5771_v32  ;;  %v5781_v10 = vand.u32 2147483647, %v5771_v32 }
0x2306   : > { %v5784_v15 = vor.u32 1.1754944e-38, %v5783_v38  ;;  %vm5782_vm11 = vcmp.eq.f32.partialorder %v5781_v10, 8.507059e+37 }
0x230a   : > { %v6994_v59 = vpop.eup %6993 }
0x230b   : > { %v5773_v50 = vmul.f32 %v6994_v59, %v5771_v32  ;;  %vm5778_vm8 = vweird.f32 %v6994_v59 }
0x230c   : > { %vm5779_vm10 = vmor %vm5777_vm9, %vm5778_vm8 }
0x230d   : > { %v5774_v41 = vsub.f32 1.0, %v5773_v50 }
0x230f   : > { %v5775_v42 = vmul.f32 %v6994_v59, %v5774_v41  ;;  %v6234_v41 = vld [vmem:[#allocation4 + $0x18] sm:$0xff] }
0x2310   : > { %v6257_v38 = vsel %vm1215_vm5, %v6234_v41, 0 }
0x2311   : > { %v5776_v3 = vadd.f32 %v6994_v59, %v5775_v42 }
0x2313   : > { %v5780_v4 = vsel %vm5779_vm10, %v6994_v59, %v5776_v3 }
0x2314   : > { %v5785_v9 = vsel %vm5782_vm11, %v5784_v15, %v5780_v4  ;;  %v8603_v15 = vand.u32 4294901760, %v6257_v38 }
0x2315   : > { %v5788_v40 = vmul.f32 %v5785_v9, %v8421_v8  ;;  %v6241_v8 = vld [vmem:[%s8726_s8 + $0x10] sm:$0xff] }
0x2316   : > { %v8503_v30 = vand.u32 4294901760, %v6241_v8 }
0x2318   : > { %v8516_v63 = vsub.f32 %v6241_v8, %v8503_v30 }
0x231a   : > { %v6376_v56 = vand.u32 4294901760, %v8516_v63 }
0x231c   : > { %v6377_v26 = vsub.f32 %v8516_v63, %v6376_v56 }
0x231e   : > { %v6378_v29 = vand.u32 4294901760, %v6377_v26 }
0x235a   : > { %v5791_v12 = vpop.permute.xlu2 %5790 }
0x235b   : > { %v5793_v60 = vmul.f32 %v5791_v12, %v5785_v9  ;;  %v6235_v12 = vld [vmem:[#allocation4 + $0x20] sm:$0xff] }
0x235d   : > { %5795 = vrot.lane.b32.xlu0 %v5793_v60, %s7049_s16  ;;  %v6316_v60 = vsub.f32 %v6257_v38, %v8603_v15 }
0x23cf   : > { %v5796_v19 = vpop.permute.xlu0 %5795 }
0x23d0   : > { %v8487_v25 = vadd.f32 %v5796_v19, %v5788_v40  ;;  %v6260_v40 = vsel %vm1215_vm5, %v6235_v12, 0 }
0x23d2   : > { %6995 = vtanh.f32 %v8487_v25 }
0x23d8   : > { %v6996_v55 = vpop.eup %6995 }
0x23d9   : > { %5801 = vrot.lane.b32.xlu1 %v6996_v55, %s7048_s14  ;;  %v6317_v55 = vand.u32 4294901760, %v6316_v60 }
0x23db   : > { %v6318_v46 = vsub.f32 %v6316_v60, %v6317_v55 }
0x23dd   : > { %v6319_v45 = vand.u32 4294901760, %v6318_v46 }
0x244b   : > { %v5802_v21 = vpop.permute.xlu1 %5801 }
0x244c   : > { %v5804_v22 = vmul.f32 %v5802_v21, %v5785_v9  ;;  %v8608_v21 = vand.u32 4294901760, %v6260_v40 }
0x244e   : > { %5806 = vrot.lane.b32.xlu2 %v5804_v22, %s7049_s16  ;;  %v6236_v22 = vld [vmem:[#allocation4 + $0x28] sm:$0xff] }
0x244f   : > { %v6263_v8 = vsel %vm1215_vm5, %v6236_v22, 0 }
0x24a8   : > { %v5807_v2 = vpop.permute.xlu2 %5806 }
0x24a9   : > { %5809 = vst.msk [vmem:[#allocation4 + $0x30] sm:$0xff] %vm1215_vm5, %v5807_v2  ;;  %v5810_v49 = vsel %vm1215_vm5, %v5807_v2, 0 }
0x24aa   : > { %v5832_v54 = vand.u32 4294901760, %v5810_v49 }
0x24ac   : > { %v8524_v24 = vsub.f32 %v5810_v49, %v5832_v54  ;;  %5878 = vmatmul.f32.vlgmr.msra.gmra.mxu3 %v5832_v54 }
0x24ad   : > { %6110 = vmatpush.msra.mxu3 %v8011_v18 }
0x24ae   : > { %v5834_v11 = vand.u32 4294901760, %v8524_v24  ;;  %5908 = vmatmul.f32.vlgmr.msra.gmra.mxu0 %v8524_v24 }
0x24af   : > { %6112 = vmatpush.msra.mxu3 %v8017_v5  ;;  %6139 = vmatpush.msra.mxu0 %v8027_v16  ;;  %v6383_v16 = vsub.f32 %v8522_v37, %v6382_v0 }
0x24b0   : > { %v5835_v14 = vsub.f32 %v8524_v24, %v5834_v11  ;;  %5935 = vmatmul.f32.vlgmr.msra.gmra.mxu1 %v5834_v11 }
0x24b1   : > { %6114 = vmatpush.msra.mxu3 %v8029_v27  ;;  %6143 = vmatpush.msra.mxu0 %v8041_v51  ;;  %v6231_v51 = vld [vmem:[#allocation4] sm:$0xff] }
0x24b2   : > { %v5836_v57 = vand.u32 4294901760, %v5835_v14  ;;  %6170 = vmatpush.msra.mxu1 %v8011_v18  ;;  %v6389_v18 = vsub.f32 %v8534_v47, %v6388_v1  ;;  %v6248_v36 = vsel %vm1215_vm5, %v6231_v51, 0 }
0x24b3   : > { %6116 = vmatpush.msra.mxu3 %v8043_v61  ;;  %6147 = vmatpush.msra.mxu0 %v8054_v43  ;;  %v6384_v43 = vand.u32 4294901760, %v6383_v16  ;;  %v8802_v16 = vld [vmem:[#allocation47_spill] sm:$0xff] }
0x24b4   : > { %5837 = vmatmul.f32.vlgmr.msra.gmra.mxu2 %v5836_v57  ;;  %5993 = vmatmul.f32.vlgmr.msrb.gmra.mxu3 %v5832_v54 }
0x24b5   : > { %6172 = vmatpush.msra.mxu1 %v8017_v5  ;;  %6081 = vmatpush.msra.mxu2 %v8020_v13  ;;  %v6390_v5 = vand.u32 4294901760, %v6389_v18  ;;  %v8564_v13 = vand.u32 4294901760, %v6248_v36 }
0x24b6   : > { %6022 = vmatmul.f32.vlgmr.msrb.gmra.mxu0 %v5836_v57  ;;  %6373 = vmatpush.msrb.mxu3 %v6372_v53  ;;  %v8800_v57 = vld [vmem:[#allocation20_spill] sm:$0xff]  ;;  %v8801_v53 = vld [vmem:[#allocation21_spill] sm:$0xff] }
0x24b7   : > { %6151 = vmatpush.msra.mxu0 %v8065_v28  ;;  %6174 = vmatpush.msra.mxu1 %v8029_v27  ;;  %v6232_v27 = vld [vmem:[#allocation4 + $0x8] sm:$0xff]  ;;  %v6233_v28 = vld [vmem:[#allocation4 + $0x10] sm:$0xff] }
0x24b8   : > { %6063 = vmatmul.f32.vlgmr.msrb.gmra.mxu1 %v5832_v54  ;;  %6084 = vmatpush.msra.mxu2 %v8032_v33  ;;  %v6292_v33 = vsub.f32 %v6248_v36, %v8564_v13  ;;  %v6254_v7 = vsel %vm1215_vm5, %v6233_v28, 0 }
0x24b9   : > { %6176 = vmatpush.msra.mxu1 %v8043_v61  ;;  %6379 = vmatpush.msrb.mxu3 %v6378_v29  ;;  %v6251_v61 = vsel %vm1215_vm5, %v6232_v27, 0  ;;  %v8592_v50 = vand.u32 4294901760, %v6254_v7 }
0x24ba   : > { %6439 = vmatpush.msrb.mxu0 %v8506_v48  ;;  %6087 = vmatpush.msra.mxu2 %v8046_v6  ;;  %v6293_v6 = vand.u32 4294901760, %v6292_v33  ;;  %v8613_v48 = vand.u32 4294901760, %v6263_v8 }
0x24bb   : > { %6385 = vmatpush.msrb.mxu3 %v6384_v43  ;;  %6503 = vmatpush.msrb.mxu1 %v8495_v17  ;;  %v6308_v3 = vsub.f32 %v6254_v7, %v8592_v50 }
0x24bc   : > { %5968 = vmatmul.f32.vlgmr.msrb.gmra.mxu2 %v5832_v54  ;;  %6120 = vmatmul.f32.vlgmr.msra.gmra.mxu3 %v5834_v11  ;;  %v6294_v39 = vsub.f32 %v6292_v33, %v6293_v6  ;;  %v6332_v2 = vsub.f32 %v6263_v8, %v8613_v48 }
0x24bd   : > { %6442 = vmatpush.msrb.mxu0 %v8516_v63  ;;  %6090 = vmatpush.msra.mxu2 %v8057_v34  ;;  %v8577_v34 = vand.u32 4294901760, %v6251_v61  ;;  %v6309_v4 = vand.u32 4294901760, %v6308_v3 }
0x24be   : > { %6153 = vmatmul.f32.vlgmr.msra.gmra.mxu0 %v5832_v54  ;;  %6391 = vmatpush.msrb.mxu3 %v6390_v5  ;;  %v6295_v32 = vand.u32 4294901760, %v6294_v39  ;;  %v8803_v5 = vld [vmem:[#allocation46_spill] sm:$0xff] }
0x24bf   : > { %6445 = vmatpush.msrb.mxu0 %v8522_v37  ;;  %6505 = vmatpush.msrb.mxu1 %v8503_v30  ;;  %v6300_v31 = vsub.f32 %v6251_v61, %v8577_v34  ;;  %v6310_v9 = vsub.f32 %v6308_v3, %v6309_v4 }
0x24c0   : > { %6178 = vmatmul.f32.vlgmr.msra.gmra.mxu1 %v5832_v54  ;;  %6284 = vmatpush.msrb.mxu2 %v8495_v17  ;;  %v6333_v54 = vand.u32 4294901760, %v6332_v2 }
0x24c1   : > { %6448 = vmatpush.msrb.mxu0 %v8534_v47  ;;  %6507 = vmatpush.msrb.mxu1 %v8508_v62  ;;  %v6301_v59 = vand.u32 4294901760, %v6300_v31  ;;  %v6311_v19 = vand.u32 4294901760, %v6310_v9  ;;  %v6183_v9 = vstv %s6836_s28 }
0x24c2   : > { %6286 = vmatpush.msrb.mxu2 %v8503_v30  ;;  %6633 = vmatpush.msra.mxu3 %v8495_v17  ;;  %v6324_v17 = vsub.f32 %v6260_v40, %v8608_v21  ;;  %vm6184_vm12 = vcmp.ne.s32.totalorder %v6183_v9, 0 }
0x24c3   : > { %6509 = vmatpush.msrb.mxu1 %v8519_v35  ;;  %v6302_v42 = vsub.f32 %v6300_v31, %v6301_v59 }
0x24c4   : > { %6093 = vmatmul.f32.vlgmr.msra.gmra.mxu2 %v8524_v24  ;;  %6393 = vmatmul.f32.vlgmr.msrb.gmra.mxu3 %v8564_v13 }
0x24c5   : > { %6288 = vmatpush.msrb.mxu2 %v8508_v62  ;;  %6635 = vmatpush.msra.mxu3 %v8503_v30  ;;  %v6303_v10 = vand.u32 4294901760, %v6302_v42  ;;  %v6325_v30 = vand.u32 4294901760, %v6324_v17  ;;  %v8805_v42 = vld [vmem:[#allocation39_spill] sm:$0xff] }
0x24c6   : > { %6451 = vmatmul.f32.vlgmr.msrb.gmra.mxu0 %v6292_v33 }
0x24c7   : > { %6290 = vmatpush.msrb.mxu2 %v8519_v35  ;;  %6637 = vmatpush.msra.mxu3 %v8508_v62  ;;  %v6237_v62 = vld [vmem:[#allocation4 + $0x30] sm:$0xff]  ;;  %v6326_v20 = vsub.f32 %v6324_v17, %v6325_v30 }
0x24c8   : > { %6513 = vmatmul.f32.vlgmr.msrb.gmra.mxu1 %v6293_v6  ;;  %v6266_v49 = vsel %vm1215_vm5, %v6237_v62, 0  ;;  %v8804_v6 = vld [vmem:[#allocation38_spill] sm:$0xff] }
0x24c9   : > { %6574 = vmatpush.msra.mxu2 %v6370_v52  ;;  %6639 = vmatpush.msra.mxu3 %v8519_v35  ;;  %v6327_v63 = vand.u32 4294901760, %v6326_v20  ;;  %v8618_v52 = vand.u32 4294901760, %v6266_v49  ;;  %v6334_v35 = vsub.f32 %v6332_v2, %v6333_v54 }
0x24cb   : > { %6578 = vmatpush.msra.mxu2 %v6376_v56  ;;  %v6340_v37 = vsub.f32 %v6266_v49, %v8618_v52  ;;  %v6335_v24 = vand.u32 4294901760, %v6334_v35 }
0x24cc   : > { %6296 = vmatmul.f32.vlgmr.msrb.gmra.mxu2 %v6295_v32  ;;  %6397 = vmatmul.f32.gmra.mxu3 %v8577_v34 }
0x24cd   : > { %6582 = vmatpush.msra.mxu2 %v6382_v0  ;;  %v6341_v56 = vand.u32 4294901760, %v6340_v37 }
0x24ce   : > { %6456 = vmatmul.f32.gmra.mxu0 %v6300_v31 }
0x24cf   : > { %6586 = vmatpush.msra.mxu2 %v6388_v1  ;;  %v6342_v11 = vsub.f32 %v6340_v37, %v6341_v56  ;;  %v927_v1 = vadd.f32 %v8801_v53, %v8800_v57 }
0x24d0   : > { %6519 = vmatmul.f32.gmra.mxu1 %v6301_v59 }
0x24d1   : > { %v6343_v58 = vand.u32 4294901760, %v6342_v11  ;;  %v985_v51 = vadd.f32 %v8802_v16, %v927_v1 }
0x24d3   : > { %v1050_v27 = vadd.f32 %v8803_v5, %v985_v51 }
0x24d4   : > { %6304 = vmatmul.f32.gmra.mxu2 %v6303_v10  ;;  %6401 = vmatmul.f32.gmra.mxu3 %v8592_v50 }
0x24d5   : > { %v1104_v28 = vadd.f32 %v8804_v6, %v1050_v27 }
0x24d6   : > { %6461 = vmatmul.f32.gmra.mxu0 %v6308_v3 }
0x24d7   : > { %v1154_v3 = vadd.f32 %v8805_v42, %v1104_v28 }
0x24d8   : > { %6525 = vmatmul.f32.gmra.mxu1 %v6309_v4 }
0x24d9   : > { %v1190_v40 = vadd.f32 %v8409_v23, %v1154_v3 }
0x24dc   : > { %6312 = vmatmul.f32.gmra.mxu2 %v6311_v19  ;;  %6405 = vmatmul.f32.gmra.mxu3 %v8603_v15 }
0x24de   : > { %6466 = vmatmul.f32.gmra.mxu0 %v6316_v60 }
0x24e0   : > { %6531 = vmatmul.f32.gmra.mxu1 %v6317_v55 }
0x24e4   : > { %6320 = vmatmul.f32.gmra.mxu2 %v6319_v45  ;;  %6409 = vmatmul.f32.gmra.mxu3 %v8608_v21 }
0x24e6   : > { %6471 = vmatmul.f32.gmra.mxu0 %v6324_v17 }
0x24e8   : > { %6537 = vmatmul.f32.gmra.mxu1 %v6325_v30 }
0x24ec   : > { %6328 = vmatmul.f32.gmra.mxu2 %v6327_v63  ;;  %6413 = vmatmul.f32.gmra.mxu3 %v8613_v48 }
0x24ee   : > { %6476 = vmatmul.f32.gmra.mxu0 %v6332_v2 }
0x24f0   : > { %6543 = vmatmul.f32.gmra.mxu1 %v6333_v54 }
0x24f4   : > { %6336 = vmatmul.f32.gmra.mxu2 %v6335_v24  ;;  %6417 = vmatmul.f32.gmra.mxu3 %v8618_v52 }
0x24f6   : > { %6481 = vmatmul.f32.gmra.mxu0 %v6340_v37 }
0x24f8   : > { %6549 = vmatmul.f32.gmra.mxu1 %v6341_v56 }
0x24fc   : > { %6344 = vmatmul.f32.gmra.mxu2 %v6343_v58 }
0x252b   : > { %v5909_v0 = vpop.f32.mrf.mxu0 }
0x252d   : > { %v5936_v26 = vpop.f32.mrf.mxu1 }
0x252f   : > { %v5879_v47 = vpop.f32.mrf.mxu3 }
0x2533   : > { %v6023_v36 = vpop.f32.mrf.mxu0 }
0x2535   : > { %v6064_v61 = vpop.f32.mrf.mxu1 }
0x2536   : > { %v6065_v39 = vadd.f32 %v6064_v61, %v6023_v36 }
0x2537   : > { %v5838_v14 = vpop.f32.mrf.mxu2  ;;  %v5994_v18 = vpop.f32.mrf.mxu3 }
0x2538   : > { %v5880_v29 = vadd.f32 %v5879_v47, %v5838_v14 }
0x253a   : > { %v5910_v33 = vadd.f32 %v5909_v0, %v5880_v29 }
0x253b   : > { %v6154_v10 = vpop.f32.mrf.mxu0 }
0x253c   : > { %v5937_v31 = vadd.f32 %v5936_v26, %v5910_v33 }
0x253d   : > { %v6179_v60 = vpop.f32.mrf.mxu1 }
0x253f   : > { %v5969_v43 = vpop.f32.mrf.mxu2  ;;  %v6121_v41 = vpop.f32.mrf.mxu3 }
0x2540   : > { %v5970_v32 = vadd.f32 %v5969_v43, %v5937_v31 }
0x2542   : > { %v5995_v4 = vadd.f32 %v5994_v18, %v5970_v32 }
0x2544   : > { %v6186_v55 = vadd.f32 %v5995_v4, %v1190_v40 }
0x2547   : > { %v6094_v7 = vpop.f32.mrf.mxu2 }
0x2548   : > { %v6095_v59 = vadd.f32 %v6094_v7, %v6065_v39  ;;  %v6514_v7 = vpop.f32.mrf.mxu1 }
0x254a   : > { %v6122_v38 = vadd.f32 %v6121_v41, %v6095_v59 }
0x254c   : > { %v6155_v12 = vadd.f32 %v6154_v10, %v6122_v38 }
0x254e   : > { %v6180_v19 = vadd.f32 %v6179_v60, %v6155_v12 }
0x2550   : > { %v6187_v22 = vadd.f32 %v8415_v44, %v6180_v19  ;;  %v6520_v4 = vpop.f32.mrf.mxu1 }
0x2552   : > { %v6188_v46 = vsel %vm6184_vm12, %v6186_v55, %v6187_v22 }
0x2553   : > { %6997 = vtanh.f32 %v6188_v46  ;;  %v6837_v8 = vmul.f32 -1.442695, %v6188_v46 }
0x2555   : > { %6999 = vpow2.f32 %v6837_v8 }
0x2558   : > { %v6526_v8 = vpop.f32.mrf.mxu1 }
0x2559   : > { %v6998_v17 = vpop.eup %6997 }
0x255a   : > { %6211 = vrot.lane.b32.xlu0 %v6998_v17, %s7048_s14 }
0x255b   : > { %v7000_v45 = vpop.eup %6999 }
0x255c   : > { %v6192_v30 = vadd.f32 1.0, %v7000_v45 }
0x255e   : > { %7001 = vrcp.f32 %v6192_v30  ;;  %v6204_v63 = vand.u32 2147483648, %v6192_v30  ;;  %vm6198_vm14 = vweird.f32 %v6192_v30  ;;  %v6202_v54 = vand.u32 2147483647, %v6192_v30 }
0x2560   : > { %v6205_v35 = vor.u32 1.1754944e-38, %v6204_v63  ;;  %vm6203_vm1 = vcmp.eq.f32.partialorder %v6202_v54, 8.507059e+37 }
0x2564   : > { %v7002_v62 = vpop.eup %7001 }
0x2565   : > { %v6194_v20 = vmul.f32 %v7002_v62, %v6192_v30  ;;  %vm6199_vm13 = vweird.f32 %v7002_v62 }
0x2566   : > { %vm6200_vm15 = vmor %vm6198_vm14, %vm6199_vm13 }
0x2567   : > { %v6195_v2 = vsub.f32 1.0, %v6194_v20 }
0x2569   : > { %v6196_v49 = vmul.f32 %v7002_v62, %v6195_v2 }
0x256b   : > { %v6197_v23 = vadd.f32 %v7002_v62, %v6196_v49 }
0x256d   : > { %v6201_v44 = vsel %vm6200_vm15, %v7002_v62, %v6197_v23 }
0x256e   : > { %v6206_v24 = vsel %vm6203_vm1, %v6205_v35, %v6201_v44 }
0x256f   : > { %v6209_v11 = vmul.f32 %v6206_v24, %v8487_v25 }
0x25cc   : > { %v6212_v37 = vpop.permute.xlu0 %6211 }
0x25cd   : > { %v6214_v56 = vmul.f32 %v6212_v37, %v6206_v24  ;;  %v6532_v37 = vpop.f32.mrf.mxu1 }
0x25cf   : > { %6216 = vrot.lane.b32.xlu1 %v6214_v56, %s7049_s16 }
0x2641   : > { %v6217_v58 = vpop.permute.xlu1 %6216 }
0x2642   : > { %v6219_v47 = vadd.f32 %v6217_v58, %v6209_v11 }
0x2644   : > { %7003 = vtanh.f32 %v6219_v47 }
0x264a   : > { %v7004_v0 = vpop.eup %7003 }
0x264b   : > { %6222 = vrot.lane.b32.xlu2 %v7004_v0, %s7048_s14 }
0x26a5   : > { %v6223_v14 = vpop.permute.xlu2 %6222 }
0x26a6   : > { %v6225_v26 = vmul.f32 %v6223_v14, %v6206_v24 }
0x26a8   : > { %6227 = vrot.lane.b32.xlu0 %v6225_v26, %s7049_s16 }
0x271a   : > { %v6228_v57 = vpop.permute.xlu0 %6227 }
0x271b   : > { %6230 = vst.msk [vmem:[#allocation4 + $0x38] sm:$0xff] %vm1215_vm5, %v6228_v57 }
0x2722   : > { %v6238_v53 = vld [vmem:[#allocation4 + $0x38] sm:$0xff] }
0x2723   : > { %v6269_v1 = vsel %vm1215_vm5, %v6238_v53, 0 }
0x2724   : > { %v6347_v16 = vand.u32 4294901760, %v6269_v1 }
0x2726   : > { %6421 = vmatmul.f32.gmra.mxu3 %v6347_v16  ;;  %v6348_v51 = vsub.f32 %v6269_v1, %v6347_v16 }
0x2728   : > { %6486 = vmatmul.f32.gmra.mxu0 %v6348_v51  ;;  %v6349_v25 = vand.u32 4294901760, %v6348_v51 }
0x272a   : > { %6555 = vmatmul.f32.gmra.mxu1 %v6349_v25  ;;  %v6350_v29 = vsub.f32 %v6348_v51, %v6349_v25 }
0x272c   : > { %v6351_v18 = vand.u32 4294901760, %v6350_v29 }
0x272e   : > { %6352 = vmatmul.f32.gmra.mxu2 %v6351_v18  ;;  %6641 = vmatmul.f32.vlgmr.msra.gmra.mxu3 %v8564_v13 }
0x2736   : > { %6588 = vmatmul.f32.vlgmr.msra.gmra.mxu2 %v8564_v13  ;;  %6645 = vmatmul.f32.gmra.mxu3 %v8577_v34  ;;  %v6394_v13 = vpop.f32.mrf.mxu3 }
0x273e   : > { %6592 = vmatmul.f32.gmra.mxu2 %v8577_v34  ;;  %6649 = vmatmul.f32.gmra.mxu3 %v8592_v50  ;;  %v6297_v34 = vpop.f32.mrf.mxu2 }
0x2746   : > { %6596 = vmatmul.f32.gmra.mxu2 %v8592_v50  ;;  %6653 = vmatmul.f32.gmra.mxu3 %v8603_v15  ;;  %v6398_v50 = vpop.f32.mrf.mxu3  ;;  %v6305_v43 = vpop.f32.mrf.mxu2 }
0x274e   : > { %6600 = vmatmul.f32.gmra.mxu2 %v8603_v15  ;;  %6657 = vmatmul.f32.gmra.mxu3 %v8608_v21  ;;  %v6402_v36 = vpop.f32.mrf.mxu3  ;;  %v6313_v15 = vpop.f32.mrf.mxu2 }
0x2756   : > { %6604 = vmatmul.f32.gmra.mxu2 %v8608_v21  ;;  %6661 = vmatmul.f32.gmra.mxu3 %v8613_v48  ;;  %v6406_v5 = vpop.f32.mrf.mxu3  ;;  %v6321_v27 = vpop.f32.mrf.mxu2 }
0x275e   : > { %6608 = vmatmul.f32.gmra.mxu2 %v8613_v48  ;;  %6665 = vmatmul.f32.gmra.mxu3 %v8618_v52  ;;  %v6410_v33 = vpop.f32.mrf.mxu3  ;;  %v6329_v21 = vpop.f32.mrf.mxu2 }
0x275f   : > { %v6452_v48 = vpop.f32.mrf.mxu0 }
0x2766   : > { %6612 = vmatmul.f32.gmra.mxu2 %v8618_v52  ;;  %6669 = vmatmul.f32.gmra.mxu3 %v6347_v16  ;;  %v6414_v61 = vpop.f32.mrf.mxu3  ;;  %v6337_v6 = vpop.f32.mrf.mxu2  ;;  %v8657_v52 = vld [vmem:[%s8727_s9] ss:$0 sm:$0xff] }
0x2767   : > { %v6298_v32 = vadd.f32 %v8657_v52, %v6297_v34  ;;  %v6457_v59 = vpop.f32.mrf.mxu0  ;;  %v6306_v38 = vadd.f32 %v8657_v52, %v6305_v43  ;;  %v6314_v22 = vadd.f32 %v8657_v52, %v6313_v15  ;;  %v6322_v49 = vadd.f32 %v8657_v52, %v6321_v27 }
0x2768   : > { %v6330_v58 = vadd.f32 %v8657_v52, %v6329_v21  ;;  %v6338_v51 = vadd.f32 %v8657_v52, %v6337_v6 }
0x2769   : > { %v6395_v41 = vadd.f32 %v6394_v13, %v6298_v32  ;;  %v6399_v12 = vadd.f32 %v6398_v50, %v6306_v38  ;;  %v6403_v45 = vadd.f32 %v6402_v36, %v6314_v22  ;;  %v6407_v44 = vadd.f32 %v6406_v5, %v6322_v49 }
0x276a   : > { %v6411_v26 = vadd.f32 %v6410_v33, %v6330_v58  ;;  %v6415_v13 = vadd.f32 %v6414_v61, %v6338_v51 }
0x276b   : > { %v6453_v10 = vadd.f32 %v6452_v48, %v6395_v41  ;;  %v6458_v17 = vadd.f32 %v6457_v59, %v6399_v12 }
0x276d   : > { %v6515_v9 = vadd.f32 %v6514_v7, %v6453_v10  ;;  %v6521_v30 = vadd.f32 %v6520_v4, %v6458_v17 }
0x276e   : > { %6616 = vmatmul.f32.gmra.mxu2 %v6347_v16  ;;  %v8652_v28 = vpop.f32.mrf.mxu3  ;;  %v6345_v39 = vpop.f32.mrf.mxu2 }
0x276f   : > { %v6462_v55 = vpop.f32.mrf.mxu0  ;;  %v6538_v16 = vpop.f32.mrf.mxu1  ;;  %v6346_v15 = vadd.f32 %v8657_v52, %v6345_v39 }
0x2770   : > { %v6463_v63 = vadd.f32 %v6462_v55, %v6403_v45 }
0x2771   : > { %v6419_v6 = vadd.f32 %v8652_v28, %v6346_v15 }
0x2772   : > { %v6527_v35 = vadd.f32 %v6526_v8, %v6463_v63 }
0x2777   : > { %v6467_v54 = vpop.f32.mrf.mxu0  ;;  %v6544_v33 = vpop.f32.mrf.mxu1 }
0x2778   : > { %v6468_v0 = vadd.f32 %v6467_v54, %v6407_v44 }
0x277a   : > { %v6533_v57 = vadd.f32 %v6532_v37, %v6468_v0 }
0x277f   : > { %v6472_v14 = vpop.f32.mrf.mxu0  ;;  %v6550_v39 = vpop.f32.mrf.mxu1 }
0x2780   : > { %v6473_v29 = vadd.f32 %v6472_v14, %v6411_v26 }
0x2782   : > { %v6539_v34 = vadd.f32 %v6538_v16, %v6473_v29 }
0x2787   : > { %v6477_v50 = vpop.f32.mrf.mxu0 }
0x2788   : > { %v6478_v27 = vadd.f32 %v6477_v50, %v6415_v13 }
0x278a   : > { %v6545_v48 = vadd.f32 %v6544_v33, %v6478_v27 }
0x278f   : > { %v6482_v61 = vpop.f32.mrf.mxu0 }
0x27a9   : > { %v8659_v31 = vpop.f32.mrf.mxu3 }
0x27b1   : > { %v8662_v42 = vpop.f32.mrf.mxu2  ;;  %v6642_v3 = vpop.f32.mrf.mxu3 }
0x27b2   : > { %v6354_v59 = vadd.f32 %v8657_v52, %v8662_v42 }
0x27b4   : > { %v6423_v38 = vadd.f32 %v8659_v31, %v6354_v59 }
0x27b9   : > { %v6589_v60 = vpop.f32.mrf.mxu2  ;;  %v6646_v40 = vpop.f32.mrf.mxu3 }
0x27ba   : > { %v6590_v19 = vadd.f32 %v6589_v60, %v6515_v9  ;;  %v6487_v9 = vpop.f32.mrf.mxu0 }
0x27bc   : > { %v6643_v46 = vadd.f32 %v6642_v3, %v6590_v19  ;;  %v6483_v3 = vadd.f32 %v6482_v61, %v6419_v6  ;;  %v6556_v19 = vpop.f32.mrf.mxu1 }
0x27be   : > { %6673 = vst.msk [vmem:[%s8667_s29] sm:$0xff] %vm409_vm0, %v6643_v46  ;;  %v6551_v10 = vadd.f32 %v6550_v39, %v6483_v3 }
0x27c1   : > { %v6593_v62 = vpop.f32.mrf.mxu2  ;;  %v6650_v20 = vpop.f32.mrf.mxu3 }
0x27c2   : > { %v6594_v2 = vadd.f32 %v6593_v62, %v6521_v30 }
0x27c4   : > { %v6647_v23 = vadd.f32 %v6646_v40, %v6594_v2  ;;  %v6488_v40 = vadd.f32 %v6487_v9, %v6423_v38 }
0x27c5   : > { %v6732_v31 = vld [vmem:[%s8667_s29] sm:$0xff] (%p7138_p5) }
0x27c6   : > { %6674 = vst.msk [vmem:[%s8667_s29 + $0x8] sm:$0xff] %vm409_vm0, %v6647_v23  ;;  %v6557_v55 = vadd.f32 %v6556_v19, %v6488_v40 }
0x27c7   : > { %6733 = vst [vmem:[%s6689_s12] sm:$0xff] (%p7138_p5), %v6732_v31 }
0x27c9   : > { %v6597_v24 = vpop.f32.mrf.mxu2  ;;  %v6654_v11 = vpop.f32.mrf.mxu3 }
0x27ca   : > { %v6598_v56 = vadd.f32 %v6597_v24, %v6527_v35 }
0x27cc   : > { %v6651_v47 = vadd.f32 %v6650_v20, %v6598_v56 }
0x27cd   : > { %v6734_v17 = vld [vmem:[%s8667_s29 + $0x8] sm:$0xff] (%p7138_p5) }
0x27ce   : > { %6675 = vst.msk [vmem:[%s8667_s29 + $0x10] sm:$0xff] %vm409_vm0, %v6651_v47 }
0x27cf   : > { %6735 = vst [vmem:[%s6689_s12 + $0x10] sm:$0xff] (%p7138_p5), %v6734_v17 }
0x27d1   : > { %v6601_v53 = vpop.f32.mrf.mxu2  ;;  %v6658_v18 = vpop.f32.mrf.mxu3 }
0x27d2   : > { %v6602_v1 = vadd.f32 %v6601_v53, %v6533_v57 }
0x27d4   : > { %v6655_v25 = vadd.f32 %v6654_v11, %v6602_v1 }
0x27d5   : > { %v6736_v8 = vld [vmem:[%s8667_s29 + $0x10] sm:$0xff] (%p7138_p5) }
0x27d6   : > { %6676 = vst.msk [vmem:[%s8667_s29 + $0x18] sm:$0xff] %vm409_vm0, %v6655_v25 }
0x27d7   : > { %6737 = vst [vmem:[%s6689_s12 + $0x20] sm:$0xff] (%p7138_p5), %v6736_v8 }
0x27d9   : > { %v6605_v43 = vpop.f32.mrf.mxu2  ;;  %v6662_v21 = vpop.f32.mrf.mxu3 }
0x27da   : > { %v6606_v36 = vadd.f32 %v6605_v43, %v6539_v34 }
0x27dc   : > { %v6659_v5 = vadd.f32 %v6658_v18, %v6606_v36 }
0x27dd   : > { %v6738_v45 = vld [vmem:[%s8667_s29 + $0x18] sm:$0xff] (%p7138_p5) }
0x27de   : > { %6677 = vst.msk [vmem:[%s8667_s29 + $0x20] sm:$0xff] %vm409_vm0, %v6659_v5 }
0x27df   : > { %6739 = vst [vmem:[%s6689_s12 + $0x30] sm:$0xff] (%p7138_p5), %v6738_v45 }
0x27e1   : > { %v6609_v7 = vpop.f32.mrf.mxu2  ;;  %v6666_v4 = vpop.f32.mrf.mxu3 }
0x27e2   : > { %v6610_v32 = vadd.f32 %v6609_v7, %v6545_v48 }
0x27e4   : > { %v6663_v41 = vadd.f32 %v6662_v21, %v6610_v32 }
0x27e5   : > { %v6740_v30 = vld [vmem:[%s8667_s29 + $0x20] sm:$0xff] (%p7138_p5) }
0x27e6   : > { %6678 = vst.msk [vmem:[%s8667_s29 + $0x28] sm:$0xff] %vm409_vm0, %v6663_v41 }
0x27e7   : > { %6741 = vst [vmem:[%s6689_s12 + $0x40] sm:$0xff] (%p7138_p5), %v6740_v30 }
0x27e9   : > { %v6613_v12 = vpop.f32.mrf.mxu2  ;;  %v6670_v22 = vpop.f32.mrf.mxu3 }
0x27ea   : > { %v6614_v28 = vadd.f32 %v6613_v12, %v6551_v10 }
0x27ec   : > { %v6667_v60 = vadd.f32 %v6666_v4, %v6614_v28 }
0x27ed   : > { %v6742_v62 = vld [vmem:[%s8667_s29 + $0x28] sm:$0xff] (%p7138_p5) }
0x27ee   : > { %6679 = vst.msk [vmem:[%s8667_s29 + $0x30] sm:$0xff] %vm409_vm0, %v6667_v60 }
0x27ef   : > { %6743 = vst [vmem:[%s6689_s12 + $0x50] sm:$0xff] (%p7138_p5), %v6742_v62 }
0x27f1   : > { %v6617_v52 = vpop.f32.mrf.mxu2 }
0x27f2   : > { %v6618_v42 = vadd.f32 %v6617_v52, %v6557_v55  ;;  %6687 = sbr.rel (!%p7138_p5) target bundleno = 10239 (0x27ff), region = 98 }
0x27f4   : > { %v6671_v46 = vadd.f32 %v6670_v22, %v6618_v42 }
0x27f5   : > { %v6744_v20 = vld [vmem:[%s8667_s29 + $0x30] sm:$0xff] (%p7138_p5) }
0x27f6   : > { %6680 = vst.msk [vmem:[%s8667_s29 + $0x38] sm:$0xff] %vm409_vm0, %v6671_v46 }
0x27f7   : > { %6745 = vst [vmem:[%s6689_s12 + $0x60] sm:$0xff] %v6744_v20 }
0x27fd   : > { %v6746_v2 = vld [vmem:[%s8667_s29 + $0x38] sm:$0xff] }
0x27fe   : > { %6747 = vst [vmem:[%s6689_s12 + $0x70] sm:$0xff] %v6746_v2 }
0x27ff PF: > { %p25_p10 = scmp.ge.s32.totalorder %s7125_s20, 4   ;;  %s8806_s17 = smov %s7040_s18 }
0x2800   : > { %s8807_s18 = smov %s7136_s23  ;;  %s8808_s19 = smov %s7125_s20 }
0x2801   :  { %27 = sbr.rel (!%p25_p10) target bundleno = 8 (0x8), region = 167 }

</bundles_post_ra>
